<compile_context>
chip_gen: v7x
topology: tpu7x:2x2x1
jax: 0.10.0
libtpu: 0.0.40
codegen_flags: <defaults>
</compile_context>

<pallas_src>
import jax
import jax.numpy as jnp
from jax.experimental import pallas as pl
from jax.experimental.pallas import tpu as pltpu


def _round_up(n, m):
    return ((n + m - 1) // m) * m


def _leaky_relu(x, slope=0.2):
    # max(x, slope*x): cheaper than where(compare, select) on the VPU.
    return jnp.maximum(x, slope * x)


def generator_kernel(x_ref,
                     w1_ref, b1_ref,
                     w2_ref, b2_ref,
                     w3_ref, b3_ref,
                     w4_ref, b4_ref,
                     out_ref):
    # All matmul operands are bf16; accumulation and elementwise math are f32.

    # Layer 1: (tm, 128) @ (128, 256) + (1, 256) -> leaky_relu(0.2)
    h = jnp.dot(x_ref[...], w1_ref[...], preferred_element_type=jnp.float32)
    h = _leaky_relu(h + b1_ref[...])

    # Layer 2: (tm, 256) @ (256, 512) + (1, 512) -> leaky_relu(0.2)
    h = jnp.dot(h.astype(jnp.bfloat16), w2_ref[...],
                preferred_element_type=jnp.float32)
    h = _leaky_relu(h + b2_ref[...])

    # Layer 3: (tm, 512) @ (512, 1024) + (1, 1024) -> leaky_relu(0.2)
    h = jnp.dot(h.astype(jnp.bfloat16), w3_ref[...],
                preferred_element_type=jnp.float32)
    h = _leaky_relu(h + b3_ref[...])

    # Layer 4: (tm, 1024) @ (1024, 896) + (1, 896) -> tanh
    h = jnp.dot(h.astype(jnp.bfloat16), w4_ref[...],
                preferred_element_type=jnp.float32)
    out_ref[...] = jnp.tanh(h + b4_ref[...])


def generator_forward(x, params, *, tm=256):
    """x: (B, input_size) f32; params: list of (W, b), W=(in, out) f32, b=(1, out) f32.

    Returns (B, output_size) f32. Weights are cast to bf16 for the kernel.
    """
    (w1, b1), (w2, b2), (w3, b3), (w4, b4) = params
    B, in_size = x.shape
    h1, h2, h3 = w1.shape[1], w2.shape[1], w3.shape[1]
    out_size = w4.shape[1]

    # Lane-dense feature padding (zero-fill; exact no-op mathematically).
    in_p = _round_up(in_size, 128)     # 100 -> 128
    out_p = _round_up(out_size, 128)   # 784 -> 896

    w1p = jnp.zeros((in_p, h1), jnp.bfloat16).at[:in_size, :].set(
        w1.astype(jnp.bfloat16))
    w2b = w2.astype(jnp.bfloat16)
    w3b = w3.astype(jnp.bfloat16)
    w4p = jnp.zeros((h3, out_p), jnp.bfloat16).at[:, :out_size].set(
        w4.astype(jnp.bfloat16))
    b4p = jnp.zeros((1, out_p), jnp.float32).at[:, :out_size].set(b4)

    # Batch tiling: small batches stay on one 8-aligned tile, larger batches
    # get tm-row tiles amortizing the resident weights across grid steps.
    tm_eff = min(tm, _round_up(B, 8))
    Bp = _round_up(B, tm_eff)
    xp = jnp.zeros((Bp, in_p), jnp.bfloat16).at[:B, :in_size].set(
        x.astype(jnp.bfloat16))

    row_map = lambda i: (i, 0)   # batch-tiled arrays
    rep_map = lambda i: (0, 0)   # weights/biases: resident across grid steps

    out_padded = pl.pallas_call(
        generator_kernel,
        out_shape=jax.ShapeDtypeStruct((Bp, out_p), jnp.float32),
        grid=(Bp // tm_eff,),
        in_specs=[
            pl.BlockSpec((tm_eff, in_p), row_map),   # x
            pl.BlockSpec((in_p, h1), rep_map),       # W1
            pl.BlockSpec((1, h1), rep_map),          # b1
            pl.BlockSpec((h1, h2), rep_map),         # W2
            pl.BlockSpec((1, h2), rep_map),          # b2
            pl.BlockSpec((h2, h3), rep_map),         # W3
            pl.BlockSpec((1, h3), rep_map),          # b3
            pl.BlockSpec((h3, out_p), rep_map),      # W4
            pl.BlockSpec((1, out_p), rep_map),       # b4
        ],
        out_specs=pl.BlockSpec((tm_eff, out_p), row_map),
        compiler_params=pltpu.CompilerParams(
            dimension_semantics=("parallel",),       # megacore on v7x
            vmem_limit_bytes=32 << 20,               # valid on v5e/v6e/v7x
        ),
    )(xp, w1p, b1, w2b, b2, w3b, b3, w4p, b4p)

    return out_padded[:B, :out_size]


def init_params(key, input_size=100, output_size=784):
    """Deterministic synthetic parameters matching nn.Linear init shapes."""
    dims = [input_size, 256, 512, 1024, output_size]
    params = []
    for i in range(4):
        key, kw, kb = jax.random.split(key, 3)
        fan_in = dims[i]
        scale = 1.0 / jnp.sqrt(jnp.float32(fan_in))
        # Stored as (in, out) = transpose of PyTorch's (out, in) weight.
        w = jax.random.uniform(kw, (dims[i], dims[i + 1]), jnp.float32,
                               minval=-scale, maxval=scale)
        b = jax.random.uniform(kb, (1, dims[i + 1]), jnp.float32,
                               minval=-scale, maxval=scale)
        params.append((w, b))
    return params


def reference_forward(x, params):
    """Plain-JAX fp32 reference of the PyTorch forward pass."""
    (w1, b1), (w2, b2), (w3, b3), (w4, b4) = params
    h = jax.nn.leaky_relu(x @ w1 + b1, 0.2)
    h = jax.nn.leaky_relu(h @ w2 + b2, 0.2)
    h = jax.nn.leaky_relu(h @ w3 + b3, 0.2)
    return jnp.tanh(h @ w4 + b4)


if __name__ == "__main__":
    key = jax.random.PRNGKey(0)
    key, kx = jax.random.split(key)

    batch = 8
    input_size = 100
    output_size = 784

    x = jax.random.normal(kx, (batch, input_size), jnp.float32)
    params = init_params(key, input_size, output_size)

    out = generator_forward(x, params)
    out = jax.block_until_ready(out)

    ref = reference_forward(x, params)
    assert out.shape == (batch, output_size), out.shape
    # Tolerance loosened vs the fp32 version: weights/activations are bf16
    # in the kernel (fp32 accumulation), output is tanh-bounded in [-1, 1].
    assert jnp.allclose(out, ref, atol=5e-2, rtol=5e-2), (
        "mismatch vs reference; max abs err = "
        f"{float(jnp.max(jnp.abs(out - ref)))}")

    print("KERNEL_OK")
</pallas_src>

<mosaic_0001>
module attributes {stable_mosaic.version = 11 : i64} {
  func.func @generator_kernel(%arg0: i32, %arg1: memref<8x128xbf16, #tpu.memory_space<vmem>>, %arg2: memref<128x256xbf16, #tpu.memory_space<vmem>>, %arg3: memref<1x256xf32, #tpu.memory_space<vmem>>, %arg4: memref<256x512xbf16, #tpu.memory_space<vmem>>, %arg5: memref<1x512xf32, #tpu.memory_space<vmem>>, %arg6: memref<512x1024xbf16, #tpu.memory_space<vmem>>, %arg7: memref<1x1024xf32, #tpu.memory_space<vmem>>, %arg8: memref<1024x896xbf16, #tpu.memory_space<vmem>>, %arg9: memref<1x896xf32, #tpu.memory_space<vmem>>, %arg10: memref<8x896xf32, #tpu.memory_space<vmem>>) attributes {dimension_semantics = [#tpu.dimension_semantics<parallel>], iteration_bounds = array<i64: 1>, scalar_prefetch = 0 : i64, scratch_operands = 0 : i64, tpu.core_type = #tpu.core_type<tc>, window_params = [{transform_indices = @transform_0, window_bounds = array<i64: 8, 128>}, {pipeline_mode = #tpu.pipeline_mode<synchronous>, transform_indices = @transform_1, window_bounds = array<i64: 128, 256>}, {pipeline_mode = #tpu.pipeline_mode<synchronous>, transform_indices = @transform_2, window_bounds = array<i64: 1, 256>}, {pipeline_mode = #tpu.pipeline_mode<synchronous>, transform_indices = @transform_3, window_bounds = array<i64: 256, 512>}, {pipeline_mode = #tpu.pipeline_mode<synchronous>, transform_indices = @transform_4, window_bounds = array<i64: 1, 512>}, {pipeline_mode = #tpu.pipeline_mode<synchronous>, transform_indices = @transform_5, window_bounds = array<i64: 512, 1024>}, {pipeline_mode = #tpu.pipeline_mode<synchronous>, transform_indices = @transform_6, window_bounds = array<i64: 1, 1024>}, {pipeline_mode = #tpu.pipeline_mode<synchronous>, transform_indices = @transform_7, window_bounds = array<i64: 1024, 896>}, {pipeline_mode = #tpu.pipeline_mode<synchronous>, transform_indices = @transform_8, window_bounds = array<i64: 1, 896>}, {transform_indices = @transform_9, window_bounds = array<i64: 8, 896>}]} {
    %c0 = arith.constant 0 : index
    %c0_0 = arith.constant 0 : index
    %0 = vector.load %arg1[%c0, %c0_0] : memref<8x128xbf16, #tpu.memory_space<vmem>>, vector<8x128xbf16>
    %c0_1 = arith.constant 0 : index
    %c0_2 = arith.constant 0 : index
    %1 = vector.load %arg2[%c0_1, %c0_2] : memref<128x256xbf16, #tpu.memory_space<vmem>>, vector<128x256xbf16>
    %cst = arith.constant dense<0.000000e+00> : vector<8x256xf32>
    %2 = tpu.matmul %0, %1, %cst {dimension_numbers = #tpu.dot_dimension_numbers<[1], [0], [0], [1], [0, 0, 1, 1], [], []>} : vector<8x128xbf16>, vector<128x256xbf16>, vector<8x256xf32> -> vector<8x256xf32>
    %c0_3 = arith.constant 0 : index
    %c0_4 = arith.constant 0 : index
    %3 = vector.load %arg3[%c0_3, %c0_4] : memref<1x256xf32, #tpu.memory_space<vmem>>, vector<1x256xf32>
    %4 = vector.broadcast %3 : vector<1x256xf32> to vector<8x256xf32>
    %5 = arith.addf %2, %4 : vector<8x256xf32>
    %cst_5 = arith.constant 2.000000e-01 : f32
    %6 = vector.broadcast %cst_5 : f32 to vector<8x256xf32>
    %7 = arith.mulf %6, %5 : vector<8x256xf32>
    %8 = arith.maximumf %5, %7 : vector<8x256xf32>
    %9 = arith.truncf %8 : vector<8x256xf32> to vector<8x256xbf16>
    %c0_6 = arith.constant 0 : index
    %c0_7 = arith.constant 0 : index
    %10 = vector.load %arg4[%c0_6, %c0_7] : memref<256x512xbf16, #tpu.memory_space<vmem>>, vector<256x512xbf16>
    %cst_8 = arith.constant dense<0.000000e+00> : vector<8x512xf32>
    %11 = tpu.matmul %9, %10, %cst_8 {dimension_numbers = #tpu.dot_dimension_numbers<[1], [0], [0], [1], [0, 0, 1, 1], [], []>} : vector<8x256xbf16>, vector<256x512xbf16>, vector<8x512xf32> -> vector<8x512xf32>
    %c0_9 = arith.constant 0 : index
    %c0_10 = arith.constant 0 : index
    %12 = vector.load %arg5[%c0_9, %c0_10] : memref<1x512xf32, #tpu.memory_space<vmem>>, vector<1x512xf32>
    %13 = vector.broadcast %12 : vector<1x512xf32> to vector<8x512xf32>
    %14 = arith.addf %11, %13 : vector<8x512xf32>
    %cst_11 = arith.constant 2.000000e-01 : f32
    %15 = vector.broadcast %cst_11 : f32 to vector<8x512xf32>
    %16 = arith.mulf %15, %14 : vector<8x512xf32>
    %17 = arith.maximumf %14, %16 : vector<8x512xf32>
    %18 = arith.truncf %17 : vector<8x512xf32> to vector<8x512xbf16>
    %c0_12 = arith.constant 0 : index
    %c0_13 = arith.constant 0 : index
    %19 = vector.load %arg6[%c0_12, %c0_13] : memref<512x1024xbf16, #tpu.memory_space<vmem>>, vector<512x1024xbf16>
    %cst_14 = arith.constant dense<0.000000e+00> : vector<8x1024xf32>
    %20 = tpu.matmul %18, %19, %cst_14 {dimension_numbers = #tpu.dot_dimension_numbers<[1], [0], [0], [1], [0, 0, 1, 1], [], []>} : vector<8x512xbf16>, vector<512x1024xbf16>, vector<8x1024xf32> -> vector<8x1024xf32>
    %c0_15 = arith.constant 0 : index
    %c0_16 = arith.constant 0 : index
    %21 = vector.load %arg7[%c0_15, %c0_16] : memref<1x1024xf32, #tpu.memory_space<vmem>>, vector<1x1024xf32>
    %22 = vector.broadcast %21 : vector<1x1024xf32> to vector<8x1024xf32>
    %23 = arith.addf %20, %22 : vector<8x1024xf32>
    %cst_17 = arith.constant 2.000000e-01 : f32
    %24 = vector.broadcast %cst_17 : f32 to vector<8x1024xf32>
    %25 = arith.mulf %24, %23 : vector<8x1024xf32>
    %26 = arith.maximumf %23, %25 : vector<8x1024xf32>
    %27 = arith.truncf %26 : vector<8x1024xf32> to vector<8x1024xbf16>
    %c0_18 = arith.constant 0 : index
    %c0_19 = arith.constant 0 : index
    %28 = vector.load %arg8[%c0_18, %c0_19] : memref<1024x896xbf16, #tpu.memory_space<vmem>>, vector<1024x896xbf16>
    %cst_20 = arith.constant dense<0.000000e+00> : vector<8x896xf32>
    %29 = tpu.matmul %27, %28, %cst_20 {dimension_numbers = #tpu.dot_dimension_numbers<[1], [0], [0], [1], [0, 0, 1, 1], [], []>} : vector<8x1024xbf16>, vector<1024x896xbf16>, vector<8x896xf32> -> vector<8x896xf32>
    %c0_21 = arith.constant 0 : index
    %c0_22 = arith.constant 0 : index
    %30 = vector.load %arg9[%c0_21, %c0_22] : memref<1x896xf32, #tpu.memory_space<vmem>>, vector<1x896xf32>
    %31 = vector.broadcast %30 : vector<1x896xf32> to vector<8x896xf32>
    %32 = arith.addf %29, %31 : vector<8x896xf32>
    %33 = math.tanh %32 : vector<8x896xf32>
    %c0_23 = arith.constant 0 : index
    %c0_24 = arith.constant 0 : index
    %34 = vector.load %arg10[%c0_23, %c0_24] : memref<8x896xf32, #tpu.memory_space<vmem>>, vector<8x896xf32>
    tpu.vector_store %arg10[%c0_23, %c0_24], %33 {strides = array<i32>} : memref<8x896xf32, #tpu.memory_space<vmem>>, vector<8x896xf32>,
    return
  }
  func.func @transform_0(%arg0: i32) -> (i32, i32) {
    %c0_i32 = arith.constant 0 : i32
    %c0_i32_0 = arith.constant 0 : i32
    return %arg0, %c0_i32 : i32, i32
  }
  func.func @transform_1(%arg0: i32) -> (i32, i32) {
    %c0_i32 = arith.constant 0 : i32
    %c0_i32_0 = arith.constant 0 : i32
    %c0_i32_1 = arith.constant 0 : i32
    return %c0_i32, %c0_i32_0 : i32, i32
  }
  func.func @transform_2(%arg0: i32) -> (i32, i32) {
    %c0_i32 = arith.constant 0 : i32
    %c0_i32_0 = arith.constant 0 : i32
    %c0_i32_1 = arith.constant 0 : i32
    return %c0_i32, %c0_i32_0 : i32, i32
  }
  func.func @transform_3(%arg0: i32) -> (i32, i32) {
    %c0_i32 = arith.constant 0 : i32
    %c0_i32_0 = arith.constant 0 : i32
    %c0_i32_1 = arith.constant 0 : i32
    return %c0_i32, %c0_i32_0 : i32, i32
  }
  func.func @transform_4(%arg0: i32) -> (i32, i32) {
    %c0_i32 = arith.constant 0 : i32
    %c0_i32_0 = arith.constant 0 : i32
    %c0_i32_1 = arith.constant 0 : i32
    return %c0_i32, %c0_i32_0 : i32, i32
  }
  func.func @transform_5(%arg0: i32) -> (i32, i32) {
    %c0_i32 = arith.constant 0 : i32
    %c0_i32_0 = arith.constant 0 : i32
    %c0_i32_1 = arith.constant 0 : i32
    return %c0_i32, %c0_i32_0 : i32, i32
  }
  func.func @transform_6(%arg0: i32) -> (i32, i32) {
    %c0_i32 = arith.constant 0 : i32
    %c0_i32_0 = arith.constant 0 : i32
    %c0_i32_1 = arith.constant 0 : i32
    return %c0_i32, %c0_i32_0 : i32, i32
  }
  func.func @transform_7(%arg0: i32) -> (i32, i32) {
    %c0_i32 = arith.constant 0 : i32
    %c0_i32_0 = arith.constant 0 : i32
    %c0_i32_1 = arith.constant 0 : i32
    return %c0_i32, %c0_i32_0 : i32, i32
  }
  func.func @transform_8(%arg0: i32) -> (i32, i32) {
    %c0_i32 = arith.constant 0 : i32
    %c0_i32_0 = arith.constant 0 : i32
    %c0_i32_1 = arith.constant 0 : i32
    return %c0_i32, %c0_i32_0 : i32, i32
  }
  func.func @transform_9(%arg0: i32) -> (i32, i32) {
    %c0_i32 = arith.constant 0 : i32
    %c0_i32_0 = arith.constant 0 : i32
    return %arg0, %c0_i32 : i32, i32
  }
}

</mosaic_0001>

<bundles_post_ra>
// kernel: tpu_custom_call.1
= control target key start
LH: loop header
LB: loop body
LE: loop exit
PB: predicated region body
PF: predicated region fallthrough
CT: control target
= control target key end

     0   :  { %14 = vsyncpa [#allocation3], 0  ;;  %s8595_s0 = inlined_call_operand.hbm [shape: bf16[8,128], index: 0, kind: input, shape index: {}]   ;;  %s8596_s1 = inlined_call_operand.hbm [shape: bf16[128,256], index: 1, kind: input, shape index: {}]   ;;  %s8597_s2 = inlined_call_operand.hbm [shape: f32[1,256], index: 2, kind: input, shape index: {}]   ;;  %s8598_s3 = inlined_call_operand.hbm [shape: bf16[256,512], index: 3, kind: input, shape index: {}]   ;;  %s8599_s4 = inlined_call_operand.hbm [shape: f32[1,512], index: 4, kind: input, shape index: {}]   ;;  %s8600_s5 = inlined_call_operand.hbm [shape: bf16[512,1024], index: 5, kind: input, shape index: {}]   ;;  %s8601_s6 = inlined_call_operand.hbm [shape: f32[1,1024], index: 6, kind: input, shape index: {}]   ;;  %s8602_s7 = inlined_call_operand.hbm [shape: bf16[1024,896], index: 7, kind: input, shape index: {}]   ;;  %s8603_s8 = inlined_call_operand.hbm [shape: f32[1,896], index: 8, kind: input, shape index: {}]   ;;  %s8604_s9 = inlined_call_operand.hbm [shape: f32[8,896], index: 9, kind: output, shape index: {}]  }
   0x1   :  { %15 = vsyncpa [#allocation6], 0 }
   0x2   :  { %16 = vsyncpa [#allocation9], 0 }
   0x3   :  { %17 = vsyncpa [#allocation12], 0 }
   0x4   :  { %18 = vsyncpa [#allocation15], 0 }
   0x5   :  { %19 = vsyncpa [#allocation4], 0  ;;  %s8233_s30 = smov [#allocation5]   ;;  %s8001_s13 = scalar_lea.hbm %s8596_s1, 2048 }
   0x6   :  { %s35_s10 = sshll.u32 %s8233_s30, 4  ;;  %p8002_p0 = scmp.ne.s32.totalorder %s8596_s1, %s8001_s13  ;;  %s36_s10 = int_to_ptr.vmem [resolvable:$true] %s35_s10 }
   0x7   :  { %p8005_p1 = scmp.lt.u32.totalorder %s8001_s13, %s8596_s1 }
   0x9   :  { %p8007_p2 = pnand %p8005_p1, %p8002_p0 }
   0xb   :  { %8010 = shalt.err (!%p8007_p2)
}
   0xc   :  { %s8011_s18 = scalar_lea.vmem %s36_s10, 2048  ;;  %p8016_p4 = scmp.lt.s32.totalorder %s36_s10, %s36_s10 }
   0xd   :  { %p8012_p3 = scmp.ne.s32.totalorder %s36_s10, %s8011_s18  ;;  %p8017_p5 = scmp.lt.s32.totalorder %s8011_s18, %s8011_s18 }
   0xf   :  { %p8018_p6 = por %p8017_p5, %p8016_p4 }
  0x11   :  { %p8019_p7 = pnand %p8018_p6, %p8012_p3 }
  0x13   :  { %8022 = shalt.err (!%p8019_p7)
}
  0x14   :  { %s8234_s19 = smov 128   ;;  %s8235_s20 = smov 8  }
  0x15   :  { %41 = dma.hbm_to_vmem [thread:$0]  %s8596_s1, 2048, %s36_s10, [#allocation6], %s8234_s19, %s8234_s19, %s8235_s20  }
  0x16   :  { %s8236_s23 = smov [#allocation8]   ;;  %s8023_s27 = scalar_lea.hbm %s8598_s3, 8192 }
  0x17   :  { %s57_s24 = sshll.u32 %s8236_s23, 4  ;;  %p8024_p8 = scmp.ne.s32.totalorder %s8598_s3, %s8023_s27  ;;  %s58_s24 = int_to_ptr.vmem [resolvable:$true] %s57_s24 }
  0x18   :  { %p8027_p9 = scmp.lt.u32.totalorder %s8023_s27, %s8598_s3 }
  0x1a   :  { %p8029_p10 = pnand %p8027_p9, %p8024_p8 }
  0x1c   :  { %8032 = shalt.err (!%p8029_p10)
}
  0x1d   :  { %s8033_s12 = scalar_lea.vmem %s58_s24, 8192  ;;  %p8038_p12 = scmp.lt.s32.totalorder %s58_s24, %s58_s24 }
  0x1e   :  { %p8034_p11 = scmp.ne.s32.totalorder %s58_s24, %s8033_s12  ;;  %p8039_p13 = scmp.lt.s32.totalorder %s8033_s12, %s8033_s12 }
  0x20   :  { %p8040_p0 = por %p8039_p13, %p8038_p12 }
  0x22   :  { %p8041_p1 = pnand %p8040_p0, %p8034_p11 }
  0x24   :  { %8044 = shalt.err (!%p8041_p1)
}
  0x25   :  { %s8237_s1 = smov 256   ;;  %s8238_s10 = smov 16  }
  0x26   :  { %63 = dma.hbm_to_vmem [thread:$0]  %s8598_s3, 8192, %s58_s24, [#allocation9], %s8237_s1, %s8237_s1, %s8238_s10  }
  0x27   :  { %s8239_s15 = smov [#allocation11]   ;;  %s8045_s19 = scalar_lea.hbm %s8600_s5, 32768 }
  0x28   :  { %s79_s16 = sshll.u32 %s8239_s15, 4  ;;  %p8046_p2 = scmp.ne.s32.totalorder %s8600_s5, %s8045_s19  ;;  %s80_s16 = int_to_ptr.vmem [resolvable:$true] %s79_s16 }
  0x29   :  { %p8049_p3 = scmp.lt.u32.totalorder %s8045_s19, %s8600_s5 }
  0x2b   :  { %p8051_p4 = pnand %p8049_p3, %p8046_p2 }
  0x2d   :  { %8054 = shalt.err (!%p8051_p4)
}
  0x2e   :  { %s8055_s25 = scalar_lea.vmem %s80_s16, 32768  ;;  %p8060_p6 = scmp.lt.s32.totalorder %s80_s16, %s80_s16 }
  0x2f   :  { %p8056_p5 = scmp.ne.s32.totalorder %s80_s16, %s8055_s25  ;;  %p8061_p7 = scmp.lt.s32.totalorder %s8055_s25, %s8055_s25 }
  0x31   :  { %p8062_p8 = por %p8061_p7, %p8060_p6 }
  0x33   :  { %p8063_p9 = pnand %p8062_p8, %p8056_p5 }
  0x35   :  { %8066 = shalt.err (!%p8063_p9)
}
  0x36   :  { %s8240_s3 = smov 512   ;;  %s8241_s24 = smov 32  }
  0x37   :  { %85 = dma.hbm_to_vmem [thread:$0]  %s8600_s5, 32768, %s80_s16, [#allocation12], %s8240_s3, %s8240_s3, %s8241_s24  }
  0x38   :  { %s8242_s28 = smov [#allocation14]   ;;  %s8067_s12 = scalar_lea.hbm %s8602_s7, 57344 }
  0x39   :  { %s101_s29 = sshll.u32 %s8242_s28, 4  ;;  %p8068_p10 = scmp.ne.s32.totalorder %s8602_s7, %s8067_s12  ;;  %s102_s29 = int_to_ptr.vmem [resolvable:$true] %s101_s29 }
  0x3a   :  { %p8071_p11 = scmp.lt.u32.totalorder %s8067_s12, %s8602_s7 }
  0x3c   :  { %p8073_p12 = pnand %p8071_p11, %p8068_p10 }
  0x3e   :  { %8076 = shalt.err (!%p8073_p12)
}
  0x3f   :  { %s8077_s15 = scalar_lea.vmem %s102_s29, 57344  ;;  %p8082_p0 = scmp.lt.s32.totalorder %s102_s29, %s102_s29 }
  0x40   :  { %p8078_p13 = scmp.ne.s32.totalorder %s102_s29, %s8077_s15  ;;  %p8083_p1 = scmp.lt.s32.totalorder %s8077_s15, %s8077_s15 }
  0x42   :  { %p8084_p2 = por %p8083_p1, %p8082_p0 }
  0x44   :  { %p8085_p3 = pnand %p8084_p2, %p8078_p13 }
  0x46   :  { %8088 = shalt.err (!%p8085_p3)
}
  0x47   :  { %s8243_s5 = smov 448   ;;  %s8244_s16 = smov 28  }
  0x48   :  { %107 = dma.hbm_to_vmem [thread:$0]  %s8602_s7, 57344, %s102_s29, [#allocation15], %s8243_s5, %s8243_s5, %s8244_s16  }
  0x49   :  { %s8245_s19 = smov [#allocation2]   ;;  %s8246_s21 = smov [#allocation7]  }
  0x4a   :  { %s26_s20 = sshll.u32 %s8245_s19, 4  ;;  %s48_s22 = sshll.u32 %s8246_s21, 4  ;;  %s27_s20 = int_to_ptr.vmem [resolvable:$true] %s26_s20  ;;  %s49_s22 = int_to_ptr.vmem [resolvable:$true] %s48_s22 }
  0x4b   :  { %s8089_s3 = scalar_lea.hbm %s8595_s0, 64 }
  0x4c   :  { %p8090_p4 = scmp.ne.s32.totalorder %s8595_s0, %s8089_s3  ;;  %p8093_p5 = scmp.lt.u32.totalorder %s8089_s3, %s8595_s0 }
  0x4e   :  { %p8095_p6 = pnand %p8093_p5, %p8090_p4 }
  0x50   :  { %8098 = shalt.err (!%p8095_p6)
}
  0x51   :  { %s8099_s7 = scalar_lea.vmem %s27_s20, 64  ;;  %p8104_p8 = scmp.lt.s32.totalorder %s27_s20, %s27_s20 }
  0x52   :  { %p8100_p7 = scmp.ne.s32.totalorder %s27_s20, %s8099_s7  ;;  %p8105_p9 = scmp.lt.s32.totalorder %s8099_s7, %s8099_s7 }
  0x54   :  { %p8106_p10 = por %p8105_p9, %p8104_p8 }
  0x56   :  { %p8107_p11 = pnand %p8106_p10, %p8100_p7 }
  0x58   :  { %8110 = shalt.err (!%p8107_p11)
}
  0x59   :  { %29 = dma.hbm_to_vmem [thread:$0]  %s8595_s0, 64, %s27_s20, [#allocation3]  }
  0x5a   :  { %s8111_s1 = scalar_lea.hbm %s8597_s2, 32 }
  0x5b   :  { %p8112_p12 = scmp.ne.s32.totalorder %s8597_s2, %s8111_s1  ;;  %p8115_p13 = scmp.lt.u32.totalorder %s8111_s1, %s8597_s2 }
  0x5d   :  { %p8117_p0 = pnand %p8115_p13, %p8112_p12 }
  0x5f   :  { %8120 = shalt.err (!%p8117_p0)
}
  0x60   :  { %s8121_s5 = scalar_lea.vmem %s49_s22, 32  ;;  %p8126_p2 = scmp.lt.s32.totalorder %s49_s22, %s49_s22 }
  0x61   :  { %p8122_p1 = scmp.ne.s32.totalorder %s49_s22, %s8121_s5  ;;  %p8127_p3 = scmp.lt.s32.totalorder %s8121_s5, %s8121_s5 }
  0x63   :  { %p8128_p4 = por %p8127_p3, %p8126_p2 }
  0x65   :  { %p8129_p5 = pnand %p8128_p4, %p8122_p1 }
  0x67   :  { %8132 = shalt.err (!%p8129_p5)
}
  0x68   :  { %51 = dma.hbm_to_vmem [thread:$0]  %s8597_s2, 32, %s49_s22, [#allocation6]  }
  0x69   :  { %s8247_s17 = smov [#allocation10]   ;;  %s8248_s19 = smov [#allocation13]  }
  0x6a   :  { %s70_s18 = sshll.u32 %s8247_s17, 4  ;;  %s92_s20 = sshll.u32 %s8248_s19, 4  ;;  %s71_s18 = int_to_ptr.vmem [resolvable:$true] %s70_s18  ;;  %s93_s20 = int_to_ptr.vmem [resolvable:$true] %s92_s20 }
  0x6b   :  { %s8133_s25 = scalar_lea.hbm %s8599_s4, 64 }
  0x6c   :  { %p8134_p6 = scmp.ne.s32.totalorder %s8599_s4, %s8133_s25  ;;  %p8137_p7 = scmp.lt.u32.totalorder %s8133_s25, %s8599_s4 }
  0x6e   :  { %p8139_p8 = pnand %p8137_p7, %p8134_p6 }
  0x70   :  { %8142 = shalt.err (!%p8139_p8)
}
  0x71   :  { %s8143_s2 = scalar_lea.vmem %s71_s18, 64  ;;  %p8148_p10 = scmp.lt.s32.totalorder %s71_s18, %s71_s18 }
  0x72   :  { %p8144_p9 = scmp.ne.s32.totalorder %s71_s18, %s8143_s2  ;;  %p8149_p11 = scmp.lt.s32.totalorder %s8143_s2, %s8143_s2 }
  0x74   :  { %p8150_p12 = por %p8149_p11, %p8148_p10 }
  0x76   :  { %p8151_p13 = pnand %p8150_p12, %p8144_p9 }
  0x78   :  { %8154 = shalt.err (!%p8151_p13)
}
  0x79   :  { %73 = dma.hbm_to_vmem [thread:$0]  %s8599_s4, 64, %s71_s18, [#allocation9]  }
  0x7a   :  { %s8155_s30 = scalar_lea.hbm %s8601_s6, 128 }
  0x7b   :  { %p8156_p0 = scmp.ne.s32.totalorder %s8601_s6, %s8155_s30  ;;  %p8159_p1 = scmp.lt.u32.totalorder %s8155_s30, %s8601_s6 }
  0x7d   :  { %p8161_p2 = pnand %p8159_p1, %p8156_p0 }
  0x7f   :  { %8164 = shalt.err (!%p8161_p2)
}
  0x80   :  { %s8165_s13 = scalar_lea.vmem %s93_s20, 128  ;;  %p8170_p4 = scmp.lt.s32.totalorder %s93_s20, %s93_s20 }
  0x81   :  { %p8166_p3 = scmp.ne.s32.totalorder %s93_s20, %s8165_s13  ;;  %p8171_p5 = scmp.lt.s32.totalorder %s8165_s13, %s8165_s13 }
  0x83   :  { %p8172_p6 = por %p8171_p5, %p8170_p4 }
  0x85   :  { %p8173_p7 = pnand %p8172_p6, %p8166_p3 }
  0x87   :  { %8176 = shalt.err (!%p8173_p7)
}
  0x88   :  { %95 = dma.hbm_to_vmem [thread:$0]  %s8601_s6, 128, %s93_s20, [#allocation12]  }
  0x89   :  { %s8249_s15 = smov [#allocation16]   ;;  %s8177_s17 = scalar_lea.hbm %s8603_s8, 112 }
  0x8a   :  { %s114_s5 = sshll.u32 %s8249_s15, 4  ;;  %p8178_p8 = scmp.ne.s32.totalorder %s8603_s8, %s8177_s17  ;;  %s115_s5 = int_to_ptr.vmem [resolvable:$true] %s114_s5 }
  0x8b   :  { %p8181_p9 = scmp.lt.u32.totalorder %s8177_s17, %s8603_s8 }
  0x8d   :  { %p8183_p10 = pnand %p8181_p9, %p8178_p8 }
  0x8f   :  { %8186 = shalt.err (!%p8183_p10)
}
  0x90   :  { %s8187_s25 = scalar_lea.vmem %s115_s5, 112  ;;  %s8191_s6 = scalar_lea.vmem %s115_s5, 128 }
  0x91   :  { %p8188_p11 = scmp.ne.s32.totalorder %s115_s5, %s8187_s25  ;;  %p8192_p12 = scmp.lt.s32.totalorder %s115_s5, %s115_s5 }
  0x92   :  { %p8193_p13 = scmp.lt.s32.totalorder %s8191_s6, %s8187_s25 }
  0x94   :  { %p8194_p0 = por %p8193_p13, %p8192_p12 }
  0x96   :  { %p8195_p1 = pnand %p8194_p0, %p8188_p11 }
  0x98   :  { %8198 = shalt.err (!%p8195_p1)
}
  0x99   :  { %117 = dma.hbm_to_vmem [thread:$0]  %s8603_s8, 112, %s115_s5, [#allocation15]  }
  0x9a   :  { %8221 = dma.done.wait [#allocation3], 64  }
  0x9b   :  { %8222 = vsyncadd [#allocation3], 4294967232 }
  0x9c   :  { %8223 = dma.done.wait [#allocation6], 2080  }
  0x9d   :  { %8224 = vsyncadd [#allocation6], 4294965216 }
  0x9e   :  { %8225 = dma.done.wait [#allocation9], 8256  }
  0x9f   :  { %8226 = vsyncadd [#allocation9], 4294959040 }
  0xa0   :  { %8227 = dma.done.wait [#allocation12], 32896  }
  0xa1   :  { %8228 = vsyncadd [#allocation12], 4294934400 }
  0xa2   :  { %8229 = dma.done.wait [#allocation15], 57456  }
  0xa3   :  { %8230 = vsyncadd [#allocation15], 4294909840  ;;  %v8250_v0 = vmov 0   ;;  %v7227_v1 = vld [vmem:[#allocation5 + $0x4] ss:$8 sps:$4 sm:$0xff]   ;;  %s8251_s8 = smov [#allocation17]  }
  0xa4   :  { %287 = vmatprep.mubr.bf16.mxu0 %v8250_v0  ;;  %v7229_v2 = vld [vmem:[#allocation5] ss:$8 sps:$4 sm:$0xff]   ;;  %255 = vmatprep.subr.bf16.mxu0 %v7227_v1  ;;  %v7230_v3 = vld [vmem:[#allocation5 + $0x14] ss:$8 sps:$4 sm:$0xff]   ;;  %v7232_v4 = vld [vmem:[#allocation5 + $0x10] ss:$8 sps:$4 sm:$0xff]  }
  0xa5   :  { %256 = vmatpush1.bf16.msra.mxu0 %v7229_v2  ;;  %v7233_v5 = vld [vmem:[#allocation5 + $0x24] ss:$8 sps:$4 sm:$0xff]   ;;  %v7235_v6 = vld [vmem:[#allocation5 + $0x20] ss:$8 sps:$4 sm:$0xff]   ;;  %v7236_v7 = vld [vmem:[#allocation5 + $0x34] ss:$8 sps:$4 sm:$0xff]  }
  0xa6   :  { %257 = vmatprep.subr.bf16.mxu0 %v7230_v3  ;;  %v7238_v8 = vld [vmem:[#allocation5 + $0x30] ss:$8 sps:$4 sm:$0xff]   ;;  %v7239_v9 = vld [vmem:[#allocation5 + $0x44] ss:$8 sps:$4 sm:$0xff]   ;;  %v7241_v10 = vld [vmem:[#allocation5 + $0x40] ss:$8 sps:$4 sm:$0xff]  }
  0xa7   :  { %v7242_v11 = vld [vmem:[#allocation5 + $0x54] ss:$8 sps:$4 sm:$0xff]   ;;  %v7244_v12 = vld [vmem:[#allocation5 + $0x50] ss:$8 sps:$4 sm:$0xff]   ;;  %v7245_v13 = vld [vmem:[#allocation5 + $0x64] ss:$8 sps:$4 sm:$0xff]  }
  0xa8   :  { %v7247_v14 = vld [vmem:[#allocation5 + $0x60] ss:$8 sps:$4 sm:$0xff]   ;;  %v7248_v15 = vld [vmem:[#allocation5 + $0x74] ss:$8 sps:$4 sm:$0xff]   ;;  %v7250_v16 = vld [vmem:[#allocation5 + $0x70] ss:$8 sps:$4 sm:$0xff]  }
  0xa9   :  { %258 = vmatpush1.bf16.msra.mxu0 %v7232_v4  ;;  %v7253_v17 = vld [vmem:[#allocation8 + $0x4] ss:$16 sps:$4 sm:$0xff]   ;;  %v146_v18 = vld [vmem:[#allocation2] sm:$0xf]  ;;  %v7251_v19 = vld [vmem:[#allocation8] ss:$16 sps:$4 sm:$0xff]  }
  0xaa   :  { %259 = vmatprep.subr.bf16.mxu0 %v7233_v5  ;;  %v7256_v20 = vld [vmem:[#allocation8 + $0x24] ss:$16 sps:$4 sm:$0xff]   ;;  %v7254_v21 = vld [vmem:[#allocation8 + $0x20] ss:$16 sps:$4 sm:$0xff]   ;;  %v7301_v50 = vld [vmem:[#allocation8 + $0xc] ss:$16 sps:$4 sm:$0xff]  }
  0xab   :  { %v7259_v22 = vld [vmem:[#allocation8 + $0x44] ss:$16 sps:$4 sm:$0xff]   ;;  %v7257_v23 = vld [vmem:[#allocation8 + $0x40] ss:$16 sps:$4 sm:$0xff]   ;;  %s6257_s24 = sshll.u32 %s8251_s8, 4  ;;  %s6258_s24 = int_to_ptr.vmem [resolvable:$true] %s6257_s24 }
  0xac   :  { %v7262_v24 = vld [vmem:[#allocation8 + $0x64] ss:$16 sps:$4 sm:$0xff]   ;;  %v7260_v25 = vld [vmem:[#allocation8 + $0x60] ss:$16 sps:$4 sm:$0xff]   ;;  %s8199_s26 = scalar_lea.vmem %s6258_s24, 896  ;;  %p8204_p3 = scmp.lt.s32.totalorder %s6258_s24, %s6258_s24 }
  0xad   :  { %260 = vmatpush1.bf16.msra.mxu0 %v7235_v6  ;;  %v7265_v26 = vld [vmem:[#allocation8 + $0x84] ss:$16 sps:$4 sm:$0xff]   ;;  %v7263_v27 = vld [vmem:[#allocation8 + $0x80] ss:$16 sps:$4 sm:$0xff]   ;;  %p8200_p2 = scmp.ne.s32.totalorder %s6258_s24, %s8199_s26  ;;  %p8205_p4 = scmp.lt.s32.totalorder %s8199_s26, %s8199_s26 }
  0xae   :  { %261 = vmatprep.subr.bf16.mxu0 %v7236_v7  ;;  %v7268_v28 = vld [vmem:[#allocation8 + $0xa4] ss:$16 sps:$4 sm:$0xff]   ;;  %v7266_v29 = vld [vmem:[#allocation8 + $0xa0] ss:$16 sps:$4 sm:$0xff]  }
  0xaf   :  { %v7271_v30 = vld [vmem:[#allocation8 + $0xc4] ss:$16 sps:$4 sm:$0xff]   ;;  %v7269_v31 = vld [vmem:[#allocation8 + $0xc0] ss:$16 sps:$4 sm:$0xff]   ;;  %p8206_p5 = por %p8205_p4, %p8204_p3 }
  0xb0   :  { %v7274_v32 = vld [vmem:[#allocation8 + $0xe4] ss:$16 sps:$4 sm:$0xff]   ;;  %v7272_v33 = vld [vmem:[#allocation8 + $0xe0] ss:$16 sps:$4 sm:$0xff]  }
  0xb1   :  { %262 = vmatpush1.bf16.msra.mxu0 %v7238_v8  ;;  %v7277_v34 = vld [vmem:[#allocation8 + $0x104] ss:$16 sps:$4 sm:$0xff]   ;;  %v7275_v35 = vld [vmem:[#allocation8 + $0x100] ss:$16 sps:$4 sm:$0xff]   ;;  %p8207_p6 = pnand %p8206_p5, %p8200_p2 }
  0xb2   :  { %263 = vmatprep.subr.bf16.mxu0 %v7239_v9  ;;  %v7280_v36 = vld [vmem:[#allocation8 + $0x124] ss:$16 sps:$4 sm:$0xff]   ;;  %v7278_v37 = vld [vmem:[#allocation8 + $0x120] ss:$16 sps:$4 sm:$0xff]  }
  0xb3   :  { %v7283_v38 = vld [vmem:[#allocation8 + $0x144] ss:$16 sps:$4 sm:$0xff]   ;;  %v7281_v39 = vld [vmem:[#allocation8 + $0x140] ss:$16 sps:$4 sm:$0xff]  }
  0xb4   :  { %v7286_v40 = vld [vmem:[#allocation8 + $0x164] ss:$16 sps:$4 sm:$0xff]   ;;  %v7284_v41 = vld [vmem:[#allocation8 + $0x160] ss:$16 sps:$4 sm:$0xff]  }
  0xb5   :  { %264 = vmatpush1.bf16.msra.mxu0 %v7241_v10  ;;  %v7289_v42 = vld [vmem:[#allocation8 + $0x184] ss:$16 sps:$4 sm:$0xff]   ;;  %v7287_v43 = vld [vmem:[#allocation8 + $0x180] ss:$16 sps:$4 sm:$0xff]  }
  0xb6   :  { %265 = vmatprep.subr.bf16.mxu0 %v7242_v11  ;;  %v7292_v44 = vld [vmem:[#allocation8 + $0x1a4] ss:$16 sps:$4 sm:$0xff]   ;;  %v7290_v45 = vld [vmem:[#allocation8 + $0x1a0] ss:$16 sps:$4 sm:$0xff]  }
  0xb7   :  { %v7295_v46 = vld [vmem:[#allocation8 + $0x1c4] ss:$16 sps:$4 sm:$0xff]   ;;  %v7293_v47 = vld [vmem:[#allocation8 + $0x1c0] ss:$16 sps:$4 sm:$0xff]  }
  0xb8   :  { %v7298_v48 = vld [vmem:[#allocation8 + $0x1e4] ss:$16 sps:$4 sm:$0xff]   ;;  %v7296_v49 = vld [vmem:[#allocation8 + $0x1e0] ss:$16 sps:$4 sm:$0xff]  }
  0xb9   :  { %266 = vmatpush1.bf16.msra.mxu0 %v7244_v12  ;;  %v802_v51 = vld [vmem:[#allocation11] sm:$0xff] }
  0xba   :  { %267 = vmatprep.subr.bf16.mxu0 %v7245_v13  ;;  %v806_v52 = vld [vmem:[#allocation11 + $0x20] sm:$0xff] }
  0xbb   :  { %v6351_v53 = vcombine.high %v802_v51, %v806_v52  ;;  %v6350_v54 = vcombine.low %v802_v51, %v806_v52  ;;  %v810_v55 = vld [vmem:[#allocation11 + $0x40] sm:$0xff] }
  0xbc   :  { %v814_v56 = vld [vmem:[#allocation11 + $0x60] sm:$0xff] }
  0xbd   :  { %268 = vmatpush1.bf16.msra.mxu0 %v7247_v14  ;;  %v6359_v57 = vcombine.high %v810_v55, %v814_v56  ;;  %2380 = vmatprep.subr.bf16.mxu1 %v6351_v53  ;;  %v6358_v58 = vcombine.low %v810_v55, %v814_v56  ;;  %v818_v59 = vld [vmem:[#allocation11 + $0x80] sm:$0xff] }
  0xbe   :  { %269 = vmatprep.subr.bf16.mxu0 %v7248_v15  ;;  %2381 = vmatpush1.bf16.msra.mxu1 %v6350_v54  ;;  %v822_v60 = vld [vmem:[#allocation11 + $0xa0] sm:$0xff] }
  0xbf   :  { %2382 = vmatprep.subr.bf16.mxu1 %v6359_v57  ;;  %v6367_v61 = vcombine.high %v818_v59, %v822_v60  ;;  %v6366_v62 = vcombine.low %v818_v59, %v822_v60  ;;  %v826_v63 = vld [vmem:[#allocation11 + $0xc0] sm:$0xff] }
  0xc0   :  { %v830_v0 = vld [vmem:[#allocation11 + $0xe0] sm:$0xff] }
  0xc1   :  { %270 = vmatpush1.bf16.msra.mxu0 %v7250_v16  ;;  %v6375_v1 = vcombine.high %v826_v63, %v830_v0  ;;  %v6374_v2 = vcombine.low %v826_v63, %v830_v0  ;;  %v834_v3 = vld [vmem:[#allocation11 + $0x100] sm:$0xff]  ;;  %v7304_v63 = vld [vmem:[#allocation8 + $0x2c] ss:$16 sps:$4 sm:$0xff]  }
  0xc2   :  { %708 = vmatprep.subr.bf16.mxu0 %v7253_v17  ;;  %2383 = vmatpush1.bf16.msra.mxu1 %v6358_v58  ;;  %v838_v4 = vld [vmem:[#allocation11 + $0x120] sm:$0xff] }
  0xc3   :  { %2384 = vmatprep.subr.bf16.mxu1 %v6367_v61  ;;  %v6383_v5 = vcombine.high %v834_v3, %v838_v4  ;;  %v6382_v6 = vcombine.low %v834_v3, %v838_v4  ;;  %v842_v7 = vld [vmem:[#allocation11 + $0x140] sm:$0xff]  ;;  %v7310_v3 = vld [vmem:[#allocation8 + $0x6c] ss:$16 sps:$4 sm:$0xff]  }
  0xc4   :  { %288 = vmatmul.mubr.bf16.vlgmr.msra.gmra.mrb[0].mxu0 %v146_v18  ;;  %v846_v8 = vld [vmem:[#allocation11 + $0x160] sm:$0xff] }
  0xc5   :  { %709 = vmatpush1.bf16.msra.mxu0 %v7251_v19  ;;  %v6391_v9 = vcombine.high %v842_v7, %v846_v8  ;;  %v6390_v10 = vcombine.low %v842_v7, %v846_v8  ;;  %v850_v11 = vld [vmem:[#allocation11 + $0x180] sm:$0xff]  ;;  %v7316_v7 = vld [vmem:[#allocation8 + $0xac] ss:$16 sps:$4 sm:$0xff]  }
  0xc6   :  { %710 = vmatprep.subr.bf16.mxu0 %v7256_v20  ;;  %2385 = vmatpush1.bf16.msra.mxu1 %v6366_v62  ;;  %v854_v12 = vld [vmem:[#allocation11 + $0x1a0] sm:$0xff] }
  0xc7   :  { %2386 = vmatprep.subr.bf16.mxu1 %v6375_v1  ;;  %v6399_v13 = vcombine.high %v850_v11, %v854_v12  ;;  %v6398_v14 = vcombine.low %v850_v11, %v854_v12  ;;  %v858_v15 = vld [vmem:[#allocation11 + $0x1c0] sm:$0xff]  ;;  %v7307_v1 = vld [vmem:[#allocation8 + $0x4c] ss:$16 sps:$4 sm:$0xff]  }
  0xc8   :  { %v862_v16 = vld [vmem:[#allocation11 + $0x1e0] sm:$0xff]  ;;  %v7322_v11 = vld [vmem:[#allocation8 + $0xec] ss:$16 sps:$4 sm:$0xff]  }
  0xc9   :  { %711 = vmatpush1.bf16.msra.mxu0 %v7254_v21  ;;  %v6407_v17 = vcombine.high %v858_v15, %v862_v16  ;;  %v6406_v18 = vcombine.low %v858_v15, %v862_v16  ;;  %v866_v19 = vld [vmem:[#allocation11 + $0x200] sm:$0xff]  ;;  %v7328_v15 = vld [vmem:[#allocation8 + $0x12c] ss:$16 sps:$4 sm:$0xff]  }
  0xca   :  { %712 = vmatprep.subr.bf16.mxu0 %v7259_v22  ;;  %2387 = vmatpush1.bf16.msra.mxu1 %v6374_v2  ;;  %v870_v20 = vld [vmem:[#allocation11 + $0x220] sm:$0xff] }
  0xcb   :  { %2388 = vmatprep.subr.bf16.mxu1 %v6383_v5  ;;  %v6415_v21 = vcombine.high %v866_v19, %v870_v20  ;;  %v6414_v22 = vcombine.low %v866_v19, %v870_v20  ;;  %v7299_v61 = vld [vmem:[#allocation8 + $0x8] ss:$16 sps:$4 sm:$0xff]   ;;  %v7313_v5 = vld [vmem:[#allocation8 + $0x8c] ss:$16 sps:$4 sm:$0xff]  }
  0xcc   :  { %v7302_v0 = vld [vmem:[#allocation8 + $0x28] ss:$16 sps:$4 sm:$0xff]   ;;  %v7334_v19 = vld [vmem:[#allocation8 + $0x16c] ss:$16 sps:$4 sm:$0xff]  }
  0xcd   :  { %713 = vmatpush1.bf16.msra.mxu0 %v7257_v23  ;;  %v874_v23 = vld [vmem:[#allocation11 + $0x240] sm:$0xff] }
  0xce   :  { %714 = vmatprep.subr.bf16.mxu0 %v7262_v24  ;;  %2389 = vmatpush1.bf16.msra.mxu1 %v6382_v6  ;;  %v878_v24 = vld [vmem:[#allocation11 + $0x260] sm:$0xff] }
  0xcf   :  { %2390 = vmatprep.subr.bf16.mxu1 %v6391_v9  ;;  %v7305_v2 = vld [vmem:[#allocation8 + $0x48] ss:$16 sps:$4 sm:$0xff]   ;;  %v7319_v9 = vld [vmem:[#allocation8 + $0xcc] ss:$16 sps:$4 sm:$0xff]  }
  0xd0   :  { %v7308_v4 = vld [vmem:[#allocation8 + $0x68] ss:$16 sps:$4 sm:$0xff]  }
  0xd1   :  { %715 = vmatpush1.bf16.msra.mxu0 %v7260_v25  ;;  %v6423_v25 = vcombine.high %v874_v23, %v878_v24  ;;  %v7311_v6 = vld [vmem:[#allocation8 + $0x88] ss:$16 sps:$4 sm:$0xff]  }
  0xd2   :  { %716 = vmatprep.subr.bf16.mxu0 %v7265_v26  ;;  %2391 = vmatpush1.bf16.msra.mxu1 %v6390_v10  ;;  %v6422_v26 = vcombine.low %v874_v23, %v878_v24  ;;  %v7314_v8 = vld [vmem:[#allocation8 + $0xa8] ss:$16 sps:$4 sm:$0xff]   ;;  %v7340_v23 = vld [vmem:[#allocation8 + $0x1ac] ss:$16 sps:$4 sm:$0xff]  }
  0xd3   :  { %2392 = vmatprep.subr.bf16.mxu1 %v6399_v13  ;;  %v7317_v10 = vld [vmem:[#allocation8 + $0xc8] ss:$16 sps:$4 sm:$0xff]   ;;  %v7325_v13 = vld [vmem:[#allocation8 + $0x10c] ss:$16 sps:$4 sm:$0xff]  }
  0xd4   :  { %v7320_v12 = vld [vmem:[#allocation8 + $0xe8] ss:$16 sps:$4 sm:$0xff]  }
  0xd5   :  { %717 = vmatpush1.bf16.msra.mxu0 %v7263_v27  ;;  %v882_v27 = vld [vmem:[#allocation11 + $0x280] sm:$0xff] }
  0xd6   :  { %718 = vmatprep.subr.bf16.mxu0 %v7268_v28  ;;  %2393 = vmatpush1.bf16.msra.mxu1 %v6398_v14  ;;  %v886_v28 = vld [vmem:[#allocation11 + $0x2a0] sm:$0xff] }
  0xd7   :  { %2394 = vmatprep.subr.bf16.mxu1 %v6407_v17  ;;  %v7323_v14 = vld [vmem:[#allocation8 + $0x108] ss:$16 sps:$4 sm:$0xff]   ;;  %v7331_v17 = vld [vmem:[#allocation8 + $0x14c] ss:$16 sps:$4 sm:$0xff]  }
  0xd8   :  { %v7326_v16 = vld [vmem:[#allocation8 + $0x128] ss:$16 sps:$4 sm:$0xff]  }
  0xd9   :  { %719 = vmatpush1.bf16.msra.mxu0 %v7266_v29  ;;  %v165_v29 = vlaneseq  ;;  %v7332_v20 = vld [vmem:[#allocation8 + $0x168] ss:$16 sps:$4 sm:$0xff]  }
  0xda   :  { %720 = vmatprep.subr.bf16.mxu0 %v7271_v30  ;;  %2395 = vmatpush1.bf16.msra.mxu1 %v6406_v18  ;;  %v6431_v30 = vcombine.high %v882_v27, %v886_v28  ;;  %v7329_v18 = vld [vmem:[#allocation8 + $0x148] ss:$16 sps:$4 sm:$0xff]  }
  0xdb   :  { %2396 = vmatprep.subr.bf16.mxu1 %v6415_v21  ;;  %v7337_v21 = vld [vmem:[#allocation8 + $0x18c] ss:$16 sps:$4 sm:$0xff]   ;;  %v7338_v24 = vld [vmem:[#allocation8 + $0x1a8] ss:$16 sps:$4 sm:$0xff]  }
  0xdd   :  { %721 = vmatpush1.bf16.msra.mxu0 %v7269_v31  ;;  %v6430_v31 = vcombine.low %v882_v27, %v886_v28  ;;  %v7346_v27 = vld [vmem:[#allocation8 + $0x1ec] ss:$16 sps:$4 sm:$0xff]  }
  0xde   :  { %722 = vmatprep.subr.bf16.mxu0 %v7274_v32  ;;  %2397 = vmatpush1.bf16.msra.mxu1 %v6414_v22  ;;  %v890_v32 = vld [vmem:[#allocation11 + $0x2c0] sm:$0xff]  ;;  %v803_v28 = vld [vmem:[#allocation11 + $0x8] sm:$0xff] }
  0xdf   :  { %2398 = vmatprep.subr.bf16.mxu1 %v6423_v25  ;;  %v7335_v22 = vld [vmem:[#allocation8 + $0x188] ss:$16 sps:$4 sm:$0xff]   ;;  %v7343_v25 = vld [vmem:[#allocation8 + $0x1cc] ss:$16 sps:$4 sm:$0xff]  }
  0xe1   :  { %723 = vmatpush1.bf16.msra.mxu0 %v7272_v33  ;;  %v894_v33 = vld [vmem:[#allocation11 + $0x2e0] sm:$0xff] }
  0xe2   :  { %724 = vmatprep.subr.bf16.mxu0 %v7277_v34  ;;  %2399 = vmatpush1.bf16.msra.mxu1 %v6422_v26  ;;  %v8410_v34 = vshrl.u32 %v165_v29, 7  ;;  %v7341_v26 = vld [vmem:[#allocation8 + $0x1c8] ss:$16 sps:$4 sm:$0xff]   ;;  %v807_v29 = vld [vmem:[#allocation11 + $0x28] sm:$0xff] }
  0xe3   :  { %2400 = vmatprep.subr.bf16.mxu1 %v6431_v30  ;;  %v7344_v30 = vld [vmem:[#allocation8 + $0x1e8] ss:$16 sps:$4 sm:$0xff]  }
  0xe5   :  { %725 = vmatpush1.bf16.msra.mxu0 %v7275_v35  ;;  %v6439_v35 = vcombine.high %v890_v32, %v894_v33 }
  0xe6   :  { %726 = vmatprep.subr.bf16.mxu0 %v7280_v36  ;;  %2401 = vmatpush1.bf16.msra.mxu1 %v6430_v31  ;;  %v6438_v36 = vcombine.low %v890_v32, %v894_v33  ;;  %v6353_v31 = vcombine.high %v803_v28, %v807_v29  ;;  %v811_v32 = vld [vmem:[#allocation11 + $0x48] sm:$0xff] }
  0xe7   :  { %2402 = vmatprep.subr.bf16.mxu1 %v6439_v35  ;;  %v815_v33 = vld [vmem:[#allocation11 + $0x68] sm:$0xff]  ;;  %v6352_v35 = vcombine.low %v803_v28, %v807_v29 }
  0xe9   :  { %727 = vmatpush1.bf16.msra.mxu0 %v7278_v37  ;;  %v898_v37 = vld [vmem:[#allocation11 + $0x300] sm:$0xff] }
  0xea   :  { %728 = vmatprep.subr.bf16.mxu0 %v7283_v38  ;;  %v902_v38 = vld [vmem:[#allocation11 + $0x320] sm:$0xff]  ;;  %2403 = vmatpush1.bf16.msra.mxu1 %v6438_v36  ;;  %v6361_v36 = vcombine.high %v811_v32, %v815_v33 }
  0xed   :  { %729 = vmatpush1.bf16.msra.mxu0 %v7281_v39  ;;  %v163_v39 = vld [vmem:[#allocation7] sm:$0x3] }
  0xee   :  { %730 = vmatprep.subr.bf16.mxu0 %v7286_v40  ;;  %v8413_v40 = vsub.s32 0, %v8410_v34 }
  0xf1   :  { %731 = vmatpush1.bf16.msra.mxu0 %v7284_v41  ;;  %v6447_v41 = vcombine.high %v898_v37, %v902_v38 }
  0xf2   :  { %732 = vmatprep.subr.bf16.mxu0 %v7289_v42  ;;  %v8416_v42 = vsub.s32 1, %v8410_v34 }
  0xf3   :  { %2404 = vmatprep.subr.bf16.mxu1 %v6447_v41 }
  0xf5   :  { %733 = vmatpush1.bf16.msra.mxu0 %v7287_v43  ;;  %v6446_v43 = vcombine.low %v898_v37, %v902_v38  ;;  %v819_v37 = vld [vmem:[#allocation11 + $0x88] sm:$0xff] }
  0xf6   :  { %734 = vmatprep.subr.bf16.mxu0 %v7292_v44  ;;  %v906_v44 = vld [vmem:[#allocation11 + $0x340] sm:$0xff]  ;;  %v823_v38 = vld [vmem:[#allocation11 + $0xa8] sm:$0xff] }
  0xf7   :  { %2405 = vmatpush1.bf16.msra.mxu1 %v6446_v43  ;;  %v6369_v41 = vcombine.high %v819_v37, %v823_v38  ;;  %v827_v43 = vld [vmem:[#allocation11 + $0xc8] sm:$0xff] }
  0xf9   :  { %735 = vmatpush1.bf16.msra.mxu0 %v7290_v45  ;;  %v910_v45 = vld [vmem:[#allocation11 + $0x360] sm:$0xff] }
  0xfa   :  { %736 = vmatprep.subr.bf16.mxu0 %v7295_v46  ;;  %v168_v46 = vrot.slane %v163_v39, %v8413_v40 }
  0xfd   :  { %737 = vmatpush1.bf16.msra.mxu0 %v7293_v47  ;;  %v6455_v47 = vcombine.high %v906_v44, %v910_v45 }
  0xfe   :  { %738 = vmatprep.subr.bf16.mxu0 %v7298_v48  ;;  %v172_v48 = vrot.slane %v163_v39, %v8416_v42  ;;  %v6360_v39 = vcombine.low %v811_v32, %v815_v33 }
  0xff   :  { %2406 = vmatprep.subr.bf16.mxu1 %v6455_v47  ;;  %v835_v47 = vld [vmem:[#allocation11 + $0x108] sm:$0xff] }
 0x101   :  { %739 = vmatpush1.bf16.msra.mxu0 %v7296_v49  ;;  %v6454_v49 = vcombine.low %v906_v44, %v910_v45  ;;  %v831_v44 = vld [vmem:[#allocation11 + $0xe8] sm:$0xff]  ;;  %v6368_v45 = vcombine.low %v819_v37, %v823_v38 }
 0x102   :  { %749 = vmatprep.subr.bf16.mxu0 %v7301_v50 }
 0x103   :  { %2407 = vmatpush1.bf16.msra.mxu1 %v6454_v49  ;;  %v6376_v49 = vcombine.low %v827_v43, %v831_v44 }
 0x197   :  { %v289_v50 = vpop.f32.mrb[0].mxu0 }
 0x198   :  { %v290_v51 = vadd.f32 %v289_v50, %v168_v46  ;;  %v291_v52 = vpop.f32.mrb[1].mxu0  ;;  %v6377_v46 = vcombine.high %v827_v43, %v831_v44 }
 0x199   :  { %v292_v53 = vadd.f32 %v291_v52, %v172_v48  ;;  %v293_v54 = vpop.f32.mrb[2].mxu0  ;;  %v839_v48 = vld [vmem:[#allocation11 + $0x128] sm:$0xff] }
 0x19a   :  { %v296_v55 = vmul.f32 0.2, %v290_v51  ;;  %v294_v56 = vpop.f32.mrb[3].mxu0  ;;  %v6385_v50 = vcombine.high %v835_v47, %v839_v48  ;;  %v847_v52 = vld [vmem:[#allocation11 + $0x168] sm:$0xff] }
 0x19b   :  { %v297_v57 = vmul.f32 0.2, %v292_v53  ;;  %v855_v56 = vld [vmem:[#allocation11 + $0x1a8] sm:$0xff] }
 0x19c   :  { %v298_v58 = vmax.f32 %v290_v51, %v296_v55  ;;  %v843_v51 = vld [vmem:[#allocation11 + $0x148] sm:$0xff] }
 0x19d   :  { %v299_v59 = vmax.f32 %v292_v53, %v297_v57  ;;  %v6384_v53 = vcombine.low %v835_v47, %v839_v48  ;;  %v6393_v54 = vcombine.high %v843_v51, %v847_v52  ;;  %v851_v55 = vld [vmem:[#allocation11 + $0x188] sm:$0xff]  ;;  %v6392_v57 = vcombine.low %v843_v51, %v847_v52  ;;  %v8440_v51 = vld [vmem:[#allocation10] sm:$0xf] }
 0x19e   :  { %v8420_v62 = vpack.c.bf16 %v298_v58, %v298_v58  ;;  %v6401_v58 = vcombine.high %v851_v55, %v855_v56  ;;  %v371_v52 = vrot.slane %v8440_v51, %v8413_v40 }
 0x19f   :  { %v301_v60 = vpack.c.bf16 %v299_v59, %v299_v59  ;;  %v859_v59 = vld [vmem:[#allocation11 + $0x1c8] sm:$0xff] }
 0x1a1   :  { %740 = vmatprep.mubr.bf16.mxu0 %v301_v60 }
 0x1a2   :  { %741 = vmatmul.mubr.bf16.vlgmr.msra.gmra.mrb[4].mxu0 %v8420_v62 }
 0x1a3   :  { %750 = vmatpush1.bf16.msra.mxu0 %v7299_v61  ;;  %781 = vmatprep.mubr.bf16.mxu0 %v301_v60  ;;  %v863_v60 = vld [vmem:[#allocation11 + $0x1e8] sm:$0xff]  ;;  %v914_v61 = vld [vmem:[#allocation11 + $0x380] sm:$0xff] }
 0x1a4   :  { %751 = vmatprep.subr.bf16.mxu0 %v7304_v63 }
 0x1a7   :  { %752 = vmatpush1.bf16.msra.mxu0 %v7302_v0  ;;  %v6400_v0 = vcombine.low %v851_v55, %v855_v56 }
 0x1a8   :  { %753 = vmatprep.subr.bf16.mxu0 %v7307_v1 }
 0x1ab   :  { %754 = vmatpush1.bf16.msra.mxu0 %v7305_v2  ;;  %v6409_v2 = vcombine.high %v859_v59, %v863_v60 }
 0x1ac   :  { %755 = vmatprep.subr.bf16.mxu0 %v7310_v3  ;;  %v867_v3 = vld [vmem:[#allocation11 + $0x208] sm:$0xff] }
 0x1af   :  { %756 = vmatpush1.bf16.msra.mxu0 %v7308_v4  ;;  %v871_v4 = vld [vmem:[#allocation11 + $0x228] sm:$0xff] }
 0x1b0   :  { %757 = vmatprep.subr.bf16.mxu0 %v7313_v5  ;;  %v922_v5 = vld [vmem:[#allocation11 + $0x3c0] sm:$0xff] }
 0x1b3   :  { %758 = vmatpush1.bf16.msra.mxu0 %v7311_v6  ;;  %v926_v6 = vld [vmem:[#allocation11 + $0x3e0] sm:$0xff] }
 0x1b4   :  { %759 = vmatprep.subr.bf16.mxu0 %v7316_v7  ;;  %v6471_v7 = vcombine.high %v922_v5, %v926_v6 }
 0x1b7   :  { %760 = vmatpush1.bf16.msra.mxu0 %v7314_v8  ;;  %v6408_v8 = vcombine.low %v859_v59, %v863_v60 }
 0x1b8   :  { %761 = vmatprep.subr.bf16.mxu0 %v7319_v9  ;;  %v6470_v9 = vcombine.low %v922_v5, %v926_v6 }
 0x1bb   :  { %762 = vmatpush1.bf16.msra.mxu0 %v7317_v10  ;;  %v6417_v10 = vcombine.high %v867_v3, %v871_v4 }
 0x1bc   :  { %763 = vmatprep.subr.bf16.mxu0 %v7322_v11  ;;  %v875_v11 = vld [vmem:[#allocation11 + $0x248] sm:$0xff] }
 0x1bf   :  { %764 = vmatpush1.bf16.msra.mxu0 %v7320_v12  ;;  %v879_v12 = vld [vmem:[#allocation11 + $0x268] sm:$0xff] }
 0x1c0   :  { %765 = vmatprep.subr.bf16.mxu0 %v7325_v13  ;;  %v8424_v13 = vld [vmem:[#allocation11 + $0x400] sm:$0xff] }
 0x1c3   :  { %766 = vmatpush1.bf16.msra.mxu0 %v7323_v14  ;;  %v8426_v14 = vld [vmem:[#allocation11 + $0x420] sm:$0xff] }
 0x1c4   :  { %767 = vmatprep.subr.bf16.mxu0 %v7328_v15  ;;  %v8428_v15 = vld [vmem:[#allocation11 + $0x408] sm:$0xff] }
 0x1c7   :  { %768 = vmatpush1.bf16.msra.mxu0 %v7326_v16  ;;  %v6479_v16 = vcombine.high %v8424_v13, %v8426_v14 }
 0x1c8   :  { %769 = vmatprep.subr.bf16.mxu0 %v7331_v17  ;;  %v8432_v17 = vld [vmem:[#allocation11 + $0x428] sm:$0xff] }
 0x1cb   :  { %770 = vmatpush1.bf16.msra.mxu0 %v7329_v18  ;;  %v6416_v18 = vcombine.low %v867_v3, %v871_v4  ;;  %v943_v3 = vld [vmem:[#allocation11 + $0x468] sm:$0xff] }
 0x1cc   :  { %771 = vmatprep.subr.bf16.mxu0 %v7334_v19  ;;  %v6478_v19 = vcombine.low %v8424_v13, %v8426_v14 }
 0x1cf   :  { %772 = vmatpush1.bf16.msra.mxu0 %v7332_v20  ;;  %v6480_v20 = vcombine.low %v8428_v15, %v8432_v17 }
 0x1d0   :  { %773 = vmatprep.subr.bf16.mxu0 %v7337_v21  ;;  %v6425_v21 = vcombine.high %v875_v11, %v879_v12 }
 0x1d3   :  { %774 = vmatpush1.bf16.msra.mxu0 %v7335_v22  ;;  %v883_v22 = vld [vmem:[#allocation11 + $0x288] sm:$0xff] }
 0x1d4   :  { %775 = vmatprep.subr.bf16.mxu0 %v7340_v23  ;;  %v887_v23 = vld [vmem:[#allocation11 + $0x2a8] sm:$0xff] }
 0x1d5   :  { %v6432_v28 = vcombine.low %v883_v22, %v887_v23 }
 0x1d7   :  { %776 = vmatpush1.bf16.msra.mxu0 %v7338_v24  ;;  %v6424_v24 = vcombine.low %v875_v11, %v879_v12  ;;  %v951_v11 = vld [vmem:[#allocation11 + $0x4a8] sm:$0xff] }
 0x1d8   :  { %777 = vmatprep.subr.bf16.mxu0 %v7343_v25  ;;  %v6433_v25 = vcombine.high %v883_v22, %v887_v23  ;;  %v954_v22 = vld [vmem:[#allocation11 + $0x4c0] sm:$0xff] }
 0x1d9   :  { %v958_v23 = vld [vmem:[#allocation11 + $0x4e0] sm:$0xff] }
 0x1da   :  { %v6503_v13 = vcombine.high %v954_v22, %v958_v23 }
 0x1db   :  { %778 = vmatpush1.bf16.msra.mxu0 %v7341_v26  ;;  %v891_v26 = vld [vmem:[#allocation11 + $0x2c8] sm:$0xff] }
 0x1dc   :  { %779 = vmatprep.subr.bf16.mxu0 %v7346_v27  ;;  %v895_v27 = vld [vmem:[#allocation11 + $0x2e8] sm:$0xff] }
 0x1dd   :  { %v6441_v29 = vcombine.high %v891_v26, %v895_v27  ;;  %v6440_v32 = vcombine.low %v891_v26, %v895_v27 }
 0x1df   :  { %780 = vmatpush1.bf16.msra.mxu0 %v7344_v30  ;;  %v899_v30 = vld [vmem:[#allocation11 + $0x308] sm:$0xff] }
 0x1e0   :  { %2462 = vmatprep.subr.bf16.mxu0 %v6353_v31  ;;  %v903_v31 = vld [vmem:[#allocation11 + $0x328] sm:$0xff] }
 0x1e1   :  { %v6449_v33 = vcombine.high %v899_v30, %v903_v31  ;;  %v6448_v37 = vcombine.low %v899_v30, %v903_v31 }
 0x1e2   :  { %782 = vmatmul.mubr.bf16.vlgmr.msra.gmra.mrb[8].mxu0 %v8420_v62  ;;  %v918_v62 = vld [vmem:[#allocation11 + $0x3a0] sm:$0xff] }
 0x1e3   :  { %2463 = vmatpush1.bf16.msra.mxu0 %v6352_v35  ;;  %v6463_v63 = vcombine.high %v914_v61, %v918_v62  ;;  %v6462_v1 = vcombine.low %v914_v61, %v918_v62  ;;  %v907_v35 = vld [vmem:[#allocation11 + $0x348] sm:$0xff] }
 0x1e4   :  { %2464 = vmatprep.subr.bf16.mxu0 %v6361_v36  ;;  %v911_v36 = vld [vmem:[#allocation11 + $0x368] sm:$0xff] }
 0x1e5   :  { %2408 = vmatprep.subr.bf16.mxu1 %v6463_v63  ;;  %v6457_v38 = vcombine.high %v907_v35, %v911_v36  ;;  %v6456_v43 = vcombine.low %v907_v35, %v911_v36  ;;  %v938_v63 = vld [vmem:[#allocation11 + $0x440] sm:$0xff]  ;;  %v971_v35 = vld [vmem:[#allocation11 + $0x548] sm:$0xff] }
 0x1e6   :  { %2409 = vmatpush1.bf16.msra.mxu1 %v6462_v1  ;;  %v942_v1 = vld [vmem:[#allocation11 + $0x460] sm:$0xff]  ;;  %v975_v36 = vld [vmem:[#allocation11 + $0x568] sm:$0xff] }
 0x1e7   :  { %2465 = vmatpush1.bf16.msra.mxu0 %v6360_v39  ;;  %2410 = vmatprep.subr.bf16.mxu1 %v6471_v7  ;;  %v915_v39 = vld [vmem:[#allocation11 + $0x388] sm:$0xff]  ;;  %v6487_v6 = vcombine.high %v938_v63, %v942_v1  ;;  %v6486_v12 = vcombine.low %v938_v63, %v942_v1 }
 0x1e8   :  { %2466 = vmatprep.subr.bf16.mxu0 %v6369_v41  ;;  %v919_v41 = vld [vmem:[#allocation11 + $0x3a8] sm:$0xff] }
 0x1e9   :  { %v6465_v44 = vcombine.high %v915_v39, %v919_v41  ;;  %v6464_v47 = vcombine.low %v915_v39, %v919_v41  ;;  %v6521_v41 = vcombine.high %v971_v35, %v975_v36  ;;  %v999_v63 = vld [vmem:[#allocation11 + $0x628] sm:$0xff] }
 0x1ea   :  { %2411 = vmatpush1.bf16.msra.mxu1 %v6470_v9  ;;  %v950_v9 = vld [vmem:[#allocation11 + $0x4a0] sm:$0xff] }
 0x1eb   :  { %2467 = vmatpush1.bf16.msra.mxu0 %v6368_v45  ;;  %2421 = vmatprep.subr.bf16.mxu1 %v6479_v16  ;;  %v923_v45 = vld [vmem:[#allocation11 + $0x3c8] sm:$0xff] }
 0x1ec   :  { %2468 = vmatprep.subr.bf16.mxu0 %v6377_v46  ;;  %v927_v46 = vld [vmem:[#allocation11 + $0x3e8] sm:$0xff] }
 0x1ed   :  { %v6473_v48 = vcombine.high %v923_v45, %v927_v46 }
 0x1ef   :  { %2469 = vmatpush1.bf16.msra.mxu0 %v6376_v49  ;;  %v6472_v49 = vcombine.low %v923_v45, %v927_v46  ;;  %v979_v45 = vld [vmem:[#allocation11 + $0x588] sm:$0xff] }
 0x1f0   :  { %2470 = vmatprep.subr.bf16.mxu0 %v6385_v50  ;;  %v6481_v50 = vcombine.high %v8428_v15, %v8432_v17  ;;  %v962_v15 = vld [vmem:[#allocation11 + $0x500] sm:$0xff]  ;;  %v983_v46 = vld [vmem:[#allocation11 + $0x5a8] sm:$0xff] }
 0x1f1   :  { %v966_v17 = vld [vmem:[#allocation11 + $0x520] sm:$0xff] }
 0x1f2   :  { %v6511_v30 = vcombine.high %v962_v15, %v966_v17 }
 0x1f3   :  { %2471 = vmatpush1.bf16.msra.mxu0 %v6384_v53  ;;  %v375_v53 = vrot.slane %v8440_v51, %v8416_v42 }
 0x1f4   :  { %2472 = vmatprep.subr.bf16.mxu0 %v6393_v54 }
 0x1f7   :  { %2473 = vmatpush1.bf16.msra.mxu0 %v6392_v57 }
 0x1f8   :  { %2474 = vmatprep.subr.bf16.mxu0 %v6401_v58 }
 0x1fb   :  { %2475 = vmatpush1.bf16.msra.mxu0 %v6400_v0 }
 0x1fc   :  { %2476 = vmatprep.subr.bf16.mxu0 %v6409_v2  ;;  %v939_v2 = vld [vmem:[#allocation11 + $0x448] sm:$0xff] }
 0x1fd   :  { %v6489_v7 = vcombine.high %v939_v2, %v943_v3  ;;  %v6488_v16 = vcombine.low %v939_v2, %v943_v3 }
 0x1ff   :  { %2477 = vmatpush1.bf16.msra.mxu0 %v6408_v8  ;;  %v946_v8 = vld [vmem:[#allocation11 + $0x480] sm:$0xff] }
 0x200   :  { %2478 = vmatprep.subr.bf16.mxu0 %v6417_v10  ;;  %v947_v10 = vld [vmem:[#allocation11 + $0x488] sm:$0xff]  ;;  %v6494_v26 = vcombine.low %v946_v8, %v950_v9 }
 0x201   :  { %v6496_v27 = vcombine.low %v947_v10, %v951_v11 }
 0x203   :  { %2479 = vmatpush1.bf16.msra.mxu0 %v6416_v18  ;;  %v6495_v18 = vcombine.high %v946_v8, %v950_v9  ;;  %v1003_v8 = vld [vmem:[#allocation11 + $0x648] sm:$0xff] }
 0x204   :  { %2480 = vmatprep.subr.bf16.mxu0 %v6425_v21  ;;  %v6497_v21 = vcombine.high %v947_v10, %v951_v11  ;;  %v1007_v9 = vld [vmem:[#allocation11 + $0x668] sm:$0xff] }
 0x207   :  { %2481 = vmatpush1.bf16.msra.mxu0 %v6424_v24  ;;  %v955_v24 = vld [vmem:[#allocation11 + $0x4c8] sm:$0xff] }
 0x208   :  { %2482 = vmatprep.subr.bf16.mxu0 %v6433_v25  ;;  %v959_v25 = vld [vmem:[#allocation11 + $0x4e8] sm:$0xff] }
 0x209   :  { %v6505_v14 = vcombine.high %v955_v24, %v959_v25 }
 0x20b   :  { %2483 = vmatpush1.bf16.msra.mxu0 %v6432_v28  ;;  %v6502_v28 = vcombine.low %v954_v22, %v958_v23  ;;  %v1011_v22 = vld [vmem:[#allocation11 + $0x688] sm:$0xff] }
 0x20c   :  { %2484 = vmatprep.subr.bf16.mxu0 %v6441_v29  ;;  %v6504_v29 = vcombine.low %v955_v24, %v959_v25  ;;  %v1015_v23 = vld [vmem:[#allocation11 + $0x6a8] sm:$0xff]  ;;  %v6552_v25 = vcombine.low %v1003_v8, %v1007_v9 }
 0x20f   :  { %2485 = vmatpush1.bf16.msra.mxu0 %v6440_v32  ;;  %v970_v32 = vld [vmem:[#allocation11 + $0x540] sm:$0xff] }
 0x210   :  { %2486 = vmatprep.subr.bf16.mxu0 %v6449_v33  ;;  %v974_v33 = vld [vmem:[#allocation11 + $0x560] sm:$0xff] }
 0x211   :  { %v6519_v39 = vcombine.high %v970_v32, %v974_v33 }
 0x213   :  { %2487 = vmatpush1.bf16.msra.mxu0 %v6448_v37  ;;  %v6510_v37 = vcombine.low %v962_v15, %v966_v17  ;;  %v1019_v15 = vld [vmem:[#allocation11 + $0x6c8] sm:$0xff] }
 0x214   :  { %2488 = vmatprep.subr.bf16.mxu0 %v6457_v38  ;;  %v1023_v17 = vld [vmem:[#allocation11 + $0x6e8] sm:$0xff] }
 0x217   :  { %2489 = vmatpush1.bf16.msra.mxu0 %v6456_v43  ;;  %v978_v43 = vld [vmem:[#allocation11 + $0x580] sm:$0xff] }
 0x218   :  { %2490 = vmatprep.subr.bf16.mxu0 %v6465_v44  ;;  %v982_v44 = vld [vmem:[#allocation11 + $0x5a0] sm:$0xff] }
 0x21b   :  { %2491 = vmatpush1.bf16.msra.mxu0 %v6464_v47  ;;  %v6518_v47 = vcombine.low %v970_v32, %v974_v33  ;;  %v1027_v32 = vld [vmem:[#allocation11 + $0x708] sm:$0xff] }
 0x21c   :  { %2492 = vmatprep.subr.bf16.mxu0 %v6473_v48  ;;  %v6520_v48 = vcombine.low %v971_v35, %v975_v36  ;;  %v1031_v33 = vld [vmem:[#allocation11 + $0x728] sm:$0xff]  ;;  %v6568_v36 = vcombine.low %v1019_v15, %v1023_v17 }
 0x21f   :  { %2493 = vmatpush1.bf16.msra.mxu0 %v6472_v49  ;;  %v6527_v49 = vcombine.high %v978_v43, %v982_v44 }
 0x220   :  { %2503 = vmatprep.subr.bf16.mxu0 %v6481_v50  ;;  %v6529_v50 = vcombine.high %v979_v45, %v983_v46 }
 0x275   :  { %v742_v54 = vpop.f32.mrb[4].mxu0 }
 0x276   :  { %v743_v55 = vadd.f32 %v742_v54, %v371_v52  ;;  %v744_v56 = vpop.f32.mrb[5].mxu0  ;;  %v986_v52 = vld [vmem:[#allocation11 + $0x5c0] sm:$0xff]  ;;  %v987_v54 = vld [vmem:[#allocation11 + $0x5c8] sm:$0xff] }
 0x277   :  { %v745_v57 = vadd.f32 %v744_v56, %v375_v53  ;;  %v746_v58 = vpop.f32.mrb[6].mxu0  ;;  %v990_v53 = vld [vmem:[#allocation11 + $0x5e0] sm:$0xff]  ;;  %v6526_v56 = vcombine.low %v978_v43, %v982_v44  ;;  %v1035_v43 = vld [vmem:[#allocation11 + $0x748] sm:$0xff] }
 0x278   :  { %v790_v59 = vmul.f32 0.2, %v743_v55  ;;  %v747_v60 = vpop.f32.mrb[7].mxu0  ;;  %v6535_v58 = vcombine.high %v986_v52, %v990_v53  ;;  %v1039_v44 = vld [vmem:[#allocation11 + $0x768] sm:$0xff] }
 0x279   :  { %v791_v61 = vmul.f32 0.2, %v745_v57  ;;  %v994_v60 = vld [vmem:[#allocation11 + $0x600] sm:$0xff] }
 0x27a   :  { %v794_v62 = vmax.f32 %v743_v55, %v790_v59  ;;  %v991_v55 = vld [vmem:[#allocation11 + $0x5e8] sm:$0xff] }
 0x27b   :  { %v795_v0 = vmax.f32 %v745_v57, %v791_v61  ;;  %v6528_v57 = vcombine.low %v979_v45, %v983_v46  ;;  %v6537_v59 = vcombine.high %v987_v54, %v991_v55  ;;  %v998_v61 = vld [vmem:[#allocation11 + $0x620] sm:$0xff]  ;;  %v6536_v1 = vcombine.low %v987_v54, %v991_v55  ;;  %v1043_v54 = vld [vmem:[#allocation11 + $0x788] sm:$0xff] }
 0x27c   :  { %v8448_v5 = vpack.c.bf16 %v794_v62, %v794_v62  ;;  %v995_v62 = vld [vmem:[#allocation11 + $0x608] sm:$0xff]  ;;  %v6543_v2 = vcombine.high %v994_v60, %v998_v61  ;;  %v6542_v10 = vcombine.low %v994_v60, %v998_v61  ;;  %v6576_v46 = vcombine.low %v1027_v32, %v1031_v33  ;;  %v1050_v61 = vld [vmem:[#allocation11 + $0x7c0] sm:$0xff] }
 0x27d   :  { %v8446_v4 = vpack.c.bf16 %v795_v0, %v795_v0  ;;  %v6534_v0 = vcombine.low %v986_v52, %v990_v53  ;;  %v6545_v3 = vcombine.high %v995_v62, %v999_v63  ;;  %v6544_v11 = vcombine.low %v995_v62, %v999_v63  ;;  %v1046_v53 = vld [vmem:[#allocation11 + $0x7a0] sm:$0xff]  ;;  %v1047_v55 = vld [vmem:[#allocation11 + $0x7a8] sm:$0xff] }
 0x27e   :  { %v8464_v52 = vsub.s32 3, %v8410_v34  ;;  %v6593_v60 = vcombine.high %v1043_v54, %v1047_v55  ;;  %v1054_v63 = vld [vmem:[#allocation11 + $0x7e0] sm:$0xff] }
 0x27f   :  { %2412 = vmatprep.mubr.bf16.mxu1 %v8446_v4  ;;  %2494 = vmatprep.mubr.bf16.mxu0 %v8446_v4 }
 0x280   :  { %2413 = vmatmul.mubr.bf16.vlgmr.msra.gmra.mrb[0].mxu1 %v8448_v5  ;;  %2495 = vmatmul.mubr.bf16.vlgmr.msra.gmra.mrb[12].mxu0 %v8448_v5  ;;  %v383_v62 = vrot.slane %v8440_v51, %v8464_v52 }
 0x281   :  { %2422 = vmatpush1.bf16.msra.mxu1 %v6478_v19  ;;  %2504 = vmatpush1.bf16.msra.mxu0 %v6480_v20  ;;  %v963_v19 = vld [vmem:[#allocation11 + $0x508] sm:$0xff] }
 0x282   :  { %2423 = vmatprep.subr.bf16.mxu1 %v6487_v6  ;;  %2505 = vmatprep.subr.bf16.mxu0 %v6489_v7  ;;  %v967_v20 = vld [vmem:[#allocation11 + $0x528] sm:$0xff]  ;;  %v1002_v6 = vld [vmem:[#allocation11 + $0x640] sm:$0xff] }
 0x283   :  { %v6513_v31 = vcombine.high %v963_v19, %v967_v20  ;;  %v6512_v38 = vcombine.low %v963_v19, %v967_v20  ;;  %v1006_v7 = vld [vmem:[#allocation11 + $0x660] sm:$0xff]  ;;  %v6560_v20 = vcombine.low %v1011_v22, %v1015_v23 }
 0x284   :  { %v6550_v24 = vcombine.low %v1002_v6, %v1006_v7 }
 0x285   :  { %2424 = vmatpush1.bf16.msra.mxu1 %v6486_v12  ;;  %2506 = vmatpush1.bf16.msra.mxu0 %v6488_v16  ;;  %v6551_v12 = vcombine.high %v1002_v6, %v1006_v7  ;;  %v6553_v16 = vcombine.high %v1003_v8, %v1007_v9  ;;  %v6592_v6 = vcombine.low %v1043_v54, %v1047_v55 }
 0x286   :  { %2425 = vmatprep.subr.bf16.mxu1 %v6495_v18  ;;  %2507 = vmatprep.subr.bf16.mxu0 %v6497_v21  ;;  %v1010_v18 = vld [vmem:[#allocation11 + $0x680] sm:$0xff]  ;;  %v6599_v9 = vcombine.high %v1050_v61, %v1054_v63 }
 0x287   :  { %v1014_v21 = vld [vmem:[#allocation11 + $0x6a0] sm:$0xff] }
 0x288   :  { %v6558_v19 = vcombine.low %v1010_v18, %v1014_v21 }
 0x289   :  { %2426 = vmatpush1.bf16.msra.mxu1 %v6494_v26  ;;  %2508 = vmatpush1.bf16.msra.mxu0 %v6496_v27  ;;  %v6559_v26 = vcombine.high %v1010_v18, %v1014_v21  ;;  %v6561_v27 = vcombine.high %v1011_v22, %v1015_v23  ;;  %v808_v18 = vld [vmem:[#allocation11 + $0x30] sm:$0xff]  ;;  %v805_v21 = vld [vmem:[#allocation11 + $0x18] sm:$0xff] }
 0x28a   :  { %2427 = vmatprep.subr.bf16.mxu1 %v6503_v13  ;;  %2509 = vmatprep.subr.bf16.mxu0 %v6505_v14  ;;  %v1018_v13 = vld [vmem:[#allocation11 + $0x6c0] sm:$0xff] }
 0x28b   :  { %v1022_v14 = vld [vmem:[#allocation11 + $0x6e0] sm:$0xff] }
 0x28c   :  { %v6566_v35 = vcombine.low %v1018_v13, %v1022_v14 }
 0x28d   :  { %2428 = vmatpush1.bf16.msra.mxu1 %v6502_v28  ;;  %2510 = vmatpush1.bf16.msra.mxu0 %v6504_v29  ;;  %v6567_v28 = vcombine.high %v1018_v13, %v1022_v14  ;;  %v6569_v29 = vcombine.high %v1019_v15, %v1023_v17  ;;  %v812_v17 = vld [vmem:[#allocation11 + $0x50] sm:$0xff] }
 0x28e   :  { %2429 = vmatprep.subr.bf16.mxu1 %v6511_v30  ;;  %2511 = vmatprep.subr.bf16.mxu0 %v6513_v31  ;;  %v1026_v30 = vld [vmem:[#allocation11 + $0x700] sm:$0xff] }
 0x28f   :  { %v1030_v31 = vld [vmem:[#allocation11 + $0x720] sm:$0xff] }
 0x290   :  { %v6574_v45 = vcombine.low %v1026_v30, %v1030_v31 }
 0x291   :  { %2430 = vmatpush1.bf16.msra.mxu1 %v6510_v37  ;;  %2512 = vmatpush1.bf16.msra.mxu0 %v6512_v38  ;;  %v6575_v37 = vcombine.high %v1026_v30, %v1030_v31  ;;  %v6577_v38 = vcombine.high %v1027_v32, %v1031_v33 }
 0x292   :  { %2431 = vmatprep.subr.bf16.mxu1 %v6519_v39  ;;  %2513 = vmatprep.subr.bf16.mxu0 %v6521_v41  ;;  %v1034_v39 = vld [vmem:[#allocation11 + $0x740] sm:$0xff] }
 0x293   :  { %v1038_v41 = vld [vmem:[#allocation11 + $0x760] sm:$0xff] }
 0x295   :  { %2432 = vmatpush1.bf16.msra.mxu1 %v6518_v47  ;;  %2514 = vmatpush1.bf16.msra.mxu0 %v6520_v48  ;;  %v6583_v47 = vcombine.high %v1034_v39, %v1038_v41  ;;  %v6585_v48 = vcombine.high %v1035_v43, %v1039_v44 }
 0x296   :  { %2433 = vmatprep.subr.bf16.mxu1 %v6527_v49  ;;  %2515 = vmatprep.subr.bf16.mxu0 %v6529_v50  ;;  %v8461_v49 = vsub.s32 2, %v8410_v34  ;;  %v1042_v50 = vld [vmem:[#allocation11 + $0x780] sm:$0xff] }
 0x299   :  { %2434 = vmatpush1.bf16.msra.mxu1 %v6526_v56  ;;  %2516 = vmatpush1.bf16.msra.mxu0 %v6528_v57  ;;  %v6582_v56 = vcombine.low %v1034_v39, %v1038_v41  ;;  %v6584_v57 = vcombine.low %v1035_v43, %v1039_v44  ;;  %v825_v39 = vld [vmem:[#allocation11 + $0xb8] sm:$0xff] }
 0x29a   :  { %2435 = vmatprep.subr.bf16.mxu1 %v6535_v58  ;;  %2517 = vmatprep.subr.bf16.mxu0 %v6537_v59  ;;  %v379_v58 = vrot.slane %v8440_v51, %v8461_v49  ;;  %v6591_v59 = vcombine.high %v1042_v50, %v1046_v53  ;;  %v809_v51 = vld [vmem:[#allocation11 + $0x38] sm:$0xff] }
 0x29b   :  { %v6357_v14 = vcombine.high %v805_v21, %v809_v51  ;;  %v6356_v32 = vcombine.low %v805_v21, %v809_v51 }
 0x29d   :  { %2436 = vmatpush1.bf16.msra.mxu1 %v6534_v0  ;;  %2518 = vmatpush1.bf16.msra.mxu0 %v6536_v1  ;;  %v1051_v0 = vld [vmem:[#allocation11 + $0x7c8] sm:$0xff] }
 0x29e   :  { %2437 = vmatprep.subr.bf16.mxu1 %v6543_v2  ;;  %2519 = vmatprep.subr.bf16.mxu0 %v6545_v3  ;;  %v1055_v1 = vld [vmem:[#allocation11 + $0x7e8] sm:$0xff]  ;;  %v6590_v3 = vcombine.low %v1042_v50, %v1046_v53  ;;  %v833_v50 = vld [vmem:[#allocation11 + $0xf8] sm:$0xff] }
 0x2a1   :  { %2438 = vmatpush1.bf16.msra.mxu1 %v6542_v10  ;;  %2520 = vmatpush1.bf16.msra.mxu0 %v6544_v11  ;;  %v6601_v10 = vcombine.high %v1051_v0, %v1055_v1  ;;  %v804_v11 = vld [vmem:[#allocation11 + $0x10] sm:$0xff] }
 0x2a2   :  { %2439 = vmatprep.subr.bf16.mxu1 %v6551_v12  ;;  %2521 = vmatprep.subr.bf16.mxu0 %v6553_v16  ;;  %v6355_v13 = vcombine.high %v804_v11, %v808_v18  ;;  %v6354_v30 = vcombine.low %v804_v11, %v808_v18  ;;  %v856_v11 = vld [vmem:[#allocation11 + $0x1b0] sm:$0xff] }
 0x2a5   :  { %2440 = vmatpush1.bf16.msra.mxu1 %v6550_v24  ;;  %2522 = vmatpush1.bf16.msra.mxu0 %v6552_v25  ;;  %v6598_v25 = vcombine.low %v1050_v61, %v1054_v63 }
 0x2a6   :  { %2441 = vmatprep.subr.bf16.mxu1 %v6559_v26  ;;  %2523 = vmatprep.subr.bf16.mxu0 %v6561_v27  ;;  %v6600_v26 = vcombine.low %v1051_v0, %v1055_v1  ;;  %v844_v0 = vld [vmem:[#allocation11 + $0x150] sm:$0xff] }
 0x2a7   :  { %v848_v1 = vld [vmem:[#allocation11 + $0x170] sm:$0xff] }
 0x2a8   :  { %v6394_v18 = vcombine.low %v844_v0, %v848_v1 }
 0x2a9   :  { %2442 = vmatpush1.bf16.msra.mxu1 %v6558_v19  ;;  %2524 = vmatpush1.bf16.msra.mxu0 %v6560_v20  ;;  %v816_v19 = vld [vmem:[#allocation11 + $0x70] sm:$0xff]  ;;  %v813_v20 = vld [vmem:[#allocation11 + $0x58] sm:$0xff] }
 0x2aa   :  { %2443 = vmatprep.subr.bf16.mxu1 %v6567_v28  ;;  %2525 = vmatprep.subr.bf16.mxu0 %v6569_v29  ;;  %v817_v28 = vld [vmem:[#allocation11 + $0x78] sm:$0xff]  ;;  %v6363_v33 = vcombine.high %v812_v17, %v816_v19  ;;  %v6362_v41 = vcombine.low %v812_v17, %v816_v19  ;;  %v868_v17 = vld [vmem:[#allocation11 + $0x210] sm:$0xff] }
 0x2ab   :  { %v6364_v43 = vcombine.low %v813_v20, %v817_v28  ;;  %v872_v19 = vld [vmem:[#allocation11 + $0x230] sm:$0xff] }
 0x2ad   :  { %2444 = vmatpush1.bf16.msra.mxu1 %v6566_v35  ;;  %2526 = vmatpush1.bf16.msra.mxu0 %v6568_v36  ;;  %v6365_v35 = vcombine.high %v813_v20, %v817_v28  ;;  %v820_v36 = vld [vmem:[#allocation11 + $0x90] sm:$0xff]  ;;  %v869_v20 = vld [vmem:[#allocation11 + $0x218] sm:$0xff] }
 0x2ae   :  { %2445 = vmatprep.subr.bf16.mxu1 %v6575_v37  ;;  %2527 = vmatprep.subr.bf16.mxu0 %v6577_v38  ;;  %v824_v37 = vld [vmem:[#allocation11 + $0xb0] sm:$0xff]  ;;  %v821_v38 = vld [vmem:[#allocation11 + $0x98] sm:$0xff] }
 0x2af   :  { %v6371_v44 = vcombine.high %v820_v36, %v824_v37  ;;  %v6370_v53 = vcombine.low %v820_v36, %v824_v37  ;;  %v6372_v54 = vcombine.low %v821_v38, %v825_v39  ;;  %v873_v28 = vld [vmem:[#allocation11 + $0x238] sm:$0xff]  ;;  %v876_v36 = vld [vmem:[#allocation11 + $0x250] sm:$0xff] }
 0x2b0   :  { %v880_v37 = vld [vmem:[#allocation11 + $0x270] sm:$0xff] }
 0x2b1   :  { %2446 = vmatpush1.bf16.msra.mxu1 %v6574_v45  ;;  %2528 = vmatpush1.bf16.msra.mxu0 %v6576_v46  ;;  %v6373_v45 = vcombine.high %v821_v38, %v825_v39  ;;  %v828_v46 = vld [vmem:[#allocation11 + $0xd0] sm:$0xff]  ;;  %v877_v38 = vld [vmem:[#allocation11 + $0x258] sm:$0xff] }
 0x2b2   :  { %2447 = vmatprep.subr.bf16.mxu1 %v6583_v47  ;;  %2529 = vmatprep.subr.bf16.mxu0 %v6585_v48  ;;  %v832_v47 = vld [vmem:[#allocation11 + $0xf0] sm:$0xff]  ;;  %v829_v48 = vld [vmem:[#allocation11 + $0xd8] sm:$0xff] }
 0x2b3   :  { %v6379_v55 = vcombine.high %v828_v46, %v832_v47  ;;  %v6380_v61 = vcombine.low %v829_v48, %v833_v50  ;;  %v881_v39 = vld [vmem:[#allocation11 + $0x278] sm:$0xff] }
 0x2b5   :  { %v783_v2 = vpop.f32.mrb[8].mxu0  ;;  %2448 = vmatpush1.bf16.msra.mxu1 %v6582_v56  ;;  %2530 = vmatpush1.bf16.msra.mxu0 %v6584_v57  ;;  %v6381_v56 = vcombine.high %v829_v48, %v833_v50  ;;  %v836_v57 = vld [vmem:[#allocation11 + $0x110] sm:$0xff]  ;;  %v885_v48 = vld [vmem:[#allocation11 + $0x298] sm:$0xff] }
 0x2b6   :  { %v784_v7 = vadd.f32 %v783_v2, %v379_v58  ;;  %v785_v8 = vpop.f32.mrb[9].mxu0  ;;  %2449 = vmatprep.subr.bf16.mxu1 %v6591_v59  ;;  %2531 = vmatprep.subr.bf16.mxu0 %v6593_v60  ;;  %v840_v58 = vld [vmem:[#allocation11 + $0x130] sm:$0xff]  ;;  %v841_v59 = vld [vmem:[#allocation11 + $0x138] sm:$0xff]  ;;  %v6378_v60 = vcombine.low %v828_v46, %v832_v47 }
 0x2b7   :  { %v786_v12 = vadd.f32 %v785_v8, %v383_v62  ;;  %v787_v16 = vpop.f32.mrb[10].mxu0  ;;  %v6387_v62 = vcombine.high %v836_v57, %v840_v58  ;;  %v845_v2 = vld [vmem:[#allocation11 + $0x158] sm:$0xff]  ;;  %v6395_v8 = vcombine.high %v844_v0, %v848_v1  ;;  %v884_v46 = vld [vmem:[#allocation11 + $0x290] sm:$0xff] }
 0x2b8   :  { %v792_v22 = vmul.f32 0.2, %v784_v7  ;;  %v788_v23 = vpop.f32.mrb[11].mxu0  ;;  %v857_v16 = vld [vmem:[#allocation11 + $0x1b8] sm:$0xff]  ;;  %v888_v47 = vld [vmem:[#allocation11 + $0x2b0] sm:$0xff] }
 0x2b9   :  { %v793_v24 = vmul.f32 0.2, %v786_v12  ;;  %2450 = vmatpush1.bf16.msra.mxu1 %v6590_v3  ;;  %2532 = vmatpush1.bf16.msra.mxu0 %v6592_v6  ;;  %v849_v3 = vld [vmem:[#allocation11 + $0x178] sm:$0xff]  ;;  %v6386_v6 = vcombine.low %v836_v57, %v840_v58  ;;  %v860_v23 = vld [vmem:[#allocation11 + $0x1d0] sm:$0xff] }
 0x2ba   :  { %v796_v27 = vmax.f32 %v784_v7, %v792_v22  ;;  %2451 = vmatprep.subr.bf16.mxu1 %v6599_v9  ;;  %2533 = vmatprep.subr.bf16.mxu0 %v6601_v10  ;;  %v6397_v9 = vcombine.high %v845_v2, %v849_v3  ;;  %v852_v10 = vld [vmem:[#allocation11 + $0x190] sm:$0xff]  ;;  %v6396_v21 = vcombine.low %v845_v2, %v849_v3  ;;  %v889_v50 = vld [vmem:[#allocation11 + $0x2b8] sm:$0xff] }
 0x2bb   :  { %v797_v15 = vmax.f32 %v786_v12, %v793_v24  ;;  %v853_v12 = vld [vmem:[#allocation11 + $0x198] sm:$0xff]  ;;  %v6403_v51 = vcombine.high %v852_v10, %v856_v11  ;;  %v864_v24 = vld [vmem:[#allocation11 + $0x1f0] sm:$0xff] }
 0x2bc   :  { %v8472_v31 = vpack.c.bf16 %v796_v27, %v796_v27  ;;  %v6405_v22 = vcombine.high %v853_v12, %v857_v16  ;;  %v6402_v27 = vcombine.low %v852_v10, %v856_v11  ;;  %v892_v57 = vld [vmem:[#allocation11 + $0x2d0] sm:$0xff]  ;;  %v901_v2 = vld [vmem:[#allocation11 + $0x318] sm:$0xff] }
 0x2bd   :  { %v8470_v29 = vpack.c.bf16 %v797_v15, %v797_v15  ;;  %2452 = vmatpush1.bf16.msra.mxu1 %v6598_v25  ;;  %2534 = vmatpush1.bf16.msra.mxu0 %v6600_v26  ;;  %v861_v25 = vld [vmem:[#allocation11 + $0x1d8] sm:$0xff]  ;;  %v896_v58 = vld [vmem:[#allocation11 + $0x2f0] sm:$0xff] }
 0x2be   :  { %2544 = vmatprep.subr.bf16.mxu1 %v6355_v13  ;;  %2626 = vmatprep.subr.bf16.mxu0 %v6357_v14  ;;  %v865_v26 = vld [vmem:[#allocation11 + $0x1f8] sm:$0xff]  ;;  %v6404_v13 = vcombine.low %v853_v12, %v857_v16  ;;  %v6411_v14 = vcombine.high %v860_v23, %v864_v24  ;;  %v900_v0 = vld [vmem:[#allocation11 + $0x310] sm:$0xff] }
 0x2bf   :  { %2453 = vmatprep.mubr.bf16.mxu1 %v8470_v29  ;;  %2535 = vmatprep.mubr.bf16.mxu0 %v8470_v29  ;;  %v6413_v15 = vcombine.high %v861_v25, %v865_v26  ;;  %v904_v1 = vld [vmem:[#allocation11 + $0x330] sm:$0xff]  ;;  %v905_v3 = vld [vmem:[#allocation11 + $0x338] sm:$0xff] }
 0x2c0   :  { %2454 = vmatmul.mubr.bf16.vlgmr.msra.gmra.mrb[0].mxu1 %v8472_v31  ;;  %2536 = vmatmul.mubr.bf16.vlgmr.msra.gmra.mrb[12].mxu0 %v8472_v31  ;;  %v908_v10 = vld [vmem:[#allocation11 + $0x350] sm:$0xff]  ;;  %v909_v12 = vld [vmem:[#allocation11 + $0x358] sm:$0xff] }
 0x2c1   :  { %2545 = vmatpush1.bf16.msra.mxu1 %v6354_v30  ;;  %2576 = vmatprep.mubr.bf16.mxu1 %v8446_v4  ;;  %v6410_v30 = vcombine.low %v860_v23, %v864_v24  ;;  %v912_v11 = vld [vmem:[#allocation11 + $0x370] sm:$0xff]  ;;  %v913_v16 = vld [vmem:[#allocation11 + $0x378] sm:$0xff] }
 0x2c2   :  { %2627 = vmatpush1.bf16.msra.mxu0 %v6356_v32  ;;  %2658 = vmatprep.mubr.bf16.mxu0 %v8446_v4  ;;  %v837_v4 = vld [vmem:[#allocation11 + $0x118] sm:$0xff]  ;;  %v6412_v32 = vcombine.low %v861_v25, %v865_v26  ;;  %v916_v23 = vld [vmem:[#allocation11 + $0x390] sm:$0xff] }
 0x2c3   :  { %2546 = vmatprep.subr.bf16.mxu1 %v6363_v33  ;;  %2628 = vmatprep.subr.bf16.mxu0 %v6365_v35  ;;  %v6389_v63 = vcombine.high %v837_v4, %v841_v59  ;;  %v6388_v7 = vcombine.low %v837_v4, %v841_v59  ;;  %v6419_v33 = vcombine.high %v868_v17, %v872_v19  ;;  %v893_v4 = vld [vmem:[#allocation11 + $0x2d8] sm:$0xff]  ;;  %v920_v24 = vld [vmem:[#allocation11 + $0x3b0] sm:$0xff] }
 0x2c4   :  { %v6421_v35 = vcombine.high %v869_v20, %v873_v28  ;;  %v897_v59 = vld [vmem:[#allocation11 + $0x2f8] sm:$0xff] }
 0x2c5   :  { %2547 = vmatpush1.bf16.msra.mxu1 %v6362_v41  ;;  %v6418_v41 = vcombine.low %v868_v17, %v872_v19  ;;  %v917_v25 = vld [vmem:[#allocation11 + $0x398] sm:$0xff]  ;;  %v924_v17 = vld [vmem:[#allocation11 + $0x3d0] sm:$0xff] }
 0x2c6   :  { %2629 = vmatpush1.bf16.msra.mxu0 %v6364_v43  ;;  %2548 = vmatprep.subr.bf16.mxu1 %v6371_v44  ;;  %v6420_v43 = vcombine.low %v869_v20, %v873_v28  ;;  %v6427_v44 = vcombine.high %v876_v36, %v880_v37  ;;  %v921_v26 = vld [vmem:[#allocation11 + $0x3b8] sm:$0xff]  ;;  %v928_v19 = vld [vmem:[#allocation11 + $0x3f0] sm:$0xff] }
 0x2c7   :  { %2630 = vmatprep.subr.bf16.mxu0 %v6373_v45  ;;  %v6429_v45 = vcombine.high %v877_v38, %v881_v39  ;;  %v925_v20 = vld [vmem:[#allocation11 + $0x3d8] sm:$0xff] }
 0x2c8   :  { %v929_v28 = vld [vmem:[#allocation11 + $0x3f8] sm:$0xff] }
 0x2c9   :  { %2549 = vmatpush1.bf16.msra.mxu1 %v6370_v53  ;;  %v6426_v53 = vcombine.low %v876_v36, %v880_v37  ;;  %v932_v36 = vld [vmem:[#allocation11 + $0x410] sm:$0xff] }
 0x2ca   :  { %2631 = vmatpush1.bf16.msra.mxu0 %v6372_v54  ;;  %2550 = vmatprep.subr.bf16.mxu1 %v6379_v55  ;;  %v6428_v54 = vcombine.low %v877_v38, %v881_v39  ;;  %v6435_v55 = vcombine.high %v884_v46, %v888_v47  ;;  %v936_v37 = vld [vmem:[#allocation11 + $0x430] sm:$0xff]  ;;  %v933_v38 = vld [vmem:[#allocation11 + $0x418] sm:$0xff] }
 0x2cb   :  { %2632 = vmatprep.subr.bf16.mxu0 %v6381_v56  ;;  %v6437_v56 = vcombine.high %v885_v48, %v889_v50  ;;  %v937_v39 = vld [vmem:[#allocation11 + $0x438] sm:$0xff] }
 0x2cd   :  { %2551 = vmatpush1.bf16.msra.mxu1 %v6378_v60  ;;  %v6434_v60 = vcombine.low %v884_v46, %v888_v47  ;;  %v940_v46 = vld [vmem:[#allocation11 + $0x450] sm:$0xff] }
 0x2ce   :  { %2633 = vmatpush1.bf16.msra.mxu0 %v6380_v61  ;;  %2552 = vmatprep.subr.bf16.mxu1 %v6387_v62  ;;  %v6436_v61 = vcombine.low %v885_v48, %v889_v50  ;;  %v6443_v62 = vcombine.high %v892_v57, %v896_v58  ;;  %v944_v47 = vld [vmem:[#allocation11 + $0x470] sm:$0xff]  ;;  %v6482_v48 = vcombine.low %v932_v36, %v936_v37  ;;  %v941_v50 = vld [vmem:[#allocation11 + $0x458] sm:$0xff] }
 0x2cf   :  { %2634 = vmatprep.subr.bf16.mxu0 %v6389_v63  ;;  %v6445_v63 = vcombine.high %v893_v4, %v897_v59 }
 0x2d1   :  { %2553 = vmatpush1.bf16.msra.mxu1 %v6386_v6  ;;  %v6442_v6 = vcombine.low %v892_v57, %v896_v58  ;;  %v952_v57 = vld [vmem:[#allocation11 + $0x4b0] sm:$0xff] }
 0x2d2   :  { %2635 = vmatpush1.bf16.msra.mxu0 %v6388_v7  ;;  %2554 = vmatprep.subr.bf16.mxu1 %v6395_v8  ;;  %v6444_v7 = vcombine.low %v893_v4, %v897_v59  ;;  %v6451_v8 = vcombine.high %v900_v0, %v904_v1  ;;  %v949_v4 = vld [vmem:[#allocation11 + $0x498] sm:$0xff] }
 0x2d3   :  { %2636 = vmatprep.subr.bf16.mxu0 %v6397_v9  ;;  %v6453_v9 = vcombine.high %v901_v2, %v905_v3  ;;  %v953_v59 = vld [vmem:[#allocation11 + $0x4b8] sm:$0xff] }
 0x2d5   :  { %2555 = vmatpush1.bf16.msra.mxu1 %v6394_v18  ;;  %v6450_v18 = vcombine.low %v900_v0, %v904_v1  ;;  %v956_v0 = vld [vmem:[#allocation11 + $0x4d0] sm:$0xff] }
 0x2d6   :  { %2637 = vmatpush1.bf16.msra.mxu0 %v6396_v21  ;;  %2556 = vmatprep.subr.bf16.mxu1 %v6403_v51  ;;  %v6452_v21 = vcombine.low %v901_v2, %v905_v3  ;;  %v6459_v51 = vcombine.high %v908_v10, %v912_v11  ;;  %v960_v1 = vld [vmem:[#allocation11 + $0x4f0] sm:$0xff]  ;;  %v957_v2 = vld [vmem:[#allocation11 + $0x4d8] sm:$0xff] }
 0x2d7   :  { %2638 = vmatprep.subr.bf16.mxu0 %v6405_v22  ;;  %v6461_v22 = vcombine.high %v909_v12, %v913_v16  ;;  %v961_v3 = vld [vmem:[#allocation11 + $0x4f8] sm:$0xff] }
 0x2d9   :  { %2557 = vmatpush1.bf16.msra.mxu1 %v6402_v27  ;;  %v6458_v27 = vcombine.low %v908_v10, %v912_v11  ;;  %v968_v10 = vld [vmem:[#allocation11 + $0x530] sm:$0xff]  ;;  %v965_v11 = vld [vmem:[#allocation11 + $0x518] sm:$0xff] }
 0x2da   :  { %2639 = vmatpush1.bf16.msra.mxu0 %v6404_v13  ;;  %2558 = vmatprep.subr.bf16.mxu1 %v6411_v14  ;;  %v6460_v13 = vcombine.low %v909_v12, %v913_v16  ;;  %v6467_v14 = vcombine.high %v916_v23, %v920_v24  ;;  %v969_v12 = vld [vmem:[#allocation11 + $0x538] sm:$0xff]  ;;  %v6508_v16 = vcombine.low %v957_v2, %v961_v3 }
 0x2db   :  { %2640 = vmatprep.subr.bf16.mxu0 %v6413_v15  ;;  %v6469_v15 = vcombine.high %v917_v25, %v921_v26 }
 0x2dd   :  { %2559 = vmatpush1.bf16.msra.mxu1 %v6410_v30  ;;  %v6466_v30 = vcombine.low %v916_v23, %v920_v24  ;;  %v973_v23 = vld [vmem:[#allocation11 + $0x558] sm:$0xff] }
 0x2de   :  { %2641 = vmatpush1.bf16.msra.mxu0 %v6412_v32  ;;  %2560 = vmatprep.subr.bf16.mxu1 %v6419_v33  ;;  %v6468_v32 = vcombine.low %v917_v25, %v921_v26  ;;  %v6475_v33 = vcombine.high %v924_v17, %v928_v19  ;;  %v977_v24 = vld [vmem:[#allocation11 + $0x578] sm:$0xff]  ;;  %v6516_v26 = vcombine.low %v965_v11, %v969_v12 }
 0x2df   :  { %2642 = vmatprep.subr.bf16.mxu0 %v6421_v35  ;;  %v6477_v35 = vcombine.high %v925_v20, %v929_v28 }
 0x2e1   :  { %2561 = vmatpush1.bf16.msra.mxu1 %v6418_v41  ;;  %v6474_v41 = vcombine.low %v924_v17, %v928_v19  ;;  %v981_v17 = vld [vmem:[#allocation11 + $0x598] sm:$0xff] }
 0x2e2   :  { %2643 = vmatpush1.bf16.msra.mxu0 %v6420_v43  ;;  %2562 = vmatprep.subr.bf16.mxu1 %v6427_v44  ;;  %v6476_v43 = vcombine.low %v925_v20, %v929_v28  ;;  %v6483_v44 = vcombine.high %v932_v36, %v936_v37  ;;  %v985_v19 = vld [vmem:[#allocation11 + $0x5b8] sm:$0xff]  ;;  %v6524_v28 = vcombine.low %v973_v23, %v977_v24 }
 0x2e3   :  { %2644 = vmatprep.subr.bf16.mxu0 %v6429_v45  ;;  %v6485_v45 = vcombine.high %v933_v38, %v937_v39  ;;  %v989_v36 = vld [vmem:[#allocation11 + $0x5d8] sm:$0xff] }
 0x2e4   :  { %v993_v37 = vld [vmem:[#allocation11 + $0x5f8] sm:$0xff] }
 0x2e5   :  { %2563 = vmatpush1.bf16.msra.mxu1 %v6426_v53  ;;  %v945_v53 = vld [vmem:[#allocation11 + $0x478] sm:$0xff] }
 0x2e6   :  { %2645 = vmatpush1.bf16.msra.mxu0 %v6428_v54  ;;  %2564 = vmatprep.subr.bf16.mxu1 %v6435_v55  ;;  %v6484_v54 = vcombine.low %v933_v38, %v937_v39  ;;  %v6491_v55 = vcombine.high %v940_v46, %v944_v47  ;;  %v6493_v58 = vcombine.high %v941_v50, %v945_v53 }
 0x2e7   :  { %2646 = vmatprep.subr.bf16.mxu0 %v6437_v56  ;;  %v948_v56 = vld [vmem:[#allocation11 + $0x490] sm:$0xff]  ;;  %v6532_v39 = vcombine.low %v981_v17, %v985_v19 }
 0x2e9   :  { %2565 = vmatpush1.bf16.msra.mxu1 %v6434_v60  ;;  %v6490_v60 = vcombine.low %v940_v46, %v944_v47  ;;  %v997_v46 = vld [vmem:[#allocation11 + $0x618] sm:$0xff] }
 0x2ea   :  { %2647 = vmatpush1.bf16.msra.mxu0 %v6436_v61  ;;  %2566 = vmatprep.subr.bf16.mxu1 %v6443_v62  ;;  %v6492_v61 = vcombine.low %v941_v50, %v945_v53  ;;  %v6499_v62 = vcombine.high %v948_v56, %v952_v57  ;;  %v1001_v47 = vld [vmem:[#allocation11 + $0x638] sm:$0xff]  ;;  %v6540_v50 = vcombine.low %v989_v36, %v993_v37 }
 0x2eb   :  { %2648 = vmatprep.subr.bf16.mxu0 %v6445_v63  ;;  %v6501_v63 = vcombine.high %v949_v4, %v953_v59 }
 0x2ed   :  { %2567 = vmatpush1.bf16.msra.mxu1 %v6442_v6  ;;  %v6498_v6 = vcombine.low %v948_v56, %v952_v57  ;;  %v1008_v56 = vld [vmem:[#allocation11 + $0x670] sm:$0xff]  ;;  %v1005_v57 = vld [vmem:[#allocation11 + $0x658] sm:$0xff] }
 0x2ee   :  { %2649 = vmatpush1.bf16.msra.mxu0 %v6444_v7  ;;  %2568 = vmatprep.subr.bf16.mxu1 %v6451_v8  ;;  %v6507_v7 = vcombine.high %v956_v0, %v960_v1  ;;  %v6509_v8 = vcombine.high %v957_v2, %v961_v3 }
 0x2ef   :  { %2650 = vmatprep.subr.bf16.mxu0 %v6453_v9  ;;  %v964_v9 = vld [vmem:[#allocation11 + $0x510] sm:$0xff] }
 0x2f0   :  { %v6514_v25 = vcombine.low %v964_v9, %v968_v10 }
 0x2f1   :  { %2569 = vmatpush1.bf16.msra.mxu1 %v6450_v18  ;;  %v6515_v18 = vcombine.high %v964_v9, %v968_v10  ;;  %v1021_v9 = vld [vmem:[#allocation11 + $0x6d8] sm:$0xff] }
 0x2f2   :  { %2651 = vmatpush1.bf16.msra.mxu0 %v6452_v21  ;;  %2570 = vmatprep.subr.bf16.mxu1 %v6459_v51  ;;  %v6517_v21 = vcombine.high %v965_v11, %v969_v12  ;;  %v972_v51 = vld [vmem:[#allocation11 + $0x550] sm:$0xff]  ;;  %v1025_v10 = vld [vmem:[#allocation11 + $0x6f8] sm:$0xff] }
 0x2f3   :  { %2652 = vmatprep.subr.bf16.mxu0 %v6461_v22  ;;  %v976_v22 = vld [vmem:[#allocation11 + $0x570] sm:$0xff] }
 0x2f4   :  { %v6522_v20 = vcombine.low %v972_v51, %v976_v22 }
 0x2f5   :  { %2571 = vmatpush1.bf16.msra.mxu1 %v6458_v27  ;;  %v6523_v27 = vcombine.high %v972_v51, %v976_v22  ;;  %v1029_v51 = vld [vmem:[#allocation11 + $0x718] sm:$0xff] }
 0x2f6   :  { %2653 = vmatpush1.bf16.msra.mxu0 %v6460_v13  ;;  %2572 = vmatprep.subr.bf16.mxu1 %v6467_v14  ;;  %v6525_v13 = vcombine.high %v973_v23, %v977_v24  ;;  %v980_v14 = vld [vmem:[#allocation11 + $0x590] sm:$0xff]  ;;  %v1033_v22 = vld [vmem:[#allocation11 + $0x738] sm:$0xff]  ;;  %v6572_v24 = vcombine.low %v1021_v9, %v1025_v10 }
 0x2f7   :  { %2654 = vmatprep.subr.bf16.mxu0 %v6469_v15  ;;  %v984_v15 = vld [vmem:[#allocation11 + $0x5b0] sm:$0xff] }
 0x2f8   :  { %v6530_v38 = vcombine.low %v980_v14, %v984_v15 }
 0x2f9   :  { %2573 = vmatpush1.bf16.msra.mxu1 %v6466_v30  ;;  %v6531_v30 = vcombine.high %v980_v14, %v984_v15  ;;  %v1037_v14 = vld [vmem:[#allocation11 + $0x758] sm:$0xff] }
 0x2fa   :  { %2655 = vmatpush1.bf16.msra.mxu0 %v6468_v32  ;;  %2574 = vmatprep.subr.bf16.mxu1 %v6475_v33  ;;  %v6533_v32 = vcombine.high %v981_v17, %v985_v19  ;;  %v988_v33 = vld [vmem:[#allocation11 + $0x5d0] sm:$0xff]  ;;  %v1041_v15 = vld [vmem:[#allocation11 + $0x778] sm:$0xff]  ;;  %v6580_v19 = vcombine.low %v1029_v51, %v1033_v22 }
 0x2fb   :  { %2656 = vmatprep.subr.bf16.mxu0 %v6477_v35  ;;  %v992_v35 = vld [vmem:[#allocation11 + $0x5f0] sm:$0xff] }
 0x2fd   :  { %2575 = vmatpush1.bf16.msra.mxu1 %v6474_v41  ;;  %v6539_v41 = vcombine.high %v988_v33, %v992_v35 }
 0x2fe   :  { %2657 = vmatpush1.bf16.msra.mxu0 %v6476_v43  ;;  %2585 = vmatprep.subr.bf16.mxu1 %v6483_v44  ;;  %v6541_v43 = vcombine.high %v989_v36, %v993_v37  ;;  %v996_v44 = vld [vmem:[#allocation11 + $0x610] sm:$0xff]  ;;  %v6588_v37 = vcombine.low %v1037_v14, %v1041_v15 }
 0x2ff   :  { %2667 = vmatprep.subr.bf16.mxu0 %v6485_v45  ;;  %v1000_v45 = vld [vmem:[#allocation11 + $0x630] sm:$0xff] }
 0x300   :  { %2577 = vmatmul.mubr.bf16.vlgmr.msra.gmra.mrb[4].mxu1 %v8448_v5  ;;  %v6547_v53 = vcombine.high %v996_v44, %v1000_v45 }
 0x301   :  { %2659 = vmatmul.mubr.bf16.vlgmr.msra.gmra.mrb[16].mxu0 %v8448_v5  ;;  %2586 = vmatpush1.bf16.msra.mxu1 %v6482_v48  ;;  %v6500_v5 = vcombine.low %v949_v4, %v953_v59  ;;  %v6538_v48 = vcombine.low %v988_v33, %v992_v35  ;;  %v6546_v4 = vcombine.low %v996_v44, %v1000_v45  ;;  %v1045_v33 = vld [vmem:[#allocation11 + $0x798] sm:$0xff] }
 0x302   :  { %2617 = vmatprep.mubr.bf16.mxu1 %v8470_v29  ;;  %2668 = vmatpush1.bf16.msra.mxu0 %v6484_v54  ;;  %v6549_v54 = vcombine.high %v997_v46, %v1001_v47  ;;  %v6548_v59 = vcombine.low %v997_v46, %v1001_v47  ;;  %v1049_v35 = vld [vmem:[#allocation11 + $0x7b8] sm:$0xff] }
 0x303   :  { %2699 = vmatprep.mubr.bf16.mxu0 %v8470_v29  ;;  %2587 = vmatprep.subr.bf16.mxu1 %v6491_v55  ;;  %v6506_v29 = vcombine.low %v956_v0, %v960_v1  ;;  %v1004_v55 = vld [vmem:[#allocation11 + $0x650] sm:$0xff]  ;;  %v1013_v0 = vld [vmem:[#allocation11 + $0x698] sm:$0xff]  ;;  %v6596_v47 = vcombine.low %v1045_v33, %v1049_v35 }
 0x304   :  { %2669 = vmatprep.subr.bf16.mxu0 %v6493_v58  ;;  %v1009_v58 = vld [vmem:[#allocation11 + $0x678] sm:$0xff]  ;;  %v6554_v2 = vcombine.low %v1004_v55, %v1008_v56 }
 0x305   :  { %2588 = vmatpush1.bf16.msra.mxu1 %v6490_v60  ;;  %v6555_v60 = vcombine.high %v1004_v55, %v1008_v56  ;;  %v1017_v1 = vld [vmem:[#allocation11 + $0x6b8] sm:$0xff]  ;;  %v6556_v3 = vcombine.low %v1005_v57, %v1009_v58  ;;  %v7349_v55 = vld [vmem:[#allocation14 + $0x4] ss:$28 sps:$4 sm:$0xff]   ;;  %v7352_v56 = vld [vmem:[#allocation14 + $0xc] ss:$28 sps:$4 sm:$0xff]  }
 0x306   :  { %2670 = vmatpush1.bf16.msra.mxu0 %v6492_v61  ;;  %2589 = vmatprep.subr.bf16.mxu1 %v6499_v62  ;;  %v6557_v61 = vcombine.high %v1005_v57, %v1009_v58  ;;  %v1012_v62 = vld [vmem:[#allocation11 + $0x690] sm:$0xff]  ;;  %v6564_v12 = vcombine.low %v1013_v0, %v1017_v1  ;;  %v1053_v44 = vld [vmem:[#allocation11 + $0x7d8] sm:$0xff]  ;;  %v7347_v57 = vld [vmem:[#allocation14] ss:$28 sps:$4 sm:$0xff]  }
 0x307   :  { %2671 = vmatprep.subr.bf16.mxu0 %v6501_v63  ;;  %v1016_v63 = vld [vmem:[#allocation11 + $0x6b0] sm:$0xff]  ;;  %v1057_v45 = vld [vmem:[#allocation11 + $0x7f8] sm:$0xff] }
 0x308   :  { %v6562_v11 = vcombine.low %v1012_v62, %v1016_v63  ;;  %v7350_v58 = vld [vmem:[#allocation14 + $0x8] ss:$28 sps:$4 sm:$0xff]  }
 0x309   :  { %2590 = vmatpush1.bf16.msra.mxu1 %v6498_v6  ;;  %v6563_v6 = vcombine.high %v1012_v62, %v1016_v63  ;;  %v7361_v62 = vld [vmem:[#allocation14 + $0x74] ss:$28 sps:$4 sm:$0xff]   ;;  %v7364_v63 = vld [vmem:[#allocation14 + $0x7c] ss:$28 sps:$4 sm:$0xff]  }
 0x30a   :  { %2672 = vmatpush1.bf16.msra.mxu0 %v6500_v5  ;;  %2591 = vmatprep.subr.bf16.mxu1 %v6507_v7  ;;  %v6565_v5 = vcombine.high %v1013_v0, %v1017_v1  ;;  %v1020_v7 = vld [vmem:[#allocation11 + $0x6d0] sm:$0xff]  ;;  %v7362_v1 = vld [vmem:[#allocation14 + $0x78] ss:$28 sps:$4 sm:$0xff]  }
 0x30b   :  { %2673 = vmatprep.subr.bf16.mxu0 %v6509_v8  ;;  %v1024_v8 = vld [vmem:[#allocation11 + $0x6f0] sm:$0xff] }
 0x30c   :  { %v6570_v23 = vcombine.low %v1020_v7, %v1024_v8  ;;  %v7359_v0 = vld [vmem:[#allocation14 + $0x70] ss:$28 sps:$4 sm:$0xff]  }
 0x30d   :  { %2592 = vmatpush1.bf16.msra.mxu1 %v6506_v29  ;;  %v6571_v29 = vcombine.high %v1020_v7, %v1024_v8  ;;  %v7376_v7 = vld [vmem:[#allocation14 + $0xec] ss:$28 sps:$4 sm:$0xff]   ;;  %v7371_v8 = vld [vmem:[#allocation14 + $0xe0] ss:$28 sps:$4 sm:$0xff]  }
 0x30e   :  { %2674 = vmatpush1.bf16.msra.mxu0 %v6508_v16  ;;  %2593 = vmatprep.subr.bf16.mxu1 %v6515_v18  ;;  %v6573_v16 = vcombine.high %v1021_v9, %v1025_v10  ;;  %v1028_v18 = vld [vmem:[#allocation11 + $0x710] sm:$0xff]  ;;  %v7379_v10 = vld [vmem:[#allocation14 + $0x11c] ss:$28 sps:$4 sm:$0xff]  }
 0x30f   :  { %2675 = vmatprep.subr.bf16.mxu0 %v6517_v21  ;;  %v1032_v21 = vld [vmem:[#allocation11 + $0x730] sm:$0xff] }
 0x310   :  { %v6578_v17 = vcombine.low %v1028_v18, %v1032_v21  ;;  %v7374_v9 = vld [vmem:[#allocation14 + $0xe8] ss:$28 sps:$4 sm:$0xff]  }
 0x311   :  { %2594 = vmatpush1.bf16.msra.mxu1 %v6514_v25  ;;  %v6579_v25 = vcombine.high %v1028_v18, %v1032_v21  ;;  %v7388_v18 = vld [vmem:[#allocation14 + $0x15c] ss:$28 sps:$4 sm:$0xff]   ;;  %v7383_v21 = vld [vmem:[#allocation14 + $0x150] ss:$28 sps:$4 sm:$0xff]  }
 0x312   :  { %2676 = vmatpush1.bf16.msra.mxu0 %v6516_v26  ;;  %2595 = vmatprep.subr.bf16.mxu1 %v6523_v27  ;;  %v6581_v26 = vcombine.high %v1029_v51, %v1033_v22  ;;  %v1036_v27 = vld [vmem:[#allocation11 + $0x750] sm:$0xff]  ;;  %v7386_v51 = vld [vmem:[#allocation14 + $0x158] ss:$28 sps:$4 sm:$0xff]  }
 0x313   :  { %2677 = vmatprep.subr.bf16.mxu0 %v6525_v13  ;;  %v1040_v13 = vld [vmem:[#allocation11 + $0x770] sm:$0xff] }
 0x314   :  { %v6586_v36 = vcombine.low %v1036_v27, %v1040_v13  ;;  %v7391_v22 = vld [vmem:[#allocation14 + $0x18c] ss:$28 sps:$4 sm:$0xff]  }
 0x315   :  { %2596 = vmatpush1.bf16.msra.mxu1 %v6522_v20  ;;  %v6587_v20 = vcombine.high %v1036_v27, %v1040_v13  ;;  %v7400_v27 = vld [vmem:[#allocation14 + $0x1cc] ss:$28 sps:$4 sm:$0xff]   ;;  %v7395_v13 = vld [vmem:[#allocation14 + $0x1c0] ss:$28 sps:$4 sm:$0xff]  }
 0x316   :  { %2678 = vmatpush1.bf16.msra.mxu0 %v6524_v28  ;;  %2597 = vmatprep.subr.bf16.mxu1 %v6531_v30  ;;  %v6589_v28 = vcombine.high %v1037_v14, %v1041_v15  ;;  %v1044_v30 = vld [vmem:[#allocation11 + $0x790] sm:$0xff]  ;;  %v7403_v15 = vld [vmem:[#allocation14 + $0x1fc] ss:$28 sps:$4 sm:$0xff]  }
 0x317   :  { %2679 = vmatprep.subr.bf16.mxu0 %v6533_v32  ;;  %v1048_v32 = vld [vmem:[#allocation11 + $0x7b0] sm:$0xff] }
 0x318   :  { %v6594_v46 = vcombine.low %v1044_v30, %v1048_v32  ;;  %v7398_v14 = vld [vmem:[#allocation14 + $0x1c8] ss:$28 sps:$4 sm:$0xff]  }
 0x319   :  { %2598 = vmatpush1.bf16.msra.mxu1 %v6530_v38  ;;  %v6595_v38 = vcombine.high %v1044_v30, %v1048_v32  ;;  %v7412_v30 = vld [vmem:[#allocation14 + $0x23c] ss:$28 sps:$4 sm:$0xff]   ;;  %v7407_v32 = vld [vmem:[#allocation14 + $0x230] ss:$28 sps:$4 sm:$0xff]  }
 0x31a   :  { %2680 = vmatpush1.bf16.msra.mxu0 %v6532_v39  ;;  %2599 = vmatprep.subr.bf16.mxu1 %v6539_v41  ;;  %v6597_v39 = vcombine.high %v1045_v33, %v1049_v35  ;;  %v1052_v41 = vld [vmem:[#allocation11 + $0x7d0] sm:$0xff]  ;;  %v7410_v33 = vld [vmem:[#allocation14 + $0x238] ss:$28 sps:$4 sm:$0xff]  }
 0x31b   :  { %2681 = vmatprep.subr.bf16.mxu0 %v6541_v43  ;;  %v1056_v43 = vld [vmem:[#allocation11 + $0x7f0] sm:$0xff] }
 0x31c   :  { %v7415_v35 = vld [vmem:[#allocation14 + $0x26c] ss:$28 sps:$4 sm:$0xff]  }
 0x31d   :  { %2600 = vmatpush1.bf16.msra.mxu1 %v6538_v48  ;;  %v6603_v48 = vcombine.high %v1052_v41, %v1056_v43 }
 0x31e   :  { %2682 = vmatpush1.bf16.msra.mxu0 %v6540_v50  ;;  %2601 = vmatprep.subr.bf16.mxu1 %v6547_v53  ;;  %v6605_v50 = vcombine.high %v1053_v44, %v1057_v45  ;;  %v6602_v53 = vcombine.low %v1052_v41, %v1056_v43  ;;  %v7424_v41 = vld [vmem:[#allocation14 + $0x2ac] ss:$28 sps:$4 sm:$0xff]   ;;  %v7419_v43 = vld [vmem:[#allocation14 + $0x2a0] ss:$28 sps:$4 sm:$0xff]  }
 0x31f   :  { %2683 = vmatprep.subr.bf16.mxu0 %v6549_v54  ;;  %v6604_v54 = vcombine.low %v1053_v44, %v1057_v45  ;;  %v7422_v44 = vld [vmem:[#allocation14 + $0x2a8] ss:$28 sps:$4 sm:$0xff]   ;;  %v7427_v45 = vld [vmem:[#allocation14 + $0x2dc] ss:$28 sps:$4 sm:$0xff]  }
 0x321   :  { %2602 = vmatpush1.bf16.msra.mxu1 %v6546_v4  ;;  %v7355_v4 = vld [vmem:[#allocation14 + $0x3c] ss:$28 sps:$4 sm:$0xff]  }
 0x322   :  { %2684 = vmatpush1.bf16.msra.mxu0 %v6548_v59  ;;  %2603 = vmatprep.subr.bf16.mxu1 %v6555_v60  ;;  %v7358_v59 = vld [vmem:[#allocation14 + $0x44] ss:$28 sps:$4 sm:$0xff]   ;;  %v7353_v60 = vld [vmem:[#allocation14 + $0x38] ss:$28 sps:$4 sm:$0xff]  }
 0x323   :  { %2685 = vmatprep.subr.bf16.mxu0 %v6557_v61  ;;  %v7356_v61 = vld [vmem:[#allocation14 + $0x40] ss:$28 sps:$4 sm:$0xff]  }
 0x325   :  { %2604 = vmatpush1.bf16.msra.mxu1 %v6554_v2  ;;  %v7367_v2 = vld [vmem:[#allocation14 + $0xac] ss:$28 sps:$4 sm:$0xff]  }
 0x326   :  { %2686 = vmatpush1.bf16.msra.mxu0 %v6556_v3  ;;  %2605 = vmatprep.subr.bf16.mxu1 %v6563_v6  ;;  %v7370_v3 = vld [vmem:[#allocation14 + $0xb4] ss:$28 sps:$4 sm:$0xff]   ;;  %v7365_v6 = vld [vmem:[#allocation14 + $0xa8] ss:$28 sps:$4 sm:$0xff]  }
 0x327   :  { %2687 = vmatprep.subr.bf16.mxu0 %v6565_v5  ;;  %v7373_v5 = vld [vmem:[#allocation14 + $0xe4] ss:$28 sps:$4 sm:$0xff]  }
 0x329   :  { %2606 = vmatpush1.bf16.msra.mxu1 %v6562_v11  ;;  %v7382_v11 = vld [vmem:[#allocation14 + $0x124] ss:$28 sps:$4 sm:$0xff]  }
 0x32a   :  { %2688 = vmatpush1.bf16.msra.mxu0 %v6564_v12  ;;  %2607 = vmatprep.subr.bf16.mxu1 %v6571_v29  ;;  %v7377_v12 = vld [vmem:[#allocation14 + $0x118] ss:$28 sps:$4 sm:$0xff]   ;;  %v7380_v29 = vld [vmem:[#allocation14 + $0x120] ss:$28 sps:$4 sm:$0xff]  }
 0x32b   :  { %2689 = vmatprep.subr.bf16.mxu0 %v6573_v16  ;;  %v7385_v16 = vld [vmem:[#allocation14 + $0x154] ss:$28 sps:$4 sm:$0xff]  }
 0x32d   :  { %2608 = vmatpush1.bf16.msra.mxu1 %v6570_v23  ;;  %v7394_v23 = vld [vmem:[#allocation14 + $0x194] ss:$28 sps:$4 sm:$0xff]  }
 0x32e   :  { %2690 = vmatpush1.bf16.msra.mxu0 %v6572_v24  ;;  %2609 = vmatprep.subr.bf16.mxu1 %v6579_v25  ;;  %v7389_v24 = vld [vmem:[#allocation14 + $0x188] ss:$28 sps:$4 sm:$0xff]   ;;  %v7392_v25 = vld [vmem:[#allocation14 + $0x190] ss:$28 sps:$4 sm:$0xff]  }
 0x32f   :  { %2691 = vmatprep.subr.bf16.mxu0 %v6581_v26  ;;  %v7397_v26 = vld [vmem:[#allocation14 + $0x1c4] ss:$28 sps:$4 sm:$0xff]  }
 0x331   :  { %2610 = vmatpush1.bf16.msra.mxu1 %v6578_v17  ;;  %v7406_v17 = vld [vmem:[#allocation14 + $0x204] ss:$28 sps:$4 sm:$0xff]  }
 0x332   :  { %2692 = vmatpush1.bf16.msra.mxu0 %v6580_v19  ;;  %2611 = vmatprep.subr.bf16.mxu1 %v6587_v20  ;;  %v7401_v19 = vld [vmem:[#allocation14 + $0x1f8] ss:$28 sps:$4 sm:$0xff]   ;;  %v7404_v20 = vld [vmem:[#allocation14 + $0x200] ss:$28 sps:$4 sm:$0xff]  }
 0x333   :  { %2693 = vmatprep.subr.bf16.mxu0 %v6589_v28  ;;  %v7409_v28 = vld [vmem:[#allocation14 + $0x234] ss:$28 sps:$4 sm:$0xff]  }
 0x335   :  { %2612 = vmatpush1.bf16.msra.mxu1 %v6586_v36  ;;  %v7418_v36 = vld [vmem:[#allocation14 + $0x274] ss:$28 sps:$4 sm:$0xff]  }
 0x336   :  { %2694 = vmatpush1.bf16.msra.mxu0 %v6588_v37  ;;  %2613 = vmatprep.subr.bf16.mxu1 %v6595_v38  ;;  %v7413_v37 = vld [vmem:[#allocation14 + $0x268] ss:$28 sps:$4 sm:$0xff]   ;;  %v7416_v38 = vld [vmem:[#allocation14 + $0x270] ss:$28 sps:$4 sm:$0xff]  }
 0x337   :  { %2695 = vmatprep.subr.bf16.mxu0 %v6597_v39  ;;  %v7421_v39 = vld [vmem:[#allocation14 + $0x2a4] ss:$28 sps:$4 sm:$0xff]  }
 0x339   :  { %2614 = vmatpush1.bf16.msra.mxu1 %v6594_v46  ;;  %v7430_v46 = vld [vmem:[#allocation14 + $0x2e4] ss:$28 sps:$4 sm:$0xff]  }
 0x33a   :  { %2696 = vmatpush1.bf16.msra.mxu0 %v6596_v47  ;;  %2615 = vmatprep.subr.bf16.mxu1 %v6603_v48  ;;  %v7425_v47 = vld [vmem:[#allocation14 + $0x2d8] ss:$28 sps:$4 sm:$0xff]   ;;  %v7428_v48 = vld [vmem:[#allocation14 + $0x2e0] ss:$28 sps:$4 sm:$0xff]  }
 0x33b   :  { %2697 = vmatprep.subr.bf16.mxu0 %v6605_v50  ;;  %v7433_v50 = vld [vmem:[#allocation14 + $0x314] ss:$28 sps:$4 sm:$0xff]  }
 0x33d   :  { %2616 = vmatpush1.bf16.msra.mxu1 %v6602_v53  ;;  %v7436_v53 = vld [vmem:[#allocation14 + $0x31c] ss:$28 sps:$4 sm:$0xff]  }
 0x33e   :  { %2698 = vmatpush1.bf16.msra.mxu0 %v6604_v54  ;;  %5585 = vmatprep.subr.bf16.mxu1 %v7349_v55  ;;  %v7431_v54 = vld [vmem:[#allocation14 + $0x310] ss:$28 sps:$4 sm:$0xff]   ;;  %v7434_v55 = vld [vmem:[#allocation14 + $0x318] ss:$28 sps:$4 sm:$0xff]  }
 0x33f   :  { %5749 = vmatprep.subr.bf16.mxu0 %v7352_v56  ;;  %v7439_v56 = vld [vmem:[#allocation14 + $0x34c] ss:$28 sps:$4 sm:$0xff]  }
 0x340   :  { %2618 = vmatmul.mubr.bf16.vlgmr.msra.gmra.mrb[4].mxu1 %v8472_v31 }
 0x341   :  { %2700 = vmatmul.mubr.bf16.vlgmr.msra.gmra.mrb[16].mxu0 %v8472_v31  ;;  %5586 = vmatpush1.bf16.msra.mxu1 %v7347_v57  ;;  %v7368_v31 = vld [vmem:[#allocation14 + $0xb0] ss:$28 sps:$4 sm:$0xff]  }
 0x342   :  { %5750 = vmatpush1.bf16.msra.mxu0 %v7350_v58  ;;  %5587 = vmatprep.subr.bf16.mxu1 %v7355_v4  ;;  %v7442_v57 = vld [vmem:[#allocation14 + $0x354] ss:$28 sps:$4 sm:$0xff]   ;;  %v7437_v58 = vld [vmem:[#allocation14 + $0x348] ss:$28 sps:$4 sm:$0xff]  }
 0x343   :  { %5751 = vmatprep.subr.bf16.mxu0 %v7358_v59  ;;  %v7440_v4 = vld [vmem:[#allocation14 + $0x350] ss:$28 sps:$4 sm:$0xff]   ;;  %v7445_v59 = vld [vmem:[#allocation14 + $0x384] ss:$28 sps:$4 sm:$0xff]  }
 0x345   :  { %5588 = vmatpush1.bf16.msra.mxu1 %v7353_v60  ;;  %v7448_v60 = vld [vmem:[#allocation14 + $0x38c] ss:$28 sps:$4 sm:$0xff]  }
 0x346   :  { %5752 = vmatpush1.bf16.msra.mxu0 %v7356_v61  ;;  %5589 = vmatprep.subr.bf16.mxu1 %v7361_v62  ;;  %v8486_v61 = vld [vmem:[#allocation13] sm:$0xff] }
 0x347   :  { %5753 = vmatprep.subr.bf16.mxu0 %v7364_v63  ;;  %v1063_v62 = vrot.slane %v8486_v61, %v8413_v40  ;;  %v1067_v63 = vrot.slane %v8486_v61, %v8416_v42 }
 0x349   :  { %5590 = vmatpush1.bf16.msra.mxu1 %v7359_v0  ;;  %v1075_v0 = vrot.slane %v8486_v61, %v8464_v52 }
 0x34a   :  { %5754 = vmatpush1.bf16.msra.mxu0 %v7362_v1  ;;  %5591 = vmatprep.subr.bf16.mxu1 %v7367_v2 }
 0x34b   :  { %5755 = vmatprep.subr.bf16.mxu0 %v7370_v3 }
 0x34d   :  { %5592 = vmatpush1.bf16.msra.mxu1 %v7365_v6 }
 0x34e   :  { %5756 = vmatpush1.bf16.msra.mxu0 %v7368_v31  ;;  %5593 = vmatprep.subr.bf16.mxu1 %v7373_v5 }
 0x34f   :  { %5757 = vmatprep.subr.bf16.mxu0 %v7376_v7 }
 0x351   :  { %5594 = vmatpush1.bf16.msra.mxu1 %v7371_v8 }
 0x352   :  { %5758 = vmatpush1.bf16.msra.mxu0 %v7374_v9  ;;  %5595 = vmatprep.subr.bf16.mxu1 %v7379_v10 }
 0x353   :  { %5759 = vmatprep.subr.bf16.mxu0 %v7382_v11 }
 0x355   :  { %5596 = vmatpush1.bf16.msra.mxu1 %v7377_v12 }
 0x356   :  { %5760 = vmatpush1.bf16.msra.mxu0 %v7380_v29  ;;  %5597 = vmatprep.subr.bf16.mxu1 %v7385_v16 }
 0x357   :  { %5761 = vmatprep.subr.bf16.mxu0 %v7388_v18 }
 0x359   :  { %5598 = vmatpush1.bf16.msra.mxu1 %v7383_v21 }
 0x35a   :  { %5762 = vmatpush1.bf16.msra.mxu0 %v7386_v51  ;;  %5599 = vmatprep.subr.bf16.mxu1 %v7391_v22 }
 0x35b   :  { %5763 = vmatprep.subr.bf16.mxu0 %v7394_v23  ;;  %v7443_v23 = vld [vmem:[#allocation14 + $0x380] ss:$28 sps:$4 sm:$0xff]  }
 0x35d   :  { %5600 = vmatpush1.bf16.msra.mxu1 %v7389_v24  ;;  %v7446_v24 = vld [vmem:[#allocation14 + $0x388] ss:$28 sps:$4 sm:$0xff]  }
 0x35e   :  { %5764 = vmatpush1.bf16.msra.mxu0 %v7392_v25  ;;  %5601 = vmatprep.subr.bf16.mxu1 %v7397_v26  ;;  %v7451_v26 = vld [vmem:[#allocation14 + $0x3bc] ss:$28 sps:$4 sm:$0xff]  }
 0x35f   :  { %5765 = vmatprep.subr.bf16.mxu0 %v7400_v27  ;;  %v7454_v27 = vld [vmem:[#allocation14 + $0x3c4] ss:$28 sps:$4 sm:$0xff]  }
 0x361   :  { %5602 = vmatpush1.bf16.msra.mxu1 %v7395_v13 }
 0x362   :  { %5766 = vmatpush1.bf16.msra.mxu0 %v7398_v14  ;;  %5603 = vmatprep.subr.bf16.mxu1 %v7403_v15  ;;  %v7449_v14 = vld [vmem:[#allocation14 + $0x3b8] ss:$28 sps:$4 sm:$0xff]   ;;  %v7452_v15 = vld [vmem:[#allocation14 + $0x3c0] ss:$28 sps:$4 sm:$0xff]  }
 0x363   :  { %5767 = vmatprep.subr.bf16.mxu0 %v7406_v17  ;;  %v7457_v17 = vld [vmem:[#allocation14 + $0x3f4] ss:$28 sps:$4 sm:$0xff]  }
 0x365   :  { %5604 = vmatpush1.bf16.msra.mxu1 %v7401_v19  ;;  %v7460_v19 = vld [vmem:[#allocation14 + $0x3fc] ss:$28 sps:$4 sm:$0xff]  }
 0x366   :  { %5768 = vmatpush1.bf16.msra.mxu0 %v7404_v20  ;;  %5605 = vmatprep.subr.bf16.mxu1 %v7409_v28  ;;  %v7455_v20 = vld [vmem:[#allocation14 + $0x3f0] ss:$28 sps:$4 sm:$0xff]   ;;  %v7458_v28 = vld [vmem:[#allocation14 + $0x3f8] ss:$28 sps:$4 sm:$0xff]  }
 0x367   :  { %5769 = vmatprep.subr.bf16.mxu0 %v7412_v30  ;;  %v7463_v30 = vld [vmem:[#allocation14 + $0x42c] ss:$28 sps:$4 sm:$0xff]  }
 0x369   :  { %5606 = vmatpush1.bf16.msra.mxu1 %v7407_v32  ;;  %v7466_v32 = vld [vmem:[#allocation14 + $0x434] ss:$28 sps:$4 sm:$0xff]  }
 0x36a   :  { %5770 = vmatpush1.bf16.msra.mxu0 %v7410_v33  ;;  %5607 = vmatprep.subr.bf16.mxu1 %v7415_v35  ;;  %v7461_v33 = vld [vmem:[#allocation14 + $0x428] ss:$28 sps:$4 sm:$0xff]   ;;  %v7464_v35 = vld [vmem:[#allocation14 + $0x430] ss:$28 sps:$4 sm:$0xff]  }
 0x36b   :  { %5771 = vmatprep.subr.bf16.mxu0 %v7418_v36  ;;  %v7469_v36 = vld [vmem:[#allocation14 + $0x464] ss:$28 sps:$4 sm:$0xff]  }
 0x36d   :  { %5608 = vmatpush1.bf16.msra.mxu1 %v7413_v37  ;;  %v7472_v37 = vld [vmem:[#allocation14 + $0x46c] ss:$28 sps:$4 sm:$0xff]  }
 0x36e   :  { %5772 = vmatpush1.bf16.msra.mxu0 %v7416_v38  ;;  %5609 = vmatprep.subr.bf16.mxu1 %v7421_v39  ;;  %v7467_v38 = vld [vmem:[#allocation14 + $0x460] ss:$28 sps:$4 sm:$0xff]   ;;  %v7470_v39 = vld [vmem:[#allocation14 + $0x468] ss:$28 sps:$4 sm:$0xff]  }
 0x36f   :  { %5773 = vmatprep.subr.bf16.mxu0 %v7424_v41  ;;  %v7475_v41 = vld [vmem:[#allocation14 + $0x49c] ss:$28 sps:$4 sm:$0xff]  }
 0x371   :  { %5610 = vmatpush1.bf16.msra.mxu1 %v7419_v43  ;;  %v7478_v43 = vld [vmem:[#allocation14 + $0x4a4] ss:$28 sps:$4 sm:$0xff]  }
 0x372   :  { %5774 = vmatpush1.bf16.msra.mxu0 %v7422_v44  ;;  %5611 = vmatprep.subr.bf16.mxu1 %v7427_v45  ;;  %v7473_v44 = vld [vmem:[#allocation14 + $0x498] ss:$28 sps:$4 sm:$0xff]   ;;  %v7476_v45 = vld [vmem:[#allocation14 + $0x4a0] ss:$28 sps:$4 sm:$0xff]  }
 0x373   :  { %5775 = vmatprep.subr.bf16.mxu0 %v7430_v46  ;;  %v7481_v46 = vld [vmem:[#allocation14 + $0x4d4] ss:$28 sps:$4 sm:$0xff]  }
 0x375   :  { %5612 = vmatpush1.bf16.msra.mxu1 %v7425_v47  ;;  %v7484_v47 = vld [vmem:[#allocation14 + $0x4dc] ss:$28 sps:$4 sm:$0xff]  }
 0x376   :  { %5776 = vmatpush1.bf16.msra.mxu0 %v7428_v48  ;;  %5613 = vmatprep.subr.bf16.mxu1 %v7433_v50  ;;  %v7479_v48 = vld [vmem:[#allocation14 + $0x4d0] ss:$28 sps:$4 sm:$0xff]   ;;  %v7482_v50 = vld [vmem:[#allocation14 + $0x4d8] ss:$28 sps:$4 sm:$0xff]  }
 0x377   :  { %5777 = vmatprep.subr.bf16.mxu0 %v7436_v53  ;;  %v7487_v53 = vld [vmem:[#allocation14 + $0x50c] ss:$28 sps:$4 sm:$0xff]  }
 0x379   :  { %5614 = vmatpush1.bf16.msra.mxu1 %v7431_v54  ;;  %v7490_v54 = vld [vmem:[#allocation14 + $0x514] ss:$28 sps:$4 sm:$0xff]  }
 0x37a   :  { %5778 = vmatpush1.bf16.msra.mxu0 %v7434_v55  ;;  %5615 = vmatprep.subr.bf16.mxu1 %v7439_v56  ;;  %v7485_v55 = vld [vmem:[#allocation14 + $0x508] ss:$28 sps:$4 sm:$0xff]   ;;  %v7488_v56 = vld [vmem:[#allocation14 + $0x510] ss:$28 sps:$4 sm:$0xff]  }
 0x37b   :  { %5779 = vmatprep.subr.bf16.mxu0 %v7442_v57  ;;  %v7493_v57 = vld [vmem:[#allocation14 + $0x544] ss:$28 sps:$4 sm:$0xff]  }
 0x37d   :  { %5616 = vmatpush1.bf16.msra.mxu1 %v7437_v58  ;;  %v7496_v58 = vld [vmem:[#allocation14 + $0x54c] ss:$28 sps:$4 sm:$0xff]  }
 0x37e   :  { %5780 = vmatpush1.bf16.msra.mxu0 %v7440_v4  ;;  %5626 = vmatprep.subr.bf16.mxu1 %v7445_v59  ;;  %v7491_v4 = vld [vmem:[#allocation14 + $0x540] ss:$28 sps:$4 sm:$0xff]   ;;  %v7494_v59 = vld [vmem:[#allocation14 + $0x548] ss:$28 sps:$4 sm:$0xff]  }
 0x37f   :  { %5790 = vmatprep.subr.bf16.mxu0 %v7448_v60  ;;  %v7499_v60 = vld [vmem:[#allocation14 + $0x57c] ss:$28 sps:$4 sm:$0xff]  }
 0x393   :  { %v2455_v1 = vpop.f32.mrb[0].mxu1  ;;  %v8494_v2 = vpop.f32.mrb[12].mxu0 }
 0x394   :  { %v7142_v3 = vadd.f32 %v2455_v1, %v1063_v62  ;;  %v2457_v6 = vpop.f32.mrb[1].mxu1  ;;  %v2539_v31 = vpop.f32.mrb[13].mxu0  ;;  %v7502_v62 = vld [vmem:[#allocation14 + $0x584] ss:$28 sps:$4 sm:$0xff]   ;;  %v7505_v1 = vld [vmem:[#allocation14 + $0x5b4] ss:$28 sps:$4 sm:$0xff]  }
 0x395   :  { %v7143_v5 = vadd.f32 %v2457_v6, %v1067_v63  ;;  %v7145_v7 = vadd.f32 %v2539_v31, %v1075_v0  ;;  %v2459_v8 = vpop.f32.mrb[2].mxu1  ;;  %v2541_v9 = vpop.f32.mrb[14].mxu0  ;;  %v7497_v63 = vld [vmem:[#allocation14 + $0x578] ss:$28 sps:$4 sm:$0xff]   ;;  %v7500_v0 = vld [vmem:[#allocation14 + $0x580] ss:$28 sps:$4 sm:$0xff]  }
 0x396   :  { %v2708_v10 = vmul.f32 0.2, %v7142_v3  ;;  %v2460_v11 = vpop.f32.mrb[3].mxu1  ;;  %v2542_v12 = vpop.f32.mrb[15].mxu0  ;;  %v7503_v6 = vld [vmem:[#allocation14 + $0x5b0] ss:$28 sps:$4 sm:$0xff]  }
 0x397   :  { %v2709_v29 = vmul.f32 0.2, %v7143_v5  ;;  %v2711_v16 = vmul.f32 0.2, %v7145_v7  ;;  %v7506_v31 = vld [vmem:[#allocation14 + $0x5b8] ss:$28 sps:$4 sm:$0xff]  }
 0x398   :  { %v2716_v18 = vmax.f32 %v7142_v3, %v2708_v10  ;;  %v7508_v3 = vld [vmem:[#allocation14 + $0x5bc] ss:$28 sps:$4 sm:$0xff]   ;;  %v7509_v8 = vld [vmem:[#allocation14 + $0x5e8] ss:$28 sps:$4 sm:$0xff]   ;;  %v7512_v9 = vld [vmem:[#allocation14 + $0x5f0] ss:$28 sps:$4 sm:$0xff]  }
 0x399   :  { %v2717_v21 = vmax.f32 %v7143_v5, %v2709_v29  ;;  %v2719_v51 = vmax.f32 %v7145_v7, %v2711_v16  ;;  %v7511_v5 = vld [vmem:[#allocation14 + $0x5ec] ss:$28 sps:$4 sm:$0xff]   ;;  %v7514_v7 = vld [vmem:[#allocation14 + $0x5f4] ss:$28 sps:$4 sm:$0xff]   ;;  %v7517_v10 = vld [vmem:[#allocation14 + $0x624] ss:$28 sps:$4 sm:$0xff]   ;;  %v1071_v16 = vrot.slane %v8486_v61, %v8461_v49 }
 0x39a   :  { %v8498_v25 = vpack.c.bf16 %v2716_v18, %v2716_v18  ;;  %v7520_v11 = vld [vmem:[#allocation14 + $0x62c] ss:$28 sps:$4 sm:$0xff]   ;;  %v7515_v12 = vld [vmem:[#allocation14 + $0x620] ss:$28 sps:$4 sm:$0xff]  }
 0x39b   :  { %v8496_v22 = vpack.c.bf16 %v2717_v21, %v2717_v21  ;;  %v8502_v13 = vpack.c.bf16 %v2719_v51, %v2719_v51  ;;  %v7518_v29 = vld [vmem:[#allocation14 + $0x628] ss:$28 sps:$4 sm:$0xff]   ;;  %v7523_v18 = vld [vmem:[#allocation14 + $0x65c] ss:$28 sps:$4 sm:$0xff]  }
 0x39c   :  { %v7526_v21 = vld [vmem:[#allocation14 + $0x664] ss:$28 sps:$4 sm:$0xff]   ;;  %v7521_v51 = vld [vmem:[#allocation14 + $0x658] ss:$28 sps:$4 sm:$0xff]  }
 0x39d   :  { %5617 = vmatprep.mubr.bf16.mxu1 %v8496_v22  ;;  %5781 = vmatprep.mubr.bf16.mxu0 %v8496_v22 }
 0x39e   :  { %5618 = vmatmul.mubr.bf16.vlgmr.msra.gmra.mrb[8].mxu1 %v8498_v25  ;;  %5782 = vmatmul.mubr.bf16.vlgmr.msra.gmra.mrb[20].mxu0 %v8498_v25 }
 0x39f   :  { %5627 = vmatpush1.bf16.msra.mxu1 %v7443_v23  ;;  %5791 = vmatpush1.bf16.msra.mxu0 %v7446_v24  ;;  %v7524_v23 = vld [vmem:[#allocation14 + $0x660] ss:$28 sps:$4 sm:$0xff]   ;;  %v7144_v24 = vadd.f32 %v8494_v2, %v1071_v16  ;;  %v7593_v16 = vld [vmem:[#allocation14 + $0x8f8] ss:$28 sps:$4 sm:$0xff]  }
 0x3a0   :  { %5658 = vmatprep.mubr.bf16.mxu1 %v8502_v13  ;;  %5822 = vmatprep.mubr.bf16.mxu0 %v8502_v13  ;;  %v7541_v2 = vld [vmem:[#allocation14 + $0x704] ss:$28 sps:$4 sm:$0xff]  }
 0x3a1   :  { %5628 = vmatprep.subr.bf16.mxu1 %v7451_v26  ;;  %5792 = vmatprep.subr.bf16.mxu0 %v7454_v27  ;;  %v7529_v26 = vld [vmem:[#allocation14 + $0x694] ss:$28 sps:$4 sm:$0xff]   ;;  %v7532_v27 = vld [vmem:[#allocation14 + $0x69c] ss:$28 sps:$4 sm:$0xff]  }
 0x3a3   :  { %5629 = vmatpush1.bf16.msra.mxu1 %v7449_v14  ;;  %5793 = vmatpush1.bf16.msra.mxu0 %v7452_v15  ;;  %v7527_v14 = vld [vmem:[#allocation14 + $0x690] ss:$28 sps:$4 sm:$0xff]   ;;  %v7530_v15 = vld [vmem:[#allocation14 + $0x698] ss:$28 sps:$4 sm:$0xff]  }
 0x3a4   :  { %5630 = vmatprep.subr.bf16.mxu1 %v7457_v17  ;;  %5794 = vmatprep.subr.bf16.mxu0 %v7460_v19  ;;  %v2710_v17 = vmul.f32 0.2, %v7144_v24  ;;  %v7535_v19 = vld [vmem:[#allocation14 + $0x6cc] ss:$28 sps:$4 sm:$0xff]  }
 0x3a7   :  { %5631 = vmatpush1.bf16.msra.mxu1 %v7455_v20  ;;  %5795 = vmatpush1.bf16.msra.mxu0 %v7458_v28  ;;  %v7538_v20 = vld [vmem:[#allocation14 + $0x6d4] ss:$28 sps:$4 sm:$0xff]   ;;  %v7533_v28 = vld [vmem:[#allocation14 + $0x6c8] ss:$28 sps:$4 sm:$0xff]  }
 0x3a8   :  { %5632 = vmatprep.subr.bf16.mxu1 %v7463_v30  ;;  %5796 = vmatprep.subr.bf16.mxu0 %v7466_v32  ;;  %v7536_v30 = vld [vmem:[#allocation14 + $0x6d0] ss:$28 sps:$4 sm:$0xff]   ;;  %v2718_v32 = vmax.f32 %v7144_v24, %v2710_v17  ;;  %v7602_v24 = vld [vmem:[#allocation14 + $0x938] ss:$28 sps:$4 sm:$0xff]   ;;  %v7613_v17 = vld [vmem:[#allocation14 + $0x9a4] ss:$28 sps:$4 sm:$0xff]  }
 0x3ab   :  { %5633 = vmatpush1.bf16.msra.mxu1 %v7461_v33  ;;  %5797 = vmatpush1.bf16.msra.mxu0 %v7464_v35  ;;  %v7544_v33 = vld [vmem:[#allocation14 + $0x70c] ss:$28 sps:$4 sm:$0xff]   ;;  %v7539_v35 = vld [vmem:[#allocation14 + $0x700] ss:$28 sps:$4 sm:$0xff]  }
 0x3ac   :  { %5634 = vmatprep.subr.bf16.mxu1 %v7469_v36  ;;  %5798 = vmatprep.subr.bf16.mxu0 %v7472_v37  ;;  %v7542_v36 = vld [vmem:[#allocation14 + $0x708] ss:$28 sps:$4 sm:$0xff]   ;;  %v8511_v37 = vpack.c.bf16 %v2718_v32, %v2718_v32 }
 0x3ad   :  { %v7622_v32 = vld [vmem:[#allocation14 + $0x9e4] ss:$28 sps:$4 sm:$0xff]  }
 0x3af   :  { %5635 = vmatpush1.bf16.msra.mxu1 %v7467_v38  ;;  %5799 = vmatpush1.bf16.msra.mxu0 %v7470_v39  ;;  %v7547_v38 = vld [vmem:[#allocation14 + $0x73c] ss:$28 sps:$4 sm:$0xff]   ;;  %v7550_v39 = vld [vmem:[#allocation14 + $0x744] ss:$28 sps:$4 sm:$0xff]  }
 0x3b0   :  { %5636 = vmatprep.subr.bf16.mxu1 %v7475_v41  ;;  %5800 = vmatprep.subr.bf16.mxu0 %v7478_v43  ;;  %v7545_v41 = vld [vmem:[#allocation14 + $0x738] ss:$28 sps:$4 sm:$0xff]   ;;  %v7548_v43 = vld [vmem:[#allocation14 + $0x740] ss:$28 sps:$4 sm:$0xff]  }
 0x3b3   :  { %5637 = vmatpush1.bf16.msra.mxu1 %v7473_v44  ;;  %5801 = vmatpush1.bf16.msra.mxu0 %v7476_v45  ;;  %v7553_v44 = vld [vmem:[#allocation14 + $0x774] ss:$28 sps:$4 sm:$0xff]   ;;  %v7556_v45 = vld [vmem:[#allocation14 + $0x77c] ss:$28 sps:$4 sm:$0xff]  }
 0x3b4   :  { %5638 = vmatprep.subr.bf16.mxu1 %v7481_v46  ;;  %5802 = vmatprep.subr.bf16.mxu0 %v7484_v47  ;;  %v7551_v46 = vld [vmem:[#allocation14 + $0x770] ss:$28 sps:$4 sm:$0xff]   ;;  %v7554_v47 = vld [vmem:[#allocation14 + $0x778] ss:$28 sps:$4 sm:$0xff]  }
 0x3b7   :  { %5639 = vmatpush1.bf16.msra.mxu1 %v7479_v48  ;;  %5803 = vmatpush1.bf16.msra.mxu0 %v7482_v50  ;;  %v7559_v48 = vld [vmem:[#allocation14 + $0x7ac] ss:$28 sps:$4 sm:$0xff]   ;;  %v7562_v50 = vld [vmem:[#allocation14 + $0x7b4] ss:$28 sps:$4 sm:$0xff]  }
 0x3b8   :  { %5640 = vmatprep.subr.bf16.mxu1 %v7487_v53  ;;  %5804 = vmatprep.subr.bf16.mxu0 %v7490_v54  ;;  %v7557_v53 = vld [vmem:[#allocation14 + $0x7a8] ss:$28 sps:$4 sm:$0xff]   ;;  %v7560_v54 = vld [vmem:[#allocation14 + $0x7b0] ss:$28 sps:$4 sm:$0xff]  }
 0x3bb   :  { %5641 = vmatpush1.bf16.msra.mxu1 %v7485_v55  ;;  %5805 = vmatpush1.bf16.msra.mxu0 %v7488_v56  ;;  %v7565_v55 = vld [vmem:[#allocation14 + $0x7e4] ss:$28 sps:$4 sm:$0xff]   ;;  %v7568_v56 = vld [vmem:[#allocation14 + $0x7ec] ss:$28 sps:$4 sm:$0xff]  }
 0x3bc   :  { %5642 = vmatprep.subr.bf16.mxu1 %v7493_v57  ;;  %5806 = vmatprep.subr.bf16.mxu0 %v7496_v58  ;;  %v7563_v57 = vld [vmem:[#allocation14 + $0x7e0] ss:$28 sps:$4 sm:$0xff]   ;;  %v7566_v58 = vld [vmem:[#allocation14 + $0x7e8] ss:$28 sps:$4 sm:$0xff]  }
 0x3bf   :  { %5643 = vmatpush1.bf16.msra.mxu1 %v7491_v4  ;;  %5807 = vmatpush1.bf16.msra.mxu0 %v7494_v59  ;;  %v7571_v4 = vld [vmem:[#allocation14 + $0x81c] ss:$28 sps:$4 sm:$0xff]   ;;  %v7574_v59 = vld [vmem:[#allocation14 + $0x824] ss:$28 sps:$4 sm:$0xff]  }
 0x3c0   :  { %5644 = vmatprep.subr.bf16.mxu1 %v7499_v60  ;;  %5808 = vmatprep.subr.bf16.mxu0 %v7502_v62  ;;  %v7569_v60 = vld [vmem:[#allocation14 + $0x818] ss:$28 sps:$4 sm:$0xff]   ;;  %v7572_v62 = vld [vmem:[#allocation14 + $0x820] ss:$28 sps:$4 sm:$0xff]  }
 0x3c3   :  { %5645 = vmatpush1.bf16.msra.mxu1 %v7497_v63  ;;  %5809 = vmatpush1.bf16.msra.mxu0 %v7500_v0  ;;  %v7577_v63 = vld [vmem:[#allocation14 + $0x854] ss:$28 sps:$4 sm:$0xff]   ;;  %v7580_v0 = vld [vmem:[#allocation14 + $0x85c] ss:$28 sps:$4 sm:$0xff]  }
 0x3c4   :  { %5646 = vmatprep.subr.bf16.mxu1 %v7505_v1  ;;  %5810 = vmatprep.subr.bf16.mxu0 %v7508_v3  ;;  %v7575_v1 = vld [vmem:[#allocation14 + $0x850] ss:$28 sps:$4 sm:$0xff]   ;;  %v7578_v3 = vld [vmem:[#allocation14 + $0x858] ss:$28 sps:$4 sm:$0xff]  }
 0x3c7   :  { %5647 = vmatpush1.bf16.msra.mxu1 %v7503_v6  ;;  %5811 = vmatpush1.bf16.msra.mxu0 %v7506_v31  ;;  %v7583_v6 = vld [vmem:[#allocation14 + $0x88c] ss:$28 sps:$4 sm:$0xff]   ;;  %v7586_v31 = vld [vmem:[#allocation14 + $0x894] ss:$28 sps:$4 sm:$0xff]  }
 0x3c8   :  { %5648 = vmatprep.subr.bf16.mxu1 %v7511_v5  ;;  %5812 = vmatprep.subr.bf16.mxu0 %v7514_v7  ;;  %v7581_v5 = vld [vmem:[#allocation14 + $0x888] ss:$28 sps:$4 sm:$0xff]   ;;  %v7584_v7 = vld [vmem:[#allocation14 + $0x890] ss:$28 sps:$4 sm:$0xff]  }
 0x3cb   :  { %5649 = vmatpush1.bf16.msra.mxu1 %v7509_v8  ;;  %5813 = vmatpush1.bf16.msra.mxu0 %v7512_v9  ;;  %v7589_v8 = vld [vmem:[#allocation14 + $0x8c4] ss:$28 sps:$4 sm:$0xff]   ;;  %v7592_v9 = vld [vmem:[#allocation14 + $0x8cc] ss:$28 sps:$4 sm:$0xff]  }
 0x3cc   :  { %5650 = vmatprep.subr.bf16.mxu1 %v7517_v10  ;;  %5814 = vmatprep.subr.bf16.mxu0 %v7520_v11  ;;  %v7587_v10 = vld [vmem:[#allocation14 + $0x8c0] ss:$28 sps:$4 sm:$0xff]   ;;  %v7590_v11 = vld [vmem:[#allocation14 + $0x8c8] ss:$28 sps:$4 sm:$0xff]  }
 0x3cf   :  { %5651 = vmatpush1.bf16.msra.mxu1 %v7515_v12  ;;  %5815 = vmatpush1.bf16.msra.mxu0 %v7518_v29  ;;  %v7595_v12 = vld [vmem:[#allocation14 + $0x8fc] ss:$28 sps:$4 sm:$0xff]   ;;  %v7598_v29 = vld [vmem:[#allocation14 + $0x904] ss:$28 sps:$4 sm:$0xff]  }
 0x3d0   :  { %5652 = vmatprep.subr.bf16.mxu1 %v7523_v18  ;;  %5816 = vmatprep.subr.bf16.mxu0 %v7526_v21  ;;  %v7596_v18 = vld [vmem:[#allocation14 + $0x900] ss:$28 sps:$4 sm:$0xff]   ;;  %v7601_v21 = vld [vmem:[#allocation14 + $0x934] ss:$28 sps:$4 sm:$0xff]  }
 0x3d3   :  { %5653 = vmatpush1.bf16.msra.mxu1 %v7521_v51  ;;  %5817 = vmatpush1.bf16.msra.mxu0 %v7524_v23  ;;  %v7604_v51 = vld [vmem:[#allocation14 + $0x93c] ss:$28 sps:$4 sm:$0xff]   ;;  %v7599_v23 = vld [vmem:[#allocation14 + $0x930] ss:$28 sps:$4 sm:$0xff]  }
 0x3d4   :  { %5654 = vmatprep.subr.bf16.mxu1 %v7529_v26  ;;  %5818 = vmatprep.subr.bf16.mxu0 %v7532_v27  ;;  %v7607_v26 = vld [vmem:[#allocation14 + $0x96c] ss:$28 sps:$4 sm:$0xff]   ;;  %v7610_v27 = vld [vmem:[#allocation14 + $0x974] ss:$28 sps:$4 sm:$0xff]  }
 0x3d7   :  { %5655 = vmatpush1.bf16.msra.mxu1 %v7527_v14  ;;  %5819 = vmatpush1.bf16.msra.mxu0 %v7530_v15  ;;  %v7605_v14 = vld [vmem:[#allocation14 + $0x968] ss:$28 sps:$4 sm:$0xff]   ;;  %v7608_v15 = vld [vmem:[#allocation14 + $0x970] ss:$28 sps:$4 sm:$0xff]  }
 0x3d8   :  { %5656 = vmatprep.subr.bf16.mxu1 %v7535_v19  ;;  %5820 = vmatprep.subr.bf16.mxu0 %v7538_v20  ;;  %v7616_v19 = vld [vmem:[#allocation14 + $0x9ac] ss:$28 sps:$4 sm:$0xff]   ;;  %v7611_v20 = vld [vmem:[#allocation14 + $0x9a0] ss:$28 sps:$4 sm:$0xff]  }
 0x3db   :  { %5657 = vmatpush1.bf16.msra.mxu1 %v7533_v28  ;;  %5821 = vmatpush1.bf16.msra.mxu0 %v7536_v30  ;;  %v7614_v28 = vld [vmem:[#allocation14 + $0x9a8] ss:$28 sps:$4 sm:$0xff]   ;;  %v7619_v30 = vld [vmem:[#allocation14 + $0x9dc] ss:$28 sps:$4 sm:$0xff]  }
 0x3dc   :  { %5667 = vmatprep.subr.bf16.mxu1 %v7541_v2  ;;  %5831 = vmatprep.subr.bf16.mxu0 %v7544_v33  ;;  %v1078_v2 = vsub.s32 4, %v8410_v34  ;;  %v1082_v33 = vsub.s32 5, %v8410_v34 }
 0x3de   :  { %5659 = vmatmul.mubr.bf16.vlgmr.msra.gmra.mrb[8].mxu1 %v8511_v37  ;;  %5823 = vmatmul.mubr.bf16.vlgmr.msra.gmra.mrb[20].mxu0 %v8511_v37 }
 0x3df   :  { %5668 = vmatpush1.bf16.msra.mxu1 %v7539_v35  ;;  %5832 = vmatpush1.bf16.msra.mxu0 %v7542_v36  ;;  %v1090_v35 = vsub.s32 7, %v8410_v34  ;;  %v7617_v36 = vld [vmem:[#allocation14 + $0x9d8] ss:$28 sps:$4 sm:$0xff]  }
 0x3e0   :  { %5669 = vmatprep.subr.bf16.mxu1 %v7547_v38  ;;  %5833 = vmatprep.subr.bf16.mxu0 %v7550_v39  ;;  %v7620_v38 = vld [vmem:[#allocation14 + $0x9e0] ss:$28 sps:$4 sm:$0xff]   ;;  %v1079_v39 = vrot.slane %v8486_v61, %v1078_v2 }
 0x3e3   :  { %5670 = vmatpush1.bf16.msra.mxu1 %v7545_v41  ;;  %5834 = vmatpush1.bf16.msra.mxu0 %v7548_v43  ;;  %v7625_v41 = vld [vmem:[#allocation14 + $0xa14] ss:$28 sps:$4 sm:$0xff]   ;;  %v7628_v43 = vld [vmem:[#allocation14 + $0xa1c] ss:$28 sps:$4 sm:$0xff]  }
 0x3e4   :  { %5671 = vmatprep.subr.bf16.mxu1 %v7553_v44  ;;  %5835 = vmatprep.subr.bf16.mxu0 %v7556_v45  ;;  %v1083_v44 = vrot.slane %v8486_v61, %v1082_v33  ;;  %v1091_v45 = vrot.slane %v8486_v61, %v1090_v35  ;;  %v7659_v35 = vld [vmem:[#allocation14 + $0xb60] ss:$28 sps:$4 sm:$0xff]  }
 0x3e7   :  { %5672 = vmatpush1.bf16.msra.mxu1 %v7551_v46  ;;  %5836 = vmatpush1.bf16.msra.mxu0 %v7554_v47  ;;  %v7623_v47 = vld [vmem:[#allocation14 + $0xa10] ss:$28 sps:$4 sm:$0xff]  }
 0x3e8   :  { %5673 = vmatprep.subr.bf16.mxu1 %v7559_v48  ;;  %5837 = vmatprep.subr.bf16.mxu0 %v7562_v50  ;;  %v7626_v48 = vld [vmem:[#allocation14 + $0xa18] ss:$28 sps:$4 sm:$0xff]  }
 0x3eb   :  { %5674 = vmatpush1.bf16.msra.mxu1 %v7557_v53  ;;  %5838 = vmatpush1.bf16.msra.mxu0 %v7560_v54 }
 0x3ec   :  { %5675 = vmatprep.subr.bf16.mxu1 %v7565_v55  ;;  %5839 = vmatprep.subr.bf16.mxu0 %v7568_v56  ;;  %v7631_v55 = vld [vmem:[#allocation14 + $0xa4c] ss:$28 sps:$4 sm:$0xff]   ;;  %v7634_v56 = vld [vmem:[#allocation14 + $0xa54] ss:$28 sps:$4 sm:$0xff]  }
 0x3ef   :  { %5676 = vmatpush1.bf16.msra.mxu1 %v7563_v57  ;;  %5840 = vmatpush1.bf16.msra.mxu0 %v7566_v58 }
 0x3f0   :  { %5677 = vmatprep.subr.bf16.mxu1 %v7571_v4  ;;  %5841 = vmatprep.subr.bf16.mxu0 %v7574_v59 }
 0x3f3   :  { %5678 = vmatpush1.bf16.msra.mxu1 %v7569_v60  ;;  %5842 = vmatpush1.bf16.msra.mxu0 %v7572_v62 }
 0x3f4   :  { %5679 = vmatprep.subr.bf16.mxu1 %v7577_v63  ;;  %5843 = vmatprep.subr.bf16.mxu0 %v7580_v0  ;;  %v7629_v0 = vld [vmem:[#allocation14 + $0xa48] ss:$28 sps:$4 sm:$0xff]  }
 0x3f7   :  { %5680 = vmatpush1.bf16.msra.mxu1 %v7575_v1  ;;  %5844 = vmatpush1.bf16.msra.mxu0 %v7578_v3 }
 0x3f8   :  { %5681 = vmatprep.subr.bf16.mxu1 %v7583_v6  ;;  %5845 = vmatprep.subr.bf16.mxu0 %v7586_v31  ;;  %v7632_v6 = vld [vmem:[#allocation14 + $0xa50] ss:$28 sps:$4 sm:$0xff]  }
 0x3fb   :  { %5682 = vmatpush1.bf16.msra.mxu1 %v7581_v5  ;;  %5846 = vmatpush1.bf16.msra.mxu0 %v7584_v7  ;;  %v7637_v7 = vld [vmem:[#allocation14 + $0xa84] ss:$28 sps:$4 sm:$0xff]  }
 0x3fc   :  { %5683 = vmatprep.subr.bf16.mxu1 %v7589_v8  ;;  %5847 = vmatprep.subr.bf16.mxu0 %v7592_v9  ;;  %v7640_v8 = vld [vmem:[#allocation14 + $0xa8c] ss:$28 sps:$4 sm:$0xff]  }
 0x3ff   :  { %5684 = vmatpush1.bf16.msra.mxu1 %v7587_v10  ;;  %5848 = vmatpush1.bf16.msra.mxu0 %v7590_v11 }
 0x400   :  { %5685 = vmatprep.subr.bf16.mxu1 %v7595_v12  ;;  %5849 = vmatprep.subr.bf16.mxu0 %v7598_v29  ;;  %v7635_v12 = vld [vmem:[#allocation14 + $0xa80] ss:$28 sps:$4 sm:$0xff]   ;;  %v7638_v29 = vld [vmem:[#allocation14 + $0xa88] ss:$28 sps:$4 sm:$0xff]  }
 0x403   :  { %5686 = vmatpush1.bf16.msra.mxu1 %v7593_v16  ;;  %5850 = vmatpush1.bf16.msra.mxu0 %v7596_v18  ;;  %v7643_v18 = vld [vmem:[#allocation14 + $0xabc] ss:$28 sps:$4 sm:$0xff]  }
 0x404   :  { %5687 = vmatprep.subr.bf16.mxu1 %v7601_v21  ;;  %5851 = vmatprep.subr.bf16.mxu0 %v7604_v51  ;;  %v7646_v21 = vld [vmem:[#allocation14 + $0xac4] ss:$28 sps:$4 sm:$0xff]  }
 0x407   :  { %5688 = vmatpush1.bf16.msra.mxu1 %v7599_v23  ;;  %5852 = vmatpush1.bf16.msra.mxu0 %v7602_v24  ;;  %v7641_v23 = vld [vmem:[#allocation14 + $0xab8] ss:$28 sps:$4 sm:$0xff]   ;;  %v7644_v24 = vld [vmem:[#allocation14 + $0xac0] ss:$28 sps:$4 sm:$0xff]  }
 0x408   :  { %5689 = vmatprep.subr.bf16.mxu1 %v7607_v26  ;;  %5853 = vmatprep.subr.bf16.mxu0 %v7610_v27  ;;  %v7649_v26 = vld [vmem:[#allocation14 + $0xaf4] ss:$28 sps:$4 sm:$0xff]   ;;  %v7652_v27 = vld [vmem:[#allocation14 + $0xafc] ss:$28 sps:$4 sm:$0xff]  }
 0x40b   :  { %5690 = vmatpush1.bf16.msra.mxu1 %v7605_v14  ;;  %5854 = vmatpush1.bf16.msra.mxu0 %v7608_v15  ;;  %v7647_v14 = vld [vmem:[#allocation14 + $0xaf0] ss:$28 sps:$4 sm:$0xff]   ;;  %v7650_v15 = vld [vmem:[#allocation14 + $0xaf8] ss:$28 sps:$4 sm:$0xff]  }
 0x40c   :  { %5691 = vmatprep.subr.bf16.mxu1 %v7613_v17  ;;  %5855 = vmatprep.subr.bf16.mxu0 %v7616_v19  ;;  %v7655_v17 = vld [vmem:[#allocation14 + $0xb2c] ss:$28 sps:$4 sm:$0xff]   ;;  %v7658_v19 = vld [vmem:[#allocation14 + $0xb34] ss:$28 sps:$4 sm:$0xff]  }
 0x40f   :  { %5692 = vmatpush1.bf16.msra.mxu1 %v7611_v20  ;;  %5856 = vmatpush1.bf16.msra.mxu0 %v7614_v28  ;;  %v7653_v20 = vld [vmem:[#allocation14 + $0xb28] ss:$28 sps:$4 sm:$0xff]   ;;  %v7656_v28 = vld [vmem:[#allocation14 + $0xb30] ss:$28 sps:$4 sm:$0xff]  }
 0x410   :  { %5693 = vmatprep.subr.bf16.mxu1 %v7619_v30  ;;  %5857 = vmatprep.subr.bf16.mxu0 %v7622_v32  ;;  %v7661_v30 = vld [vmem:[#allocation14 + $0xb64] ss:$28 sps:$4 sm:$0xff]   ;;  %v7664_v32 = vld [vmem:[#allocation14 + $0xb6c] ss:$28 sps:$4 sm:$0xff]  }
 0x413   :  { %5694 = vmatpush1.bf16.msra.mxu1 %v7617_v36  ;;  %5858 = vmatpush1.bf16.msra.mxu0 %v7620_v38  ;;  %v2619_v46 = vpop.f32.mrb[4].mxu1  ;;  %v7662_v36 = vld [vmem:[#allocation14 + $0xb68] ss:$28 sps:$4 sm:$0xff]   ;;  %v7667_v38 = vld [vmem:[#allocation14 + $0xb9c] ss:$28 sps:$4 sm:$0xff]  }
 0x414   :  { %v7146_v50 = vadd.f32 %v2619_v46, %v1079_v39  ;;  %v8525_v53 = vpop.f32.mrb[16].mxu0  ;;  %v2621_v54 = vpop.f32.mrb[5].mxu1  ;;  %5695 = vmatprep.subr.bf16.mxu1 %v7625_v41  ;;  %5859 = vmatprep.subr.bf16.mxu0 %v7628_v43  ;;  %v7670_v39 = vld [vmem:[#allocation14 + $0xba4] ss:$28 sps:$4 sm:$0xff]   ;;  %v7665_v41 = vld [vmem:[#allocation14 + $0xb98] ss:$28 sps:$4 sm:$0xff]  }
 0x415   :  { %v7147_v57 = vadd.f32 %v2621_v54, %v1083_v44  ;;  %v2703_v58 = vpop.f32.mrb[17].mxu0  ;;  %v2623_v4 = vpop.f32.mrb[6].mxu1  ;;  %v7668_v43 = vld [vmem:[#allocation14 + $0xba0] ss:$28 sps:$4 sm:$0xff]   ;;  %v7673_v44 = vld [vmem:[#allocation14 + $0xbd4] ss:$28 sps:$4 sm:$0xff]  }
 0x416   :  { %v2712_v59 = vmul.f32 0.2, %v7146_v50  ;;  %v7149_v60 = vadd.f32 %v2703_v58, %v1091_v45  ;;  %v2705_v62 = vpop.f32.mrb[18].mxu0  ;;  %v2624_v63 = vpop.f32.mrb[7].mxu1  ;;  %v7676_v45 = vld [vmem:[#allocation14 + $0xbdc] ss:$28 sps:$4 sm:$0xff]  }
 0x417   :  { %v2713_v1 = vmul.f32 0.2, %v7147_v57  ;;  %v2706_v3 = vpop.f32.mrb[19].mxu0  ;;  %5696 = vmatpush1.bf16.msra.mxu1 %v7623_v47  ;;  %5860 = vmatpush1.bf16.msra.mxu0 %v7626_v48  ;;  %v7671_v46 = vld [vmem:[#allocation14 + $0xbd0] ss:$28 sps:$4 sm:$0xff]  }
 0x418   :  { %v2720_v31 = vmax.f32 %v7146_v50, %v2712_v59  ;;  %v2715_v5 = vmul.f32 0.2, %v7149_v60  ;;  %5697 = vmatprep.subr.bf16.mxu1 %v7631_v55  ;;  %5861 = vmatprep.subr.bf16.mxu0 %v7634_v56  ;;  %v7674_v47 = vld [vmem:[#allocation14 + $0xbd8] ss:$28 sps:$4 sm:$0xff]   ;;  %v7679_v48 = vld [vmem:[#allocation14 + $0xc0c] ss:$28 sps:$4 sm:$0xff]  }
 0x419   :  { %v2721_v9 = vmax.f32 %v7147_v57, %v2713_v1  ;;  %v7682_v50 = vld [vmem:[#allocation14 + $0xc14] ss:$28 sps:$4 sm:$0xff]   ;;  %v7677_v54 = vld [vmem:[#allocation14 + $0xc08] ss:$28 sps:$4 sm:$0xff]   ;;  %v7683_v58 = vld [vmem:[#allocation14 + $0xc40] ss:$28 sps:$4 sm:$0xff]  }
 0x41a   :  { %v2723_v10 = vmax.f32 %v7149_v60, %v2715_v5  ;;  %v8529_v16 = vpack.c.bf16 %v2720_v31, %v2720_v31  ;;  %v7680_v55 = vld [vmem:[#allocation14 + $0xc10] ss:$28 sps:$4 sm:$0xff]   ;;  %v7685_v56 = vld [vmem:[#allocation14 + $0xc44] ss:$28 sps:$4 sm:$0xff]   ;;  %v7691_v59 = vld [vmem:[#allocation14 + $0xc7c] ss:$28 sps:$4 sm:$0xff]  }
 0x41b   :  { %v8527_v11 = vpack.c.bf16 %v2721_v9, %v2721_v9  ;;  %5698 = vmatpush1.bf16.msra.mxu1 %v7629_v0  ;;  %5862 = vmatpush1.bf16.msra.mxu0 %v7632_v6  ;;  %v7688_v57 = vld [vmem:[#allocation14 + $0xc4c] ss:$28 sps:$4 sm:$0xff]   ;;  %v7694_v60 = vld [vmem:[#allocation14 + $0xc84] ss:$28 sps:$4 sm:$0xff]   ;;  %v7689_v62 = vld [vmem:[#allocation14 + $0xc78] ss:$28 sps:$4 sm:$0xff]  }
 0x41c   :  { %5708 = vmatprep.subr.bf16.mxu1 %v7637_v7  ;;  %5872 = vmatprep.subr.bf16.mxu0 %v7640_v8  ;;  %v8533_v51 = vpack.c.bf16 %v2723_v10, %v2723_v10  ;;  %v7686_v4 = vld [vmem:[#allocation14 + $0xc48] ss:$28 sps:$4 sm:$0xff]   ;;  %v7692_v63 = vld [vmem:[#allocation14 + $0xc80] ss:$28 sps:$4 sm:$0xff]   ;;  %v7697_v0 = vld [vmem:[#allocation14 + $0xcb4] ss:$28 sps:$4 sm:$0xff]  }
 0x41d   :  { %5699 = vmatprep.mubr.bf16.mxu1 %v8527_v11  ;;  %5863 = vmatprep.mubr.bf16.mxu0 %v8527_v11  ;;  %v7700_v1 = vld [vmem:[#allocation14 + $0xcbc] ss:$28 sps:$4 sm:$0xff]   ;;  %v7695_v3 = vld [vmem:[#allocation14 + $0xcb0] ss:$28 sps:$4 sm:$0xff]   ;;  %v7701_v7 = vld [vmem:[#allocation14 + $0xce8] ss:$28 sps:$4 sm:$0xff]  }
 0x41e   :  { %5700 = vmatmul.mubr.bf16.vlgmr.msra.gmra.mrb[8].mxu1 %v8529_v16  ;;  %5864 = vmatmul.mubr.bf16.vlgmr.msra.gmra.mrb[20].mxu0 %v8529_v16  ;;  %v7698_v6 = vld [vmem:[#allocation14 + $0xcb8] ss:$28 sps:$4 sm:$0xff]   ;;  %v7703_v31 = vld [vmem:[#allocation14 + $0xcec] ss:$28 sps:$4 sm:$0xff]   ;;  %v1086_v9 = vsub.s32 6, %v8410_v34 }
 0x41f   :  { %5709 = vmatpush1.bf16.msra.mxu1 %v7635_v12  ;;  %5873 = vmatpush1.bf16.msra.mxu0 %v7638_v29  ;;  %v7706_v5 = vld [vmem:[#allocation14 + $0xcf4] ss:$28 sps:$4 sm:$0xff]   ;;  %v7709_v10 = vld [vmem:[#allocation14 + $0xd24] ss:$28 sps:$4 sm:$0xff]   ;;  %v7712_v12 = vld [vmem:[#allocation14 + $0xd2c] ss:$28 sps:$4 sm:$0xff]  }
 0x420   :  { %5740 = vmatprep.mubr.bf16.mxu1 %v8533_v51  ;;  %5904 = vmatprep.mubr.bf16.mxu0 %v8533_v51  ;;  %v7704_v8 = vld [vmem:[#allocation14 + $0xcf0] ss:$28 sps:$4 sm:$0xff]   ;;  %v7707_v29 = vld [vmem:[#allocation14 + $0xd20] ss:$28 sps:$4 sm:$0xff]  }
 0x421   :  { %5710 = vmatprep.subr.bf16.mxu1 %v7643_v18  ;;  %5874 = vmatprep.subr.bf16.mxu0 %v7646_v21  ;;  %v7710_v18 = vld [vmem:[#allocation14 + $0xd28] ss:$28 sps:$4 sm:$0xff]   ;;  %v1087_v21 = vrot.slane %v8486_v61, %v1086_v9 }
 0x422   :  { %v7727_v61 = vld [vmem:[#allocation14 + $0xdcc] ss:$28 sps:$4 sm:$0xff]  }
 0x423   :  { %5711 = vmatpush1.bf16.msra.mxu1 %v7641_v23  ;;  %5875 = vmatpush1.bf16.msra.mxu0 %v7644_v24  ;;  %v7715_v23 = vld [vmem:[#allocation14 + $0xd5c] ss:$28 sps:$4 sm:$0xff]   ;;  %v7718_v24 = vld [vmem:[#allocation14 + $0xd64] ss:$28 sps:$4 sm:$0xff]  }
 0x424   :  { %5712 = vmatprep.subr.bf16.mxu1 %v7649_v26  ;;  %5876 = vmatprep.subr.bf16.mxu0 %v7652_v27  ;;  %v7713_v26 = vld [vmem:[#allocation14 + $0xd58] ss:$28 sps:$4 sm:$0xff]   ;;  %v7716_v27 = vld [vmem:[#allocation14 + $0xd60] ss:$28 sps:$4 sm:$0xff]  }
 0x427   :  { %5713 = vmatpush1.bf16.msra.mxu1 %v7647_v14  ;;  %5877 = vmatpush1.bf16.msra.mxu0 %v7650_v15  ;;  %v7148_v14 = vadd.f32 %v8525_v53, %v1087_v21  ;;  %v7721_v15 = vld [vmem:[#allocation14 + $0xd94] ss:$28 sps:$4 sm:$0xff]  }
 0x428   :  { %5714 = vmatprep.subr.bf16.mxu1 %v7655_v17  ;;  %5878 = vmatprep.subr.bf16.mxu0 %v7658_v19  ;;  %v7724_v17 = vld [vmem:[#allocation14 + $0xd9c] ss:$28 sps:$4 sm:$0xff]   ;;  %v7719_v19 = vld [vmem:[#allocation14 + $0xd90] ss:$28 sps:$4 sm:$0xff]  }
 0x429   :  { %v7733_v53 = vld [vmem:[#allocation14 + $0x14] ss:$28 sps:$4 sm:$0xff]  }
 0x42a   :  { %v7774_v21 = vld [vmem:[#allocation14 + $0x558] ss:$28 sps:$4 sm:$0xff]  }
 0x42b   :  { %5715 = vmatpush1.bf16.msra.mxu1 %v7653_v20  ;;  %5879 = vmatpush1.bf16.msra.mxu0 %v7656_v28  ;;  %v7722_v20 = vld [vmem:[#allocation14 + $0xd98] ss:$28 sps:$4 sm:$0xff]   ;;  %v2714_v28 = vmul.f32 0.2, %v7148_v14 }
 0x42c   :  { %5716 = vmatprep.subr.bf16.mxu1 %v7661_v30  ;;  %5880 = vmatprep.subr.bf16.mxu0 %v7664_v32  ;;  %v7730_v30 = vld [vmem:[#allocation14 + $0xdd4] ss:$28 sps:$4 sm:$0xff]   ;;  %v7725_v32 = vld [vmem:[#allocation14 + $0xdc8] ss:$28 sps:$4 sm:$0xff]  }
 0x42f   :  { %5717 = vmatpush1.bf16.msra.mxu1 %v7659_v35  ;;  %5881 = vmatpush1.bf16.msra.mxu0 %v7662_v36  ;;  %v7728_v35 = vld [vmem:[#allocation14 + $0xdd0] ss:$28 sps:$4 sm:$0xff]   ;;  %v2722_v36 = vmax.f32 %v7148_v14, %v2714_v28  ;;  %v7776_v14 = vld [vmem:[#allocation14 + $0x208] ss:$28 sps:$4 sm:$0xff]  }
 0x430   :  { %5718 = vmatprep.subr.bf16.mxu1 %v7667_v38  ;;  %5882 = vmatprep.subr.bf16.mxu0 %v7670_v39  ;;  %v7734_v38 = vld [vmem:[#allocation14 + $0x1d8] ss:$28 sps:$4 sm:$0xff]   ;;  %v7731_v39 = vld [vmem:[#allocation14 + $0x10] ss:$28 sps:$4 sm:$0xff]   ;;  %v7785_v28 = vld [vmem:[#allocation14 + $0x408] ss:$28 sps:$4 sm:$0xff]  }
 0x433   :  { %5719 = vmatpush1.bf16.msra.mxu1 %v7665_v41  ;;  %5883 = vmatpush1.bf16.msra.mxu0 %v7668_v43  ;;  %v8544_v41 = vpack.c.bf16 %v2722_v36, %v2722_v36  ;;  %v7735_v43 = vld [vmem:[#allocation14 + $0x18] ss:$28 sps:$4 sm:$0xff]  }
 0x434   :  { %5720 = vmatprep.subr.bf16.mxu1 %v7673_v44  ;;  %5884 = vmatprep.subr.bf16.mxu0 %v7676_v45  ;;  %v7738_v44 = vld [vmem:[#allocation14 + $0x4c] ss:$28 sps:$4 sm:$0xff]   ;;  %v7793_v36 = vld [vmem:[#allocation14 + $0x2b4] ss:$28 sps:$4 sm:$0xff]  }
 0x435   :  { %v7739_v45 = vld [vmem:[#allocation14 + $0x210] ss:$28 sps:$4 sm:$0xff]  }
 0x437   :  { %5721 = vmatpush1.bf16.msra.mxu1 %v7671_v46  ;;  %5885 = vmatpush1.bf16.msra.mxu0 %v7674_v47  ;;  %v7736_v46 = vld [vmem:[#allocation14 + $0x48] ss:$28 sps:$4 sm:$0xff]   ;;  %v7740_v47 = vld [vmem:[#allocation14 + $0x50] ss:$28 sps:$4 sm:$0xff]  }
 0x438   :  { %5722 = vmatprep.subr.bf16.mxu1 %v7679_v48  ;;  %5886 = vmatprep.subr.bf16.mxu0 %v7682_v50  ;;  %v7743_v48 = vld [vmem:[#allocation14 + $0x84] ss:$28 sps:$4 sm:$0xff]  }
 0x439   :  { %v7744_v50 = vld [vmem:[#allocation14 + $0x248] ss:$28 sps:$4 sm:$0xff]  }
 0x43b   :  { %5723 = vmatpush1.bf16.msra.mxu1 %v7677_v54  ;;  %5887 = vmatpush1.bf16.msra.mxu0 %v7680_v55  ;;  %v7741_v54 = vld [vmem:[#allocation14 + $0x80] ss:$28 sps:$4 sm:$0xff]   ;;  %v7745_v55 = vld [vmem:[#allocation14 + $0x88] ss:$28 sps:$4 sm:$0xff]  }
 0x43c   :  { %5724 = vmatprep.subr.bf16.mxu1 %v7685_v56  ;;  %5888 = vmatprep.subr.bf16.mxu0 %v7688_v57  ;;  %v7748_v56 = vld [vmem:[#allocation14 + $0xbc] ss:$28 sps:$4 sm:$0xff]  }
 0x43d   :  { %v7749_v57 = vld [vmem:[#allocation14 + $0x280] ss:$28 sps:$4 sm:$0xff]  }
 0x43f   :  { %5725 = vmatpush1.bf16.msra.mxu1 %v7683_v58  ;;  %5889 = vmatpush1.bf16.msra.mxu0 %v7686_v4  ;;  %v7746_v58 = vld [vmem:[#allocation14 + $0xb8] ss:$28 sps:$4 sm:$0xff]   ;;  %v7750_v4 = vld [vmem:[#allocation14 + $0xc0] ss:$28 sps:$4 sm:$0xff]  }
 0x440   :  { %5726 = vmatprep.subr.bf16.mxu1 %v7691_v59  ;;  %5890 = vmatprep.subr.bf16.mxu0 %v7694_v60  ;;  %v7753_v59 = vld [vmem:[#allocation14 + $0xf4] ss:$28 sps:$4 sm:$0xff]  }
 0x441   :  { %v7751_v60 = vld [vmem:[#allocation14 + $0xf0] ss:$28 sps:$4 sm:$0xff]  }
 0x443   :  { %5727 = vmatpush1.bf16.msra.mxu1 %v7689_v62  ;;  %5891 = vmatpush1.bf16.msra.mxu0 %v7692_v63  ;;  %v7755_v62 = vld [vmem:[#allocation14 + $0xf8] ss:$28 sps:$4 sm:$0xff]   ;;  %v7758_v63 = vld [vmem:[#allocation14 + $0x12c] ss:$28 sps:$4 sm:$0xff]  }
 0x444   :  { %5728 = vmatprep.subr.bf16.mxu1 %v7697_v0  ;;  %5892 = vmatprep.subr.bf16.mxu0 %v7700_v1  ;;  %v7759_v0 = vld [vmem:[#allocation14 + $0x2f0] ss:$28 sps:$4 sm:$0xff]   ;;  %v7756_v1 = vld [vmem:[#allocation14 + $0x128] ss:$28 sps:$4 sm:$0xff]  }
 0x447   :  { %5729 = vmatpush1.bf16.msra.mxu1 %v7695_v3  ;;  %5893 = vmatpush1.bf16.msra.mxu0 %v7698_v6  ;;  %v7760_v3 = vld [vmem:[#allocation14 + $0x130] ss:$28 sps:$4 sm:$0xff]   ;;  %v7763_v6 = vld [vmem:[#allocation14 + $0x164] ss:$28 sps:$4 sm:$0xff]  }
 0x448   :  { %5730 = vmatprep.subr.bf16.mxu1 %v7703_v31  ;;  %5894 = vmatprep.subr.bf16.mxu0 %v7706_v5  ;;  %v7764_v31 = vld [vmem:[#allocation14 + $0x328] ss:$28 sps:$4 sm:$0xff]   ;;  %v7761_v5 = vld [vmem:[#allocation14 + $0x160] ss:$28 sps:$4 sm:$0xff]  }
 0x44b   :  { %5731 = vmatpush1.bf16.msra.mxu1 %v7701_v7  ;;  %5895 = vmatpush1.bf16.msra.mxu0 %v7704_v8  ;;  %v7765_v7 = vld [vmem:[#allocation14 + $0x168] ss:$28 sps:$4 sm:$0xff]   ;;  %v7768_v8 = vld [vmem:[#allocation14 + $0x19c] ss:$28 sps:$4 sm:$0xff]  }
 0x44c   :  { %5732 = vmatprep.subr.bf16.mxu1 %v7709_v10  ;;  %5896 = vmatprep.subr.bf16.mxu0 %v7712_v12  ;;  %v7769_v10 = vld [vmem:[#allocation14 + $0x360] ss:$28 sps:$4 sm:$0xff]   ;;  %v7766_v12 = vld [vmem:[#allocation14 + $0x198] ss:$28 sps:$4 sm:$0xff]  }
 0x44f   :  { %5733 = vmatpush1.bf16.msra.mxu1 %v7707_v29  ;;  %5897 = vmatpush1.bf16.msra.mxu0 %v7710_v18  ;;  %v7770_v29 = vld [vmem:[#allocation14 + $0x1a0] ss:$28 sps:$4 sm:$0xff]   ;;  %v7773_v18 = vld [vmem:[#allocation14 + $0x1d4] ss:$28 sps:$4 sm:$0xff]  }
 0x450   :  { %5734 = vmatprep.subr.bf16.mxu1 %v7715_v23  ;;  %5898 = vmatprep.subr.bf16.mxu0 %v7718_v24  ;;  %v7771_v23 = vld [vmem:[#allocation14 + $0x1d0] ss:$28 sps:$4 sm:$0xff]   ;;  %v7775_v24 = vld [vmem:[#allocation14 + $0x398] ss:$28 sps:$4 sm:$0xff]  }
 0x453   :  { %5735 = vmatpush1.bf16.msra.mxu1 %v7713_v26  ;;  %5899 = vmatpush1.bf16.msra.mxu0 %v7716_v27  ;;  %v7778_v26 = vld [vmem:[#allocation14 + $0x20c] ss:$28 sps:$4 sm:$0xff]  }
 0x454   :  { %5736 = vmatprep.subr.bf16.mxu1 %v7721_v15  ;;  %5900 = vmatprep.subr.bf16.mxu0 %v7724_v17  ;;  %v7779_v27 = vld [vmem:[#allocation14 + $0x590] ss:$28 sps:$4 sm:$0xff]   ;;  %v7783_v17 = vld [vmem:[#allocation14 + $0x244] ss:$28 sps:$4 sm:$0xff]  }
 0x455   :  { %v7780_v15 = vld [vmem:[#allocation14 + $0x3d0] ss:$28 sps:$4 sm:$0xff]  }
 0x457   :  { %5737 = vmatpush1.bf16.msra.mxu1 %v7719_v19  ;;  %5901 = vmatpush1.bf16.msra.mxu0 %v7722_v20  ;;  %v7784_v19 = vld [vmem:[#allocation14 + $0x5c8] ss:$28 sps:$4 sm:$0xff]   ;;  %v7781_v20 = vld [vmem:[#allocation14 + $0x240] ss:$28 sps:$4 sm:$0xff]  }
 0x458   :  { %5738 = vmatprep.subr.bf16.mxu1 %v7727_v61  ;;  %5902 = vmatprep.subr.bf16.mxu0 %v7730_v30  ;;  %v7788_v61 = vld [vmem:[#allocation14 + $0x27c] ss:$28 sps:$4 sm:$0xff]  }
 0x459   :  { %v7789_v30 = vld [vmem:[#allocation14 + $0x600] ss:$28 sps:$4 sm:$0xff]  }
 0x45b   :  { %5739 = vmatpush1.bf16.msra.mxu1 %v7725_v32  ;;  %5903 = vmatpush1.bf16.msra.mxu0 %v7728_v35  ;;  %v7786_v32 = vld [vmem:[#allocation14 + $0x278] ss:$28 sps:$4 sm:$0xff]   ;;  %v7790_v35 = vld [vmem:[#allocation14 + $0x440] ss:$28 sps:$4 sm:$0xff]  }
 0x45c   :  { %5913 = vmatprep.subr.bf16.mxu1 %v7733_v53  ;;  %7054 = vmatprep.subr.bf16.mxu0 %v7734_v38  ;;  %v7794_v53 = vld [vmem:[#allocation14 + $0x638] ss:$28 sps:$4 sm:$0xff]   ;;  %v7791_v38 = vld [vmem:[#allocation14 + $0x2b0] ss:$28 sps:$4 sm:$0xff]  }
 0x45e   :  { %5741 = vmatmul.mubr.bf16.vlgmr.msra.gmra.mrb[8].mxu1 %v8544_v41  ;;  %5905 = vmatmul.mubr.bf16.vlgmr.msra.gmra.mrb[20].mxu0 %v8544_v41 }
 0x45f   :  { %5914 = vmatpush1.bf16.msra.mxu1 %v7731_v39  ;;  %5945 = vmatprep.mubr.bf16.mxu1 %v8496_v22  ;;  %v7795_v39 = vld [vmem:[#allocation14 + $0x478] ss:$28 sps:$4 sm:$0xff]  }
 0x460   :  { %7055 = vmatpush3.bf16.msra.mxu0 %v7735_v43  ;;  %6109 = vmatprep.mubr.bf16.mxu0 %v8496_v22  ;;  %v7754_v22 = vld [vmem:[#allocation14 + $0x2b8] ss:$28 sps:$4 sm:$0xff]   ;;  %v7798_v43 = vld [vmem:[#allocation14 + $0x2ec] ss:$28 sps:$4 sm:$0xff]  }
 0x461   :  { %5915 = vmatprep.subr.bf16.mxu1 %v7738_v44  ;;  %7056 = vmatprep.subr.bf16.mxu0 %v7739_v45  ;;  %v7799_v44 = vld [vmem:[#allocation14 + $0x670] ss:$28 sps:$4 sm:$0xff]   ;;  %v7796_v45 = vld [vmem:[#allocation14 + $0x2e8] ss:$28 sps:$4 sm:$0xff]  }
 0x463   :  { %5916 = vmatpush1.bf16.msra.mxu1 %v7736_v46  ;;  %v7800_v46 = vld [vmem:[#allocation14 + $0x4b0] ss:$28 sps:$4 sm:$0xff]  }
 0x464   :  { %7057 = vmatpush3.bf16.msra.mxu0 %v7740_v47  ;;  %5917 = vmatprep.subr.bf16.mxu1 %v7743_v48  ;;  %v7803_v47 = vld [vmem:[#allocation14 + $0x324] ss:$28 sps:$4 sm:$0xff]  }
 0x465   :  { %7058 = vmatprep.subr.bf16.mxu0 %v7744_v50  ;;  %v7804_v48 = vld [vmem:[#allocation14 + $0x6a8] ss:$28 sps:$4 sm:$0xff]   ;;  %v7801_v50 = vld [vmem:[#allocation14 + $0x320] ss:$28 sps:$4 sm:$0xff]  }
 0x467   :  { %5918 = vmatpush1.bf16.msra.mxu1 %v7741_v54  ;;  %v7805_v54 = vld [vmem:[#allocation14 + $0x4e8] ss:$28 sps:$4 sm:$0xff]  }
 0x468   :  { %7059 = vmatpush3.bf16.msra.mxu0 %v7745_v55  ;;  %5919 = vmatprep.subr.bf16.mxu1 %v7748_v56  ;;  %v7808_v55 = vld [vmem:[#allocation14 + $0x35c] ss:$28 sps:$4 sm:$0xff]  }
 0x469   :  { %7060 = vmatprep.subr.bf16.mxu0 %v7749_v57  ;;  %v7809_v56 = vld [vmem:[#allocation14 + $0x6e0] ss:$28 sps:$4 sm:$0xff]   ;;  %v7806_v57 = vld [vmem:[#allocation14 + $0x358] ss:$28 sps:$4 sm:$0xff]  }
 0x46b   :  { %5920 = vmatpush1.bf16.msra.mxu1 %v7746_v58  ;;  %v7810_v58 = vld [vmem:[#allocation14 + $0x520] ss:$28 sps:$4 sm:$0xff]  }
 0x46c   :  { %7061 = vmatpush3.bf16.msra.mxu0 %v7750_v4  ;;  %5921 = vmatprep.subr.bf16.mxu1 %v7753_v59  ;;  %v7813_v4 = vld [vmem:[#allocation14 + $0x394] ss:$28 sps:$4 sm:$0xff]  }
 0x46d   :  { %7062 = vmatprep.subr.bf16.mxu0 %v7754_v22  ;;  %v7814_v59 = vld [vmem:[#allocation14 + $0x8d8] ss:$28 sps:$4 sm:$0xff]   ;;  %v7811_v22 = vld [vmem:[#allocation14 + $0x390] ss:$28 sps:$4 sm:$0xff]  }
 0x46f   :  { %5922 = vmatpush1.bf16.msra.mxu1 %v7751_v60  ;;  %v7815_v60 = vld [vmem:[#allocation14 + $0x718] ss:$28 sps:$4 sm:$0xff]  }
 0x470   :  { %7063 = vmatpush3.bf16.msra.mxu0 %v7755_v62  ;;  %5923 = vmatprep.subr.bf16.mxu1 %v7758_v63  ;;  %v7818_v62 = vld [vmem:[#allocation14 + $0x3cc] ss:$28 sps:$4 sm:$0xff]  }
 0x471   :  { %7064 = vmatprep.subr.bf16.mxu0 %v7759_v0  ;;  %v7819_v63 = vld [vmem:[#allocation14 + $0x910] ss:$28 sps:$4 sm:$0xff]   ;;  %v7816_v0 = vld [vmem:[#allocation14 + $0x3c8] ss:$28 sps:$4 sm:$0xff]  }
 0x473   :  { %5924 = vmatpush1.bf16.msra.mxu1 %v7756_v1  ;;  %v7820_v1 = vld [vmem:[#allocation14 + $0x750] ss:$28 sps:$4 sm:$0xff]  }
 0x474   :  { %7065 = vmatpush3.bf16.msra.mxu0 %v7760_v3  ;;  %5925 = vmatprep.subr.bf16.mxu1 %v7763_v6  ;;  %v7823_v3 = vld [vmem:[#allocation14 + $0x404] ss:$28 sps:$4 sm:$0xff]  }
 0x475   :  { %7066 = vmatprep.subr.bf16.mxu0 %v7764_v31  ;;  %v7824_v6 = vld [vmem:[#allocation14 + $0x948] ss:$28 sps:$4 sm:$0xff]   ;;  %v7821_v31 = vld [vmem:[#allocation14 + $0x400] ss:$28 sps:$4 sm:$0xff]  }
 0x477   :  { %5926 = vmatpush1.bf16.msra.mxu1 %v7761_v5  ;;  %v7828_v5 = vld [vmem:[#allocation14 + $0x43c] ss:$28 sps:$4 sm:$0xff]  }
 0x478   :  { %7067 = vmatpush3.bf16.msra.mxu0 %v7765_v7  ;;  %5927 = vmatprep.subr.bf16.mxu1 %v7768_v8  ;;  %v7829_v7 = vld [vmem:[#allocation14 + $0x980] ss:$28 sps:$4 sm:$0xff]   ;;  %v7826_v8 = vld [vmem:[#allocation14 + $0x438] ss:$28 sps:$4 sm:$0xff]  }
 0x479   :  { %7068 = vmatprep.subr.bf16.mxu0 %v7769_v10  ;;  %v7833_v10 = vld [vmem:[#allocation14 + $0x474] ss:$28 sps:$4 sm:$0xff]  }
 0x47b   :  { %5928 = vmatpush1.bf16.msra.mxu1 %v7766_v12  ;;  %v7834_v12 = vld [vmem:[#allocation14 + $0x9b8] ss:$28 sps:$4 sm:$0xff]  }
 0x47c   :  { %7069 = vmatpush3.bf16.msra.mxu0 %v7770_v29  ;;  %5929 = vmatprep.subr.bf16.mxu1 %v7773_v18  ;;  %v7831_v29 = vld [vmem:[#allocation14 + $0x470] ss:$28 sps:$4 sm:$0xff]   ;;  %v7835_v18 = vld [vmem:[#allocation14 + $0x7f8] ss:$28 sps:$4 sm:$0xff]  }
 0x47d   :  { %7076 = vmatprep.subr.bf16.mxu0 %v7774_v21  ;;  %v7838_v21 = vld [vmem:[#allocation14 + $0x4ac] ss:$28 sps:$4 sm:$0xff]  }
 0x47f   :  { %6110 = vmatmul.mubr.bf16.vlgmr.msra.gmra.mrb[24].mxu0 %v8498_v25  ;;  %5930 = vmatpush1.bf16.msra.mxu1 %v7771_v23  ;;  %v7839_v23 = vld [vmem:[#allocation14 + $0x9f0] ss:$28 sps:$4 sm:$0xff]  }
 0x480   :  { %7077 = vmatpush3.bf16.msra.mxu0 %v7775_v24  ;;  %6149 = vmatprep.mubr.bf16.mxu0 %v8502_v13  ;;  %v7836_v24 = vld [vmem:[#allocation14 + $0x4a8] ss:$28 sps:$4 sm:$0xff]  }
 0x481   :  { %5931 = vmatprep.subr.bf16.mxu1 %v7778_v26  ;;  %7078 = vmatprep.subr.bf16.mxu0 %v7779_v27  ;;  %v7840_v26 = vld [vmem:[#allocation14 + $0x830] ss:$28 sps:$4 sm:$0xff]   ;;  %v7843_v27 = vld [vmem:[#allocation14 + $0x4e4] ss:$28 sps:$4 sm:$0xff]  }
 0x483   :  { %5932 = vmatpush1.bf16.msra.mxu1 %v7776_v14  ;;  %v7844_v14 = vld [vmem:[#allocation14 + $0xa28] ss:$28 sps:$4 sm:$0xff]  }
 0x484   :  { %7079 = vmatpush3.bf16.msra.mxu0 %v7780_v15  ;;  %5933 = vmatprep.subr.bf16.mxu1 %v7783_v17  ;;  %v7841_v15 = vld [vmem:[#allocation14 + $0x4e0] ss:$28 sps:$4 sm:$0xff]   ;;  %v7845_v17 = vld [vmem:[#allocation14 + $0x868] ss:$28 sps:$4 sm:$0xff]  }
 0x485   :  { %7080 = vmatprep.subr.bf16.mxu0 %v7784_v19  ;;  %v7848_v19 = vld [vmem:[#allocation14 + $0x51c] ss:$28 sps:$4 sm:$0xff]  }
 0x487   :  { %5934 = vmatpush1.bf16.msra.mxu1 %v7781_v20  ;;  %v7849_v20 = vld [vmem:[#allocation14 + $0xa60] ss:$28 sps:$4 sm:$0xff]  }
 0x488   :  { %7081 = vmatpush3.bf16.msra.mxu0 %v7785_v28  ;;  %5935 = vmatprep.subr.bf16.mxu1 %v7788_v61  ;;  %v7846_v28 = vld [vmem:[#allocation14 + $0x518] ss:$28 sps:$4 sm:$0xff]   ;;  %v7850_v61 = vld [vmem:[#allocation14 + $0x8a0] ss:$28 sps:$4 sm:$0xff]  }
 0x489   :  { %7082 = vmatprep.subr.bf16.mxu0 %v7789_v30  ;;  %v7853_v30 = vld [vmem:[#allocation14 + $0x554] ss:$28 sps:$4 sm:$0xff]  }
 0x48b   :  { %5936 = vmatpush1.bf16.msra.mxu1 %v7786_v32  ;;  %v7854_v32 = vld [vmem:[#allocation14 + $0xc58] ss:$28 sps:$4 sm:$0xff]  }
 0x48c   :  { %7083 = vmatpush3.bf16.msra.mxu0 %v7790_v35  ;;  %5937 = vmatprep.subr.bf16.mxu1 %v7793_v36  ;;  %v7851_v35 = vld [vmem:[#allocation14 + $0x550] ss:$28 sps:$4 sm:$0xff]   ;;  %v7855_v36 = vld [vmem:[#allocation14 + $0xa98] ss:$28 sps:$4 sm:$0xff]  }
 0x48d   :  { %7084 = vmatprep.subr.bf16.mxu0 %v7794_v53  ;;  %v7858_v53 = vld [vmem:[#allocation14 + $0x58c] ss:$28 sps:$4 sm:$0xff]  }
 0x48f   :  { %5938 = vmatpush1.bf16.msra.mxu1 %v7791_v38  ;;  %v7859_v38 = vld [vmem:[#allocation14 + $0xc90] ss:$28 sps:$4 sm:$0xff]  }
 0x490   :  { %7085 = vmatpush3.bf16.msra.mxu0 %v7795_v39  ;;  %5939 = vmatprep.subr.bf16.mxu1 %v7798_v43  ;;  %v7856_v39 = vld [vmem:[#allocation14 + $0x588] ss:$28 sps:$4 sm:$0xff]   ;;  %v7860_v43 = vld [vmem:[#allocation14 + $0xad0] ss:$28 sps:$4 sm:$0xff]  }
 0x491   :  { %7086 = vmatprep.subr.bf16.mxu0 %v7799_v44  ;;  %v7863_v44 = vld [vmem:[#allocation14 + $0x5c4] ss:$28 sps:$4 sm:$0xff]  }
 0x493   :  { %5940 = vmatpush1.bf16.msra.mxu1 %v7796_v45  ;;  %v7864_v45 = vld [vmem:[#allocation14 + $0xcc8] ss:$28 sps:$4 sm:$0xff]  }
 0x494   :  { %7087 = vmatpush3.bf16.msra.mxu0 %v7800_v46  ;;  %5941 = vmatprep.subr.bf16.mxu1 %v7803_v47  ;;  %v7861_v46 = vld [vmem:[#allocation14 + $0x5c0] ss:$28 sps:$4 sm:$0xff]   ;;  %v7865_v47 = vld [vmem:[#allocation14 + $0xb08] ss:$28 sps:$4 sm:$0xff]  }
 0x495   :  { %7088 = vmatprep.subr.bf16.mxu0 %v7804_v48  ;;  %v7868_v48 = vld [vmem:[#allocation14 + $0x5fc] ss:$28 sps:$4 sm:$0xff]  }
 0x497   :  { %5942 = vmatpush1.bf16.msra.mxu1 %v7801_v50  ;;  %v7869_v50 = vld [vmem:[#allocation14 + $0xd00] ss:$28 sps:$4 sm:$0xff]  }
 0x498   :  { %7089 = vmatpush3.bf16.msra.mxu0 %v7805_v54  ;;  %5943 = vmatprep.subr.bf16.mxu1 %v7808_v55  ;;  %v7866_v54 = vld [vmem:[#allocation14 + $0x5f8] ss:$28 sps:$4 sm:$0xff]   ;;  %v7870_v55 = vld [vmem:[#allocation14 + $0xb40] ss:$28 sps:$4 sm:$0xff]  }
 0x499   :  { %7090 = vmatprep.subr.bf16.mxu0 %v7809_v56  ;;  %v7873_v56 = vld [vmem:[#allocation14 + $0x634] ss:$28 sps:$4 sm:$0xff]  }
 0x49b   :  { %5944 = vmatpush1.bf16.msra.mxu1 %v7806_v57  ;;  %v7874_v57 = vld [vmem:[#allocation14 + $0xd38] ss:$28 sps:$4 sm:$0xff]  }
 0x49c   :  { %7091 = vmatpush3.bf16.msra.mxu0 %v7810_v58  ;;  %5954 = vmatprep.subr.bf16.mxu1 %v7813_v4  ;;  %v7871_v58 = vld [vmem:[#allocation14 + $0x630] ss:$28 sps:$4 sm:$0xff]   ;;  %v7875_v4 = vld [vmem:[#allocation14 + $0xb78] ss:$28 sps:$4 sm:$0xff]  }
 0x49d   :  { %7098 = vmatprep.subr.bf16.mxu0 %v7814_v59  ;;  %v7878_v59 = vld [vmem:[#allocation14 + $0x66c] ss:$28 sps:$4 sm:$0xff]  }
 0x49e   :  { %5946 = vmatmul.mubr.bf16.vlgmr.msra.gmra.mrb[12].mxu1 %v8498_v25  ;;  %v7825_v25 = vld [vmem:[#allocation14 + $0x788] ss:$28 sps:$4 sm:$0xff]  }
 0x49f   :  { %6150 = vmatmul.mubr.bf16.vlgmr.msra.gmra.mrb[28].mxu0 %v8511_v37  ;;  %5955 = vmatpush1.bf16.msra.mxu1 %v7811_v22  ;;  %v7879_v22 = vld [vmem:[#allocation14 + $0xd70] ss:$28 sps:$4 sm:$0xff]  }
 0x4a0   :  { %5986 = vmatprep.mubr.bf16.mxu1 %v8502_v13  ;;  %7099 = vmatpush3.bf16.msra.mxu0 %v7815_v60  ;;  %v7830_v13 = vld [vmem:[#allocation14 + $0x7c0] ss:$28 sps:$4 sm:$0xff]   ;;  %v7876_v60 = vld [vmem:[#allocation14 + $0x668] ss:$28 sps:$4 sm:$0xff]  }
 0x4a1   :  { %6189 = vmatprep.mubr.bf16.mxu0 %v8527_v11  ;;  %5956 = vmatprep.subr.bf16.mxu1 %v7818_v62  ;;  %v7880_v62 = vld [vmem:[#allocation14 + $0xbb0] ss:$28 sps:$4 sm:$0xff]  }
 0x4a2   :  { %7100 = vmatprep.subr.bf16.mxu0 %v7819_v63  ;;  %v7883_v63 = vld [vmem:[#allocation14 + $0x6a4] ss:$28 sps:$4 sm:$0xff]  }
 0x4a3   :  { %5957 = vmatpush1.bf16.msra.mxu1 %v7816_v0  ;;  %v7884_v0 = vld [vmem:[#allocation14 + $0xda8] ss:$28 sps:$4 sm:$0xff]  }
 0x4a4   :  { %7101 = vmatpush3.bf16.msra.mxu0 %v7820_v1  ;;  %5958 = vmatprep.subr.bf16.mxu1 %v7823_v3  ;;  %v7881_v1 = vld [vmem:[#allocation14 + $0x6a0] ss:$28 sps:$4 sm:$0xff]   ;;  %v7885_v3 = vld [vmem:[#allocation14 + $0xbe8] ss:$28 sps:$4 sm:$0xff]  }
 0x4a5   :  { %7102 = vmatprep.subr.bf16.mxu0 %v7824_v6  ;;  %v7888_v6 = vld [vmem:[#allocation14 + $0x6dc] ss:$28 sps:$4 sm:$0xff]  }
 0x4a7   :  { %5959 = vmatpush1.bf16.msra.mxu1 %v7821_v31  ;;  %v7889_v31 = vld [vmem:[#allocation14 + $0xde0] ss:$28 sps:$4 sm:$0xff]  }
 0x4a8   :  { %7103 = vmatpush3.bf16.msra.mxu0 %v7825_v25  ;;  %5960 = vmatprep.subr.bf16.mxu1 %v7828_v5  ;;  %v7886_v25 = vld [vmem:[#allocation14 + $0x6d8] ss:$28 sps:$4 sm:$0xff]   ;;  %v7890_v5 = vld [vmem:[#allocation14 + $0xc20] ss:$28 sps:$4 sm:$0xff]  }
 0x4a9   :  { %7104 = vmatprep.subr.bf16.mxu0 %v7829_v7  ;;  %v7893_v7 = vld [vmem:[#allocation14 + $0x714] ss:$28 sps:$4 sm:$0xff]  }
 0x4ab   :  { %5961 = vmatpush1.bf16.msra.mxu1 %v7826_v8  ;;  %v7891_v8 = vld [vmem:[#allocation14 + $0x710] ss:$28 sps:$4 sm:$0xff]  }
 0x4ac   :  { %7105 = vmatpush3.bf16.msra.mxu0 %v7830_v13  ;;  %5962 = vmatprep.subr.bf16.mxu1 %v7833_v10  ;;  %v7896_v13 = vld [vmem:[#allocation14 + $0x74c] ss:$28 sps:$4 sm:$0xff]  }
 0x4ad   :  { %7106 = vmatprep.subr.bf16.mxu0 %v7834_v12  ;;  %v7894_v10 = vld [vmem:[#allocation14 + $0x748] ss:$28 sps:$4 sm:$0xff]  }
 0x4ae   :  { %v7899_v12 = vld [vmem:[#allocation14 + $0x784] ss:$28 sps:$4 sm:$0xff]  }
 0x4af   :  { %5963 = vmatpush1.bf16.msra.mxu1 %v7831_v29  ;;  %v7897_v29 = vld [vmem:[#allocation14 + $0x780] ss:$28 sps:$4 sm:$0xff]  }
 0x4b0   :  { %7107 = vmatpush3.bf16.msra.mxu0 %v7835_v18  ;;  %5964 = vmatprep.subr.bf16.mxu1 %v7838_v21  ;;  %v7902_v18 = vld [vmem:[#allocation14 + $0x7bc] ss:$28 sps:$4 sm:$0xff]  }
 0x4b1   :  { %7108 = vmatprep.subr.bf16.mxu0 %v7839_v23  ;;  %v7900_v21 = vld [vmem:[#allocation14 + $0x7b8] ss:$28 sps:$4 sm:$0xff]  }
 0x4b2   :  { %v7905_v23 = vld [vmem:[#allocation14 + $0x7f4] ss:$28 sps:$4 sm:$0xff]  }
 0x4b3   :  { %5965 = vmatpush1.bf16.msra.mxu1 %v7836_v24  ;;  %v7903_v24 = vld [vmem:[#allocation14 + $0x7f0] ss:$28 sps:$4 sm:$0xff]  }
 0x4b4   :  { %7109 = vmatpush3.bf16.msra.mxu0 %v7840_v26  ;;  %5966 = vmatprep.subr.bf16.mxu1 %v7843_v27  ;;  %v7906_v26 = vld [vmem:[#allocation14 + $0x828] ss:$28 sps:$4 sm:$0xff]  }
 0x4b5   :  { %7110 = vmatprep.subr.bf16.mxu0 %v7844_v14  ;;  %v7911_v27 = vld [vmem:[#allocation14 + $0x864] ss:$28 sps:$4 sm:$0xff]   ;;  %v7914_v14 = vld [vmem:[#allocation14 + $0x89c] ss:$28 sps:$4 sm:$0xff]  }
 0x4b7   :  { %5967 = vmatpush1.bf16.msra.mxu1 %v7841_v15  ;;  %v7912_v15 = vld [vmem:[#allocation14 + $0x898] ss:$28 sps:$4 sm:$0xff]  }
 0x4b8   :  { %7111 = vmatpush3.bf16.msra.mxu0 %v7845_v17  ;;  %5968 = vmatprep.subr.bf16.mxu1 %v7848_v19  ;;  %v7917_v17 = vld [vmem:[#allocation14 + $0x8d4] ss:$28 sps:$4 sm:$0xff]  }
 0x4b9   :  { %7112 = vmatprep.subr.bf16.mxu0 %v7849_v20  ;;  %v7915_v19 = vld [vmem:[#allocation14 + $0x8d0] ss:$28 sps:$4 sm:$0xff]  }
 0x4ba   :  { %v7920_v20 = vld [vmem:[#allocation14 + $0x90c] ss:$28 sps:$4 sm:$0xff]  }
 0x4bb   :  { %5969 = vmatpush1.bf16.msra.mxu1 %v7846_v28  ;;  %v7918_v28 = vld [vmem:[#allocation14 + $0x908] ss:$28 sps:$4 sm:$0xff]  }
 0x4bc   :  { %7113 = vmatpush3.bf16.msra.mxu0 %v7850_v61  ;;  %5970 = vmatprep.subr.bf16.mxu1 %v7853_v30  ;;  %v7923_v61 = vld [vmem:[#allocation14 + $0x944] ss:$28 sps:$4 sm:$0xff]  }
 0x4bd   :  { %7120 = vmatprep.subr.bf16.mxu0 %v7854_v32  ;;  %v7921_v30 = vld [vmem:[#allocation14 + $0x940] ss:$28 sps:$4 sm:$0xff]  }
 0x4be   :  { %v7926_v32 = vld [vmem:[#allocation14 + $0x97c] ss:$28 sps:$4 sm:$0xff]  }
 0x4bf   :  { %6190 = vmatmul.mubr.bf16.vlgmr.msra.gmra.mrb[32].mxu0 %v8529_v16  ;;  %5971 = vmatpush1.bf16.msra.mxu1 %v7851_v35  ;;  %v7924_v35 = vld [vmem:[#allocation14 + $0x978] ss:$28 sps:$4 sm:$0xff]  }
 0x4c0   :  { %7121 = vmatpush3.bf16.msra.mxu0 %v7855_v36  ;;  %6229 = vmatprep.mubr.bf16.mxu0 %v8533_v51  ;;  %v7929_v36 = vld [vmem:[#allocation14 + $0x9b4] ss:$28 sps:$4 sm:$0xff]  }
 0x4c1   :  { %5972 = vmatprep.subr.bf16.mxu1 %v7858_v53  ;;  %7122 = vmatprep.subr.bf16.mxu0 %v7859_v38  ;;  %v7927_v53 = vld [vmem:[#allocation14 + $0x9b0] ss:$28 sps:$4 sm:$0xff]  }
 0x4c2   :  { %v7932_v38 = vld [vmem:[#allocation14 + $0x9ec] ss:$28 sps:$4 sm:$0xff]  }
 0x4c3   :  { %5973 = vmatpush1.bf16.msra.mxu1 %v7856_v39  ;;  %v7930_v39 = vld [vmem:[#allocation14 + $0x9e8] ss:$28 sps:$4 sm:$0xff]  }
 0x4c4   :  { %7123 = vmatpush3.bf16.msra.mxu0 %v7860_v43  ;;  %5974 = vmatprep.subr.bf16.mxu1 %v7863_v44  ;;  %v7935_v43 = vld [vmem:[#allocation14 + $0xa24] ss:$28 sps:$4 sm:$0xff]  }
 0x4c5   :  { %7124 = vmatprep.subr.bf16.mxu0 %v7864_v45  ;;  %v7933_v44 = vld [vmem:[#allocation14 + $0xa20] ss:$28 sps:$4 sm:$0xff]  }
 0x4c6   :  { %v7938_v45 = vld [vmem:[#allocation14 + $0xa5c] ss:$28 sps:$4 sm:$0xff]  }
 0x4c7   :  { %5975 = vmatpush1.bf16.msra.mxu1 %v7861_v46  ;;  %v7936_v46 = vld [vmem:[#allocation14 + $0xa58] ss:$28 sps:$4 sm:$0xff]  }
 0x4c8   :  { %7125 = vmatpush3.bf16.msra.mxu0 %v7865_v47  ;;  %5976 = vmatprep.subr.bf16.mxu1 %v7868_v48  ;;  %v7941_v47 = vld [vmem:[#allocation14 + $0xa94] ss:$28 sps:$4 sm:$0xff]  }
 0x4c9   :  { %7126 = vmatprep.subr.bf16.mxu0 %v7869_v50  ;;  %v7939_v48 = vld [vmem:[#allocation14 + $0xa90] ss:$28 sps:$4 sm:$0xff]  }
 0x4ca   :  { %v7944_v50 = vld [vmem:[#allocation14 + $0xacc] ss:$28 sps:$4 sm:$0xff]  }
 0x4cb   :  { %5977 = vmatpush1.bf16.msra.mxu1 %v7866_v54  ;;  %v7942_v54 = vld [vmem:[#allocation14 + $0xac8] ss:$28 sps:$4 sm:$0xff]  }
 0x4cc   :  { %7127 = vmatpush3.bf16.msra.mxu0 %v7870_v55  ;;  %5978 = vmatprep.subr.bf16.mxu1 %v7873_v56  ;;  %v7947_v55 = vld [vmem:[#allocation14 + $0xb04] ss:$28 sps:$4 sm:$0xff]  }
 0x4cd   :  { %7128 = vmatprep.subr.bf16.mxu0 %v7874_v57  ;;  %v7945_v56 = vld [vmem:[#allocation14 + $0xb00] ss:$28 sps:$4 sm:$0xff]  }
 0x4ce   :  { %v7950_v57 = vld [vmem:[#allocation14 + $0xb3c] ss:$28 sps:$4 sm:$0xff]  }
 0x4cf   :  { %5979 = vmatpush1.bf16.msra.mxu1 %v7871_v58  ;;  %v7948_v58 = vld [vmem:[#allocation14 + $0xb38] ss:$28 sps:$4 sm:$0xff]  }
 0x4d0   :  { %7129 = vmatpush3.bf16.msra.mxu0 %v7875_v4  ;;  %5980 = vmatprep.subr.bf16.mxu1 %v7878_v59  ;;  %v7953_v4 = vld [vmem:[#allocation14 + $0xb74] ss:$28 sps:$4 sm:$0xff]  }
 0x4d1   :  { %7130 = vmatprep.subr.bf16.mxu0 %v7879_v22  ;;  %v7951_v59 = vld [vmem:[#allocation14 + $0xb70] ss:$28 sps:$4 sm:$0xff]   ;;  %v8563_v22 = vld [vmem:[#allocation16] sm:$0xff] }
 0x4d3   :  { %5981 = vmatpush1.bf16.msra.mxu1 %v7876_v60  ;;  %v3257_v60 = vrot.slane %v8563_v22, %v8461_v49 }
 0x4d4   :  { %7131 = vmatpush3.bf16.msra.mxu0 %v7880_v62  ;;  %5982 = vmatprep.subr.bf16.mxu1 %v7883_v63  ;;  %v3253_v62 = vrot.slane %v8563_v22, %v8416_v42  ;;  %v3261_v63 = vrot.slane %v8563_v22, %v8464_v52  ;;  %v7962_v52 = vld [vmem:[#allocation14 + $0xc1c] ss:$28 sps:$4 sm:$0xff]  }
 0x4d5   :  { %7132 = vmatprep.subr.bf16.mxu0 %v7884_v0  ;;  %v7954_v0 = vld [vmem:[#allocation14 + $0xba8] ss:$28 sps:$4 sm:$0xff]  }
 0x4d7   :  { %5983 = vmatpush1.bf16.msra.mxu1 %v7881_v1  ;;  %v7959_v1 = vld [vmem:[#allocation14 + $0xbe4] ss:$28 sps:$4 sm:$0xff]  }
 0x4d8   :  { %7133 = vmatpush3.bf16.msra.mxu0 %v7885_v3  ;;  %5984 = vmatprep.subr.bf16.mxu1 %v7888_v6 }
 0x4d9   :  { %7134 = vmatprep.subr.bf16.mxu0 %v7889_v31 }
 0x4db   :  { %5985 = vmatpush1.bf16.msra.mxu1 %v7886_v25 }
 0x4dc   :  { %7135 = vmatpush3.bf16.msra.mxu0 %v7890_v5  ;;  %5995 = vmatprep.subr.bf16.mxu1 %v7893_v7 }
 0x4de   :  { %5987 = vmatmul.mubr.bf16.vlgmr.msra.gmra.mrb[12].mxu1 %v8511_v37  ;;  %v7908_v37 = vld [vmem:[#allocation14 + $0x82c] ss:$28 sps:$4 sm:$0xff]  }
 0x4df   :  { %6230 = vmatmul.mubr.bf16.vlgmr.msra.gmra.mrb[36].mxu0 %v8544_v41  ;;  %5996 = vmatpush1.bf16.msra.mxu1 %v7891_v8 }
 0x4e0   :  { %6027 = vmatprep.mubr.bf16.mxu1 %v8527_v11  ;;  %5997 = vmatprep.subr.bf16.mxu1 %v7896_v13  ;;  %v7909_v11 = vld [vmem:[#allocation14 + $0x860] ss:$28 sps:$4 sm:$0xff]  }
 0x4e3   :  { %5998 = vmatpush1.bf16.msra.mxu1 %v7894_v10  ;;  %v7957_v10 = vld [vmem:[#allocation14 + $0xbe0] ss:$28 sps:$4 sm:$0xff]  }
 0x4e4   :  { %5999 = vmatprep.subr.bf16.mxu1 %v7899_v12 }
 0x4e7   :  { %6000 = vmatpush1.bf16.msra.mxu1 %v7897_v29  ;;  %v7960_v29 = vld [vmem:[#allocation14 + $0xc18] ss:$28 sps:$4 sm:$0xff]  }
 0x4e8   :  { %6001 = vmatprep.subr.bf16.mxu1 %v7902_v18  ;;  %v7965_v18 = vld [vmem:[#allocation14 + $0xc54] ss:$28 sps:$4 sm:$0xff]  }
 0x4eb   :  { %6002 = vmatpush1.bf16.msra.mxu1 %v7900_v21  ;;  %v7963_v21 = vld [vmem:[#allocation14 + $0xc50] ss:$28 sps:$4 sm:$0xff]  }
 0x4ec   :  { %6003 = vmatprep.subr.bf16.mxu1 %v7905_v23  ;;  %v7968_v23 = vld [vmem:[#allocation14 + $0xc8c] ss:$28 sps:$4 sm:$0xff]  }
 0x4ef   :  { %6004 = vmatpush1.bf16.msra.mxu1 %v7903_v24 }
 0x4f0   :  { %6005 = vmatprep.subr.bf16.mxu1 %v7908_v37 }
 0x4f3   :  { %6006 = vmatpush1.bf16.msra.mxu1 %v7906_v26  ;;  %v7966_v26 = vld [vmem:[#allocation14 + $0xc88] ss:$28 sps:$4 sm:$0xff]  }
 0x4f4   :  { %6007 = vmatprep.subr.bf16.mxu1 %v7911_v27 }
 0x4f7   :  { %6008 = vmatpush1.bf16.msra.mxu1 %v7909_v11  ;;  %v7971_v11 = vld [vmem:[#allocation14 + $0xcc4] ss:$28 sps:$4 sm:$0xff]  }
 0x4f8   :  { %6009 = vmatprep.subr.bf16.mxu1 %v7914_v14 }
 0x4fb   :  { %6010 = vmatpush1.bf16.msra.mxu1 %v7912_v15  ;;  %v7969_v15 = vld [vmem:[#allocation14 + $0xcc0] ss:$28 sps:$4 sm:$0xff]  }
 0x4fc   :  { %6011 = vmatprep.subr.bf16.mxu1 %v7917_v17  ;;  %v7974_v17 = vld [vmem:[#allocation14 + $0xcfc] ss:$28 sps:$4 sm:$0xff]  }
 0x4ff   :  { %6012 = vmatpush1.bf16.msra.mxu1 %v7915_v19  ;;  %v7972_v19 = vld [vmem:[#allocation14 + $0xcf8] ss:$28 sps:$4 sm:$0xff]  }
 0x500   :  { %6013 = vmatprep.subr.bf16.mxu1 %v7920_v20  ;;  %v7977_v20 = vld [vmem:[#allocation14 + $0xd34] ss:$28 sps:$4 sm:$0xff]  }
 0x503   :  { %6014 = vmatpush1.bf16.msra.mxu1 %v7918_v28  ;;  %v7975_v28 = vld [vmem:[#allocation14 + $0xd30] ss:$28 sps:$4 sm:$0xff]  }
 0x504   :  { %6015 = vmatprep.subr.bf16.mxu1 %v7923_v61  ;;  %v7980_v61 = vld [vmem:[#allocation14 + $0xd6c] ss:$28 sps:$4 sm:$0xff]  }
 0x507   :  { %6016 = vmatpush1.bf16.msra.mxu1 %v7921_v30  ;;  %v7978_v30 = vld [vmem:[#allocation14 + $0xd68] ss:$28 sps:$4 sm:$0xff]  }
 0x508   :  { %6017 = vmatprep.subr.bf16.mxu1 %v7926_v32  ;;  %v7983_v32 = vld [vmem:[#allocation14 + $0xda4] ss:$28 sps:$4 sm:$0xff]  }
 0x50b   :  { %6018 = vmatpush1.bf16.msra.mxu1 %v7924_v35 }
 0x50c   :  { %6019 = vmatprep.subr.bf16.mxu1 %v7929_v36 }
 0x50f   :  { %6020 = vmatpush1.bf16.msra.mxu1 %v7927_v53  ;;  %v7981_v53 = vld [vmem:[#allocation14 + $0xda0] ss:$28 sps:$4 sm:$0xff]  }
 0x510   :  { %6021 = vmatprep.subr.bf16.mxu1 %v7932_v38 }
 0x513   :  { %6022 = vmatpush1.bf16.msra.mxu1 %v7930_v39 }
 0x514   :  { %6023 = vmatprep.subr.bf16.mxu1 %v7935_v43  ;;  %v7986_v43 = vld [vmem:[#allocation14 + $0xddc] ss:$28 sps:$4 sm:$0xff]  }
 0x517   :  { %6024 = vmatpush1.bf16.msra.mxu1 %v7933_v44 }
 0x518   :  { %6025 = vmatprep.subr.bf16.mxu1 %v7938_v45  ;;  %v7984_v45 = vld [vmem:[#allocation14 + $0xdd8] ss:$28 sps:$4 sm:$0xff]  }
 0x51b   :  { %6026 = vmatpush1.bf16.msra.mxu1 %v7936_v46  ;;  %v3273_v46 = vrot.slane %v8563_v22, %v1086_v9 }
 0x51c   :  { %6036 = vmatprep.subr.bf16.mxu1 %v7941_v47 }
 0x51e   :  { %6028 = vmatmul.mubr.bf16.vlgmr.msra.gmra.mrb[12].mxu1 %v8529_v16  ;;  %v7956_v16 = vld [vmem:[#allocation14 + $0xbac] ss:$28 sps:$4 sm:$0xff]  }
 0x51f   :  { %6037 = vmatpush1.bf16.msra.mxu1 %v7939_v48  ;;  %6068 = vmatprep.mubr.bf16.mxu1 %v8533_v51  ;;  %v3249_v51 = vrot.slane %v8563_v22, %v8413_v40 }
 0x520   :  { %6038 = vmatprep.subr.bf16.mxu1 %v7944_v50 }
 0x523   :  { %6039 = vmatpush1.bf16.msra.mxu1 %v7942_v54 }
 0x524   :  { %6040 = vmatprep.subr.bf16.mxu1 %v7947_v55 }
 0x527   :  { %6041 = vmatpush1.bf16.msra.mxu1 %v7945_v56 }
 0x528   :  { %6042 = vmatprep.subr.bf16.mxu1 %v7950_v57 }
 0x52b   :  { %6043 = vmatpush1.bf16.msra.mxu1 %v7948_v58 }
 0x52c   :  { %6044 = vmatprep.subr.bf16.mxu1 %v7953_v4 }
 0x52f   :  { %6045 = vmatpush1.bf16.msra.mxu1 %v7951_v59 }
 0x530   :  { %6046 = vmatprep.subr.bf16.mxu1 %v7956_v16 }
 0x531   :  { %v5742_v3 = vpop.f32.mrb[8].mxu1  ;;  %v5906_v6 = vpop.f32.mrb[20].mxu0 }
 0x532   :  { %v7150_v31 = vadd.f32 %v5742_v3, %v3249_v51  ;;  %v7152_v25 = vadd.f32 %v5906_v6, %v3257_v60  ;;  %v5744_v5 = vpop.f32.mrb[9].mxu1  ;;  %v5908_v7 = vpop.f32.mrb[21].mxu0  ;;  %v3265_v6 = vrot.slane %v8563_v22, %v1078_v2 }
 0x533   :  { %v7151_v40 = vadd.f32 %v5744_v5, %v3253_v62  ;;  %v7153_v8 = vadd.f32 %v5908_v7, %v3261_v63  ;;  %v5746_v13 = vpop.f32.mrb[10].mxu1  ;;  %v5910_v49 = vpop.f32.mrb[22].mxu0  ;;  %6047 = vmatpush1.bf16.msra.mxu1 %v7954_v0 }
 0x534   :  { %7987 = vtanh.f32 %v7150_v31  ;;  %v5747_v42 = vpop.f32.mrb[11].mxu1  ;;  %v5911_v12 = vpop.f32.mrb[23].mxu0  ;;  %6048 = vmatprep.subr.bf16.mxu1 %v7959_v1  ;;  %v3269_v31 = vrot.slane %v8563_v22, %v1082_v33 }
 0x535   :  { %7989 = vtanh.f32 %v7152_v25 }
 0x536   :  { %7991 = vtanh.f32 %v7151_v40 }
 0x537   :  { %7993 = vtanh.f32 %v7153_v8  ;;  %6049 = vmatpush1.bf16.msra.mxu1 %v7957_v10 }
 0x538   :  { %6050 = vmatprep.subr.bf16.mxu1 %v7962_v52 }
 0x53b   :  { %6051 = vmatpush1.bf16.msra.mxu1 %v7960_v29 }
 0x53c   :  { %6052 = vmatprep.subr.bf16.mxu1 %v7965_v18 }
 0x53e   :  { %v7988_v24 = vpop.eup %7987 }
 0x53f   :  { %v7990_v37 = vpop.eup %7989  ;;  %6244 = vst [vmem:[#allocation17] sm:$0xff] %v7988_v24  ;;  %6053 = vmatpush1.bf16.msra.mxu1 %v7963_v21 }
 0x540   :  { %v7992_v27 = vpop.eup %7991  ;;  %6246 = vst [vmem:[#allocation17 + $0x10] sm:$0xff] %v7990_v37  ;;  %6054 = vmatprep.subr.bf16.mxu1 %v7968_v23 }
 0x541   :  { %v7994_v14 = vpop.eup %7993  ;;  %6245 = vst [vmem:[#allocation17 + $0x8] sm:$0xff] %v7992_v27 }
 0x542   :  { %6247 = vst [vmem:[#allocation17 + $0x18] sm:$0xff] %v7994_v14 }
 0x543   :  { %6055 = vmatpush1.bf16.msra.mxu1 %v7966_v26 }
 0x544   :  { %6056 = vmatprep.subr.bf16.mxu1 %v7971_v11 }
 0x547   :  { %6057 = vmatpush1.bf16.msra.mxu1 %v7969_v15 }
 0x548   :  { %6058 = vmatprep.subr.bf16.mxu1 %v7974_v17 }
 0x54b   :  { %6059 = vmatpush1.bf16.msra.mxu1 %v7972_v19 }
 0x54c   :  { %6060 = vmatprep.subr.bf16.mxu1 %v7977_v20 }
 0x54f   :  { %6061 = vmatpush1.bf16.msra.mxu1 %v7975_v28 }
 0x550   :  { %6062 = vmatprep.subr.bf16.mxu1 %v7980_v61 }
 0x552   :  { %v7070_v35 = vpop.f32.mrb[24].mxu0 }
 0x553   :  { %v7071_v36 = vpop.f32.mrb[25].mxu0  ;;  %6063 = vmatpush1.bf16.msra.mxu1 %v7978_v30 }
 0x554   :  { %v7072_v38 = vadd.f32 %v7071_v36, %v7070_v35  ;;  %v7073_v39 = vpop.f32.mrb[26].mxu0  ;;  %6064 = vmatprep.subr.bf16.mxu1 %v7983_v32 }
 0x555   :  { %v7074_v44 = vpop.f32.mrb[27].mxu0 }
 0x556   :  { %v6112_v50 = vadd.f32 %v7072_v38, %v3273_v46 }
 0x557   :  { %6065 = vmatpush1.bf16.msra.mxu1 %v7981_v53 }
 0x558   :  { %6066 = vmatprep.subr.bf16.mxu1 %v7986_v43 }
 0x55b   :  { %6067 = vmatpush1.bf16.msra.mxu1 %v7984_v45 }
 0x55e   :  { %6069 = vmatmul.mubr.bf16.vlgmr.msra.gmra.mrb[12].mxu1 %v8544_v41 }
 0x572   :  { %v7092_v47 = vpop.f32.mrb[28].mxu0 }
 0x573   :  { %v7093_v48 = vpop.f32.mrb[29].mxu0 }
 0x574   :  { %v7094_v54 = vadd.f32 %v7093_v48, %v7092_v47  ;;  %v7095_v55 = vpop.f32.mrb[30].mxu0 }
 0x575   :  { %v7096_v56 = vpop.f32.mrb[31].mxu0 }
 0x576   :  { %v6152_v57 = vadd.f32 %v7094_v54, %v6112_v50 }
 0x592   :  { %v7114_v58 = vpop.f32.mrb[32].mxu0 }
 0x593   :  { %v7115_v4 = vpop.f32.mrb[33].mxu0 }
 0x594   :  { %v7116_v59 = vadd.f32 %v7115_v4, %v7114_v58  ;;  %v7117_v16 = vpop.f32.mrb[34].mxu0 }
 0x595   :  { %v7118_v51 = vpop.f32.mrb[35].mxu0 }
 0x596   :  { %v6192_v60 = vadd.f32 %v7116_v59, %v6152_v57 }
 0x5b2   :  { %v7136_v62 = vpop.f32.mrb[36].mxu0 }
 0x5b3   :  { %v7137_v63 = vpop.f32.mrb[37].mxu0 }
 0x5b4   :  { %v7138_v41 = vadd.f32 %v7137_v63, %v7136_v62  ;;  %v7139_v0 = vpop.f32.mrb[38].mxu0 }
 0x5b5   :  { %v7140_v1 = vpop.f32.mrb[39].mxu0 }
 0x5b6   :  { %v6232_v3 = vadd.f32 %v7138_v41, %v6192_v60 }
 0x5b8   :  { %7995 = vtanh.f32 %v6232_v3 }
 0x5c2   :  { %v7996_v9 = vpop.eup %7995 }
 0x5c3   :  { %6250 = vst [vmem:[#allocation17 + $0x30] sm:$0xff] %v7996_v9 }
 0x631   :  { %v6070_v25 = vpop.f32.mrb[12].mxu1 }
 0x632   :  { %v7154_v5 = vadd.f32 %v6070_v25, %v3265_v6  ;;  %v6072_v7 = vpop.f32.mrb[13].mxu1 }
 0x633   :  { %v7155_v40 = vadd.f32 %v6072_v7, %v3269_v31  ;;  %v6074_v8 = vpop.f32.mrb[14].mxu1 }
 0x634   :  { %7997 = vtanh.f32 %v7154_v5  ;;  %v6075_v13 = vpop.f32.mrb[15].mxu1 }
 0x635   :  { %7999 = vtanh.f32 %v7155_v40 }
 0x63e   :  { %v7998_v49 = vpop.eup %7997 }
 0x63f   :  { %v8000_v10 = vpop.eup %7999  ;;  %6248 = vst [vmem:[#allocation17 + $0x20] sm:$0xff] %v7998_v49 }
 0x640   :  { %6249 = vst [vmem:[#allocation17 + $0x28] sm:$0xff] %v8000_v10 }
 0x641   :  { %8210 = shalt.err (!%p8207_p6)
}
 0x642   :  { %s8211_s22 = scalar_lea.hbm %s8604_s9, 896 }
 0x643   :  { %p8212_p7 = scmp.ne.s32.totalorder %s8604_s9, %s8211_s22  ;;  %p8215_p8 = scmp.lt.u32.totalorder %s8211_s22, %s8604_s9 }
 0x645   :  { %p8217_p9 = pnand %p8215_p8, %p8212_p7 }
 0x647   :  { %8220 = shalt.err (!%p8217_p9)
}
 0x648   :  { %6260 = dma.vmem_to_hbm [thread:$0]  %s6258_s24, 896, %s8604_s9, [#allocation4]  }
 0x649   :  { %8231 = dma.done.wait [#allocation4], 896  }
 0x64a   :  { %8232 = vsyncadd [#allocation4], 4294966400 }
 0x64b   :  { %6264 = vsyncpa [#allocation3], 1 }
 0x64c   :  { %6265 = vsyncpa [#allocation6], 1 }
 0x64d   :  { %6266 = vsyncpa [#allocation9], 1 }
 0x64e   :  { %6267 = vsyncpa [#allocation12], 1 }
 0x64f   :  { %6268 = vsyncpa [#allocation15], 1 }
 0x650   :  { %6269 = vsyncpa [#allocation4], 1 }

</bundles_post_ra>
